<compile_context>
chip_gen: v5e
topology: v5e:2x2
jax: 0.10.0
libtpu: 0.0.40
codegen_flags: <defaults>
</compile_context>

<pallas_src>
import jax
import jax.numpy as jnp
import numpy as np
from jax.experimental import pallas as pl
from jax.experimental.pallas import tpu as pltpu


def _leaky_relu(x, slope=0.1):
    return jnp.where(x >= 0, x, slope * x)


def _basic_block_kernel(x_ref, w1_ref, b1_ref, w2_ref, b2_ref, o_ref,
                        mid_ref, p1_ref, p2_ref):
    # x_ref  : (1, H+4, W+2, Cin)   input padded by (2,2) rows / (1,1) cols, one image
    # w1_ref : (9*Cin, Cout)        conv1 weights, tap-major (kh,kw,ci)
    # b1_ref : (1, Cout)
    # w2_ref : (9*Cout, Cout)
    # b2_ref : (1, Cout)
    # o_ref  : (1, TH, W, Cout)     one spatial tile of the output
    # mid_ref: (TH+2, W+2, Cout)    conv1 output (+halo rows, W-padded) scratch
    # p1_ref : (TH+2, W, 9*Cin)     im2col scratch for conv1
    # p2_ref : (TH, W, 9*Cout)      im2col scratch for conv2
    TH = o_ref.shape[1]
    W = o_ref.shape[2]
    Cout = o_ref.shape[3]
    Cin = x_ref.shape[3]
    H = x_ref.shape[1] - 4
    THe = TH + 2                       # conv1 rows incl. the conv2 row halo

    h = pl.program_id(1)
    row0 = pl.multiple_of(h * TH, TH)  # top of this tile in pad-2 row coordinates

    # ---- im2col for conv1: 9 shifted windows into (THe, W, 9*Cin) scratch -------
    for kh in range(3):
        for kw in range(3):
            k = kh * 3 + kw
            win = x_ref[0, pl.ds(row0 + kh, THe), pl.ds(kw, W), :]
            p1_ref[:, :, k * Cin:(k + 1) * Cin] = win

    # ---- conv1 = ONE matmul (K = 9*Cin), bias folded in, LeakyReLU ---------------
    acc1 = jnp.dot(p1_ref[...].reshape(THe * W, 9 * Cin), w1_ref[...],
                   preferred_element_type=jnp.float32) + b1_ref[...]
    a1 = _leaky_relu(acc1).reshape(THe, W, Cout)

    # halo rows outside the image are exactly conv2's zero padding -> mask them
    r = jax.lax.broadcasted_iota(jnp.int32, (THe, 1, 1), 0) + (h * TH - 1)
    a1 = jnp.where((r >= 0) & (r < H), a1, 0.0)

    # ---- stage conv1 output into the W-padded mid scratch ------------------------
    zcol = jnp.zeros((THe, 1, Cout), mid_ref.dtype)
    mid_ref[:, 0:1, :] = zcol              # only the 1-px W-halo strips are written,
    mid_ref[:, W + 1:W + 2, :] = zcol      # never the whole scratch
    mid_ref[:, 1:W + 1, :] = a1.astype(mid_ref.dtype)

    # ---- im2col for conv2 ---------------------------------------------------------
    for kh in range(3):
        for kw in range(3):
            k = kh * 3 + kw
            p2_ref[:, :, k * Cout:(k + 1) * Cout] = mid_ref[kh:kh + TH, kw:kw + W, :]

    acc2 = jnp.dot(p2_ref[...].reshape(TH * W, 9 * Cout), w2_ref[...],
                   preferred_element_type=jnp.float32) + b2_ref[...]

    # ---- residual from the un-reshaped centre of the input window + LeakyReLU ----
    identity = x_ref[0, pl.ds(row0 + 2, TH), pl.ds(1, W), :]
    out = _leaky_relu(acc2.reshape(TH, W, Cout) + identity.astype(jnp.float32))
    o_ref[0] = out.astype(o_ref.dtype)


def _padded_bytes(shape, itemsize):
    """VMEM footprint estimate with (8,128) physical tiling of the last two dims."""
    s = list(shape)
    s[-1] = -(-s[-1] // 128) * 128
    if len(s) >= 2:
        s[-2] = -(-s[-2] // 8) * 8
    n = 1
    for d in s:
        n *= d
    return n * itemsize


def _estimate_vmem(tile_h, H, W, Cin, Cout, itemsize):
    """Per-step VMEM footprint (double-buffered I/O blocks + scratches)."""
    est = 0
    est += 2 * _padded_bytes((H + 4, W + 2, Cin), itemsize)      # input block
    est += 2 * _padded_bytes((tile_h, W, Cout), 4)               # output block
    est += 2 * (_padded_bytes((9 * Cin, Cout), itemsize)
                + _padded_bytes((9 * Cout, Cout), itemsize)
                + 2 * _padded_bytes((1, Cout), 4))               # weights / biases
    est += _padded_bytes((tile_h + 2, W + 2, Cout), itemsize)    # mid scratch
    est += _padded_bytes((tile_h + 2, W, 9 * Cin), itemsize)     # im2col scratch 1
    est += _padded_bytes((tile_h, W, 9 * Cout), itemsize)        # im2col scratch 2
    return est


def basic_block_normal(x_nchw, w1, b1, w2, b2, *, tile_h=None,
                       compute_dtype=jnp.float32):
    """x_nchw: (N, Cin, H, W). w1: (3,3,Cin,Cout) HWIO, w2: (3,3,Cout,Cout) HWIO."""
    N, Cin, H, W = x_nchw.shape
    Cout = w1.shape[3]
    assert Cin == Cout, "identity path requires inplanes == planes (no downsample)"
    it = jnp.dtype(compute_dtype).itemsize

    if tile_h is None:
        # Biggest row tile that divides H and fits comfortably in scoped VMEM:
        # fewer grid steps -> less fixed per-step overhead and less halo recompute.
        budget = 24 * 1024 * 1024
        tile_h = 1
        for t in sorted({d for d in (H, 64, 32, 16, 8, 4, 2, 1)
                         if 1 <= d <= H and H % d == 0}, reverse=True):
            if _estimate_vmem(t, H, W, Cin, Cout, it) <= budget:
                tile_h = t
                break
    assert H % tile_h == 0, "tile_h must divide H"
    nH = H // tile_h

    # NHWC + halo pad: 2 rows (conv1 halo rows needed for conv2's row halo), 1 col.
    x = jnp.transpose(x_nchw, (0, 2, 3, 1)).astype(compute_dtype)
    xp = jnp.pad(x, ((0, 0), (2, 2), (1, 1), (0, 0)))

    # Pre-reshape weights so each conv is a single (rows, 9*C) x (9*C, C) matmul.
    w1r = jnp.asarray(w1, compute_dtype).reshape(9 * Cin, Cout)
    w2r = jnp.asarray(w2, compute_dtype).reshape(9 * Cout, Cout)
    b1r = jnp.asarray(b1, jnp.float32).reshape(1, Cout)
    b2r = jnp.asarray(b2, jnp.float32).reshape(1, Cout)

    # VMEM budget from the actual (physically padded) tile footprint + headroom,
    # capped at 64 MiB so the request is valid on v7x as well.
    est = _estimate_vmem(tile_h, H, W, Cin, Cout, it)
    vmem_limit = int(min(max(2 * est, 16 * 1024 * 1024), 64 * 1024 * 1024))

    out_nhwc = pl.pallas_call(
        _basic_block_kernel,
        out_shape=jax.ShapeDtypeStruct((N, H, W, Cout), jnp.float32),
        grid_spec=pltpu.PrefetchScalarGridSpec(
            num_scalar_prefetch=0,
            grid=(N, nH),
            in_specs=[
                pl.BlockSpec((1, H + 4, W + 2, Cin), lambda n, h: (n, 0, 0, 0)),
                pl.BlockSpec((9 * Cin, Cout), lambda n, h: (0, 0)),
                pl.BlockSpec((1, Cout), lambda n, h: (0, 0)),
                pl.BlockSpec((9 * Cout, Cout), lambda n, h: (0, 0)),
                pl.BlockSpec((1, Cout), lambda n, h: (0, 0)),
            ],
            out_specs=pl.BlockSpec((1, tile_h, W, Cout), lambda n, h: (n, h, 0, 0)),
            scratch_shapes=[
                pltpu.VMEM((tile_h + 2, W + 2, Cout), compute_dtype),
                pltpu.VMEM((tile_h + 2, W, 9 * Cin), compute_dtype),
                pltpu.VMEM((tile_h, W, 9 * Cout), compute_dtype),
            ],
        ),
        compiler_params=pltpu.CompilerParams(
            dimension_semantics=("parallel", "parallel"),
            vmem_limit_bytes=vmem_limit,
        ),
    )(xp, w1r, b1r, w2r, b2r)

    return jnp.transpose(out_nhwc, (0, 3, 1, 2))               # back to NCHW


def _reference(x_nchw, w1, b1, w2, b2):
    """Pure-JAX reference (lax conv), NHWC internally."""
    x = jnp.transpose(x_nchw, (0, 2, 3, 1))

    def conv(y, w, b):
        z = jax.lax.conv_general_dilated(
            y, w, window_strides=(1, 1), padding=((1, 1), (1, 1)),
            dimension_numbers=("NHWC", "HWIO", "NHWC"))
        return z + b.reshape(1, 1, 1, -1)

    lrelu = lambda t: jnp.where(t >= 0, t, 0.1 * t)
    out = lrelu(conv(x, w1, b1))
    out = conv(out, w2, b2)
    out = lrelu(out + x)
    return jnp.transpose(out, (0, 3, 1, 2))


if __name__ == "__main__":
    key = jax.random.PRNGKey(0)
    N, C, H, W = 2, 4, 16, 16          # inplanes = planes = 4, stride = 1
    k_x, k_w1, k_b1, k_w2, k_b2 = jax.random.split(key, 5)

    x = jax.random.normal(k_x, (N, C, H, W), dtype=jnp.float32)
    w1 = 0.1 * jax.random.normal(k_w1, (3, 3, C, C), dtype=jnp.float32)   # HWIO
    b1 = 0.1 * jax.random.normal(k_b1, (C,), dtype=jnp.float32)
    w2 = 0.1 * jax.random.normal(k_w2, (3, 3, C, C), dtype=jnp.float32)
    b2 = 0.1 * jax.random.normal(k_b2, (C,), dtype=jnp.float32)

    # default tile_h -> full-height tile (grid = (2, 1)): biggest tile that fits.
    out = jax.block_until_ready(basic_block_normal(x, w1, b1, w2, b2))
    ref = jax.block_until_ready(_reference(x, w1, b1, w2, b2))

    assert out.shape == (N, C, H, W)
    np.testing.assert_allclose(np.asarray(out), np.asarray(ref),
                               rtol=1e-4, atol=1e-4)
    print("KERNEL_OK")
</pallas_src>

<mosaic_0001>
module attributes {stable_mosaic.version = 11 : i64} {
  func.func @_basic_block_kernel(%arg0: i32, %arg1: i32, %arg2: memref<1x20x18x4xf32, #tpu.memory_space<vmem>>, %arg3: memref<36x4xf32, #tpu.memory_space<vmem>>, %arg4: memref<1x4xf32, #tpu.memory_space<vmem>>, %arg5: memref<36x4xf32, #tpu.memory_space<vmem>>, %arg6: memref<1x4xf32, #tpu.memory_space<vmem>>, %arg7: memref<1x16x16x4xf32, #tpu.memory_space<vmem>>, %arg8: memref<18x18x4xf32, #tpu.memory_space<vmem>>, %arg9: memref<18x16x36xf32, #tpu.memory_space<vmem>>, %arg10: memref<16x16x36xf32, #tpu.memory_space<vmem>>) attributes {dimension_semantics = [#tpu.dimension_semantics<parallel>, #tpu.dimension_semantics<parallel>], iteration_bounds = array<i64: 2, 1>, scalar_prefetch = 0 : i64, scratch_operands = 3 : i64, tpu.core_type = #tpu.core_type<tc>, window_params = [{transform_indices = @transform_0, window_bounds = array<i64: 1, 20, 18, 4>}, {pipeline_mode = #tpu.pipeline_mode<synchronous>, transform_indices = @transform_1, window_bounds = array<i64: 36, 4>}, {pipeline_mode = #tpu.pipeline_mode<synchronous>, transform_indices = @transform_2, window_bounds = array<i64: 1, 4>}, {pipeline_mode = #tpu.pipeline_mode<synchronous>, transform_indices = @transform_3, window_bounds = array<i64: 36, 4>}, {pipeline_mode = #tpu.pipeline_mode<synchronous>, transform_indices = @transform_4, window_bounds = array<i64: 1, 4>}, {transform_indices = @transform_5, window_bounds = array<i64: 1, 16, 16, 4>}]} {
    %c16_i32 = arith.constant 16 : i32
    %0 = arith.muli %arg1, %c16_i32 : i32
    %1 = tpu.assume_multiple %0, 16 : i32
    %c0_i32 = arith.constant 0 : i32
    %2 = arith.addi %1, %c0_i32 : i32
    %c0 = arith.constant 0 : index
    %3 = arith.index_cast %2 : i32 to index
    %c0_0 = arith.constant 0 : index
    %c0_1 = arith.constant 0 : index
    %4 = vector.load %arg2[%c0, %3, %c0_0, %c0_1] : memref<1x20x18x4xf32, #tpu.memory_space<vmem>>, vector<1x18x16x4xf32>
    %5 = vector.shape_cast %4 : vector<1x18x16x4xf32> to vector<18x16x4xf32>
    %c0_2 = arith.constant 0 : index
    %c0_3 = arith.constant 0 : index
    %c0_4 = arith.constant 0 : index
    %6 = vector.load %arg9[%c0_2, %c0_3, %c0_4] : memref<18x16x36xf32, #tpu.memory_space<vmem>>, vector<18x16x4xf32>
    tpu.vector_store %arg9[%c0_2, %c0_3, %c0_4], %5 {strides = array<i32>} : memref<18x16x36xf32, #tpu.memory_space<vmem>>, vector<18x16x4xf32>,
    %c0_i32_5 = arith.constant 0 : i32
    %7 = arith.addi %1, %c0_i32_5 : i32
    %c0_6 = arith.constant 0 : index
    %8 = arith.index_cast %7 : i32 to index
    %c1 = arith.constant 1 : index
    %c0_7 = arith.constant 0 : index
    %9 = vector.load %arg2[%c0_6, %8, %c1, %c0_7] : memref<1x20x18x4xf32, #tpu.memory_space<vmem>>, vector<1x18x16x4xf32>
    %10 = vector.shape_cast %9 : vector<1x18x16x4xf32> to vector<18x16x4xf32>
    %c0_8 = arith.constant 0 : index
    %c0_9 = arith.constant 0 : index
    %c4 = arith.constant 4 : index
    %11 = vector.load %arg9[%c0_8, %c0_9, %c4] : memref<18x16x36xf32, #tpu.memory_space<vmem>>, vector<18x16x4xf32>
    tpu.vector_store %arg9[%c0_8, %c0_9, %c4], %10 {strides = array<i32>} : memref<18x16x36xf32, #tpu.memory_space<vmem>>, vector<18x16x4xf32>,
    %c0_i32_10 = arith.constant 0 : i32
    %12 = arith.addi %1, %c0_i32_10 : i32
    %c0_11 = arith.constant 0 : index
    %13 = arith.index_cast %12 : i32 to index
    %c2 = arith.constant 2 : index
    %c0_12 = arith.constant 0 : index
    %14 = vector.load %arg2[%c0_11, %13, %c2, %c0_12] : memref<1x20x18x4xf32, #tpu.memory_space<vmem>>, vector<1x18x16x4xf32>
    %15 = vector.shape_cast %14 : vector<1x18x16x4xf32> to vector<18x16x4xf32>
    %c0_13 = arith.constant 0 : index
    %c0_14 = arith.constant 0 : index
    %c8 = arith.constant 8 : index
    %16 = vector.load %arg9[%c0_13, %c0_14, %c8] : memref<18x16x36xf32, #tpu.memory_space<vmem>>, vector<18x16x4xf32>
    tpu.vector_store %arg9[%c0_13, %c0_14, %c8], %15 {strides = array<i32>} : memref<18x16x36xf32, #tpu.memory_space<vmem>>, vector<18x16x4xf32>,
    %c1_i32 = arith.constant 1 : i32
    %17 = arith.addi %1, %c1_i32 : i32
    %c0_15 = arith.constant 0 : index
    %18 = arith.index_cast %17 : i32 to index
    %c0_16 = arith.constant 0 : index
    %c0_17 = arith.constant 0 : index
    %19 = vector.load %arg2[%c0_15, %18, %c0_16, %c0_17] : memref<1x20x18x4xf32, #tpu.memory_space<vmem>>, vector<1x18x16x4xf32>
    %20 = vector.shape_cast %19 : vector<1x18x16x4xf32> to vector<18x16x4xf32>
    %c0_18 = arith.constant 0 : index
    %c0_19 = arith.constant 0 : index
    %c12 = arith.constant 12 : index
    %21 = vector.load %arg9[%c0_18, %c0_19, %c12] : memref<18x16x36xf32, #tpu.memory_space<vmem>>, vector<18x16x4xf32>
    tpu.vector_store %arg9[%c0_18, %c0_19, %c12], %20 {strides = array<i32>} : memref<18x16x36xf32, #tpu.memory_space<vmem>>, vector<18x16x4xf32>,
    %c1_i32_20 = arith.constant 1 : i32
    %22 = arith.addi %1, %c1_i32_20 : i32
    %c0_21 = arith.constant 0 : index
    %23 = arith.index_cast %22 : i32 to index
    %c1_22 = arith.constant 1 : index
    %c0_23 = arith.constant 0 : index
    %24 = vector.load %arg2[%c0_21, %23, %c1_22, %c0_23] : memref<1x20x18x4xf32, #tpu.memory_space<vmem>>, vector<1x18x16x4xf32>
    %25 = vector.shape_cast %24 : vector<1x18x16x4xf32> to vector<18x16x4xf32>
    %c0_24 = arith.constant 0 : index
    %c0_25 = arith.constant 0 : index
    %c16 = arith.constant 16 : index
    %26 = vector.load %arg9[%c0_24, %c0_25, %c16] : memref<18x16x36xf32, #tpu.memory_space<vmem>>, vector<18x16x4xf32>
    tpu.vector_store %arg9[%c0_24, %c0_25, %c16], %25 {strides = array<i32>} : memref<18x16x36xf32, #tpu.memory_space<vmem>>, vector<18x16x4xf32>,
    %c1_i32_26 = arith.constant 1 : i32
    %27 = arith.addi %1, %c1_i32_26 : i32
    %c0_27 = arith.constant 0 : index
    %28 = arith.index_cast %27 : i32 to index
    %c2_28 = arith.constant 2 : index
    %c0_29 = arith.constant 0 : index
    %29 = vector.load %arg2[%c0_27, %28, %c2_28, %c0_29] : memref<1x20x18x4xf32, #tpu.memory_space<vmem>>, vector<1x18x16x4xf32>
    %30 = vector.shape_cast %29 : vector<1x18x16x4xf32> to vector<18x16x4xf32>
    %c0_30 = arith.constant 0 : index
    %c0_31 = arith.constant 0 : index
    %c20 = arith.constant 20 : index
    %31 = vector.load %arg9[%c0_30, %c0_31, %c20] : memref<18x16x36xf32, #tpu.memory_space<vmem>>, vector<18x16x4xf32>
    tpu.vector_store %arg9[%c0_30, %c0_31, %c20], %30 {strides = array<i32>} : memref<18x16x36xf32, #tpu.memory_space<vmem>>, vector<18x16x4xf32>,
    %c2_i32 = arith.constant 2 : i32
    %32 = arith.addi %1, %c2_i32 : i32
    %c0_32 = arith.constant 0 : index
    %33 = arith.index_cast %32 : i32 to index
    %c0_33 = arith.constant 0 : index
    %c0_34 = arith.constant 0 : index
    %34 = vector.load %arg2[%c0_32, %33, %c0_33, %c0_34] : memref<1x20x18x4xf32, #tpu.memory_space<vmem>>, vector<1x18x16x4xf32>
    %35 = vector.shape_cast %34 : vector<1x18x16x4xf32> to vector<18x16x4xf32>
    %c0_35 = arith.constant 0 : index
    %c0_36 = arith.constant 0 : index
    %c24 = arith.constant 24 : index
    %36 = vector.load %arg9[%c0_35, %c0_36, %c24] : memref<18x16x36xf32, #tpu.memory_space<vmem>>, vector<18x16x4xf32>
    tpu.vector_store %arg9[%c0_35, %c0_36, %c24], %35 {strides = array<i32>} : memref<18x16x36xf32, #tpu.memory_space<vmem>>, vector<18x16x4xf32>,
    %c2_i32_37 = arith.constant 2 : i32
    %37 = arith.addi %1, %c2_i32_37 : i32
    %c0_38 = arith.constant 0 : index
    %38 = arith.index_cast %37 : i32 to index
    %c1_39 = arith.constant 1 : index
    %c0_40 = arith.constant 0 : index
    %39 = vector.load %arg2[%c0_38, %38, %c1_39, %c0_40] : memref<1x20x18x4xf32, #tpu.memory_space<vmem>>, vector<1x18x16x4xf32>
    %40 = vector.shape_cast %39 : vector<1x18x16x4xf32> to vector<18x16x4xf32>
    %c0_41 = arith.constant 0 : index
    %c0_42 = arith.constant 0 : index
    %c28 = arith.constant 28 : index
    %41 = vector.load %arg9[%c0_41, %c0_42, %c28] : memref<18x16x36xf32, #tpu.memory_space<vmem>>, vector<18x16x4xf32>
    tpu.vector_store %arg9[%c0_41, %c0_42, %c28], %40 {strides = array<i32>} : memref<18x16x36xf32, #tpu.memory_space<vmem>>, vector<18x16x4xf32>,
    %c2_i32_43 = arith.constant 2 : i32
    %42 = arith.addi %1, %c2_i32_43 : i32
    %c0_44 = arith.constant 0 : index
    %43 = arith.index_cast %42 : i32 to index
    %c2_45 = arith.constant 2 : index
    %c0_46 = arith.constant 0 : index
    %44 = vector.load %arg2[%c0_44, %43, %c2_45, %c0_46] : memref<1x20x18x4xf32, #tpu.memory_space<vmem>>, vector<1x18x16x4xf32>
    %45 = vector.shape_cast %44 : vector<1x18x16x4xf32> to vector<18x16x4xf32>
    %c0_47 = arith.constant 0 : index
    %c0_48 = arith.constant 0 : index
    %c32 = arith.constant 32 : index
    %46 = vector.load %arg9[%c0_47, %c0_48, %c32] : memref<18x16x36xf32, #tpu.memory_space<vmem>>, vector<18x16x4xf32>
    tpu.vector_store %arg9[%c0_47, %c0_48, %c32], %45 {strides = array<i32>} : memref<18x16x36xf32, #tpu.memory_space<vmem>>, vector<18x16x4xf32>,
    %c0_49 = arith.constant 0 : index
    %c0_50 = arith.constant 0 : index
    %c0_51 = arith.constant 0 : index
    %47 = vector.load %arg9[%c0_49, %c0_50, %c0_51] : memref<18x16x36xf32, #tpu.memory_space<vmem>>, vector<18x16x36xf32>
    %48 = vector.shape_cast %47 : vector<18x16x36xf32> to vector<288x36xf32>
    %c0_52 = arith.constant 0 : index
    %c0_53 = arith.constant 0 : index
    %49 = vector.load %arg3[%c0_52, %c0_53] : memref<36x4xf32, #tpu.memory_space<vmem>>, vector<36x4xf32>
    %cst = arith.constant dense<0.000000e+00> : vector<288x4xf32>
    %50 = tpu.matmul %48, %49, %cst {dimension_numbers = #tpu.dot_dimension_numbers<[1], [0], [0], [1], [0, 0, 1, 1], [], []>} : vector<288x36xf32>, vector<36x4xf32>, vector<288x4xf32> -> vector<288x4xf32>
    %c0_54 = arith.constant 0 : index
    %c0_55 = arith.constant 0 : index
    %51 = vector.load %arg4[%c0_54, %c0_55] : memref<1x4xf32, #tpu.memory_space<vmem>>, vector<1x4xf32>
    %52 = vector.broadcast %51 : vector<1x4xf32> to vector<288x4xf32>
    %53 = arith.addf %50, %52 : vector<288x4xf32>
    %cst_56 = arith.constant 0.000000e+00 : f32
    %54 = vector.broadcast %cst_56 : f32 to vector<288x4xf32>
    %55 = arith.cmpf oge, %53, %54 : vector<288x4xf32>
    %cst_57 = arith.constant 1.000000e-01 : f32
    %56 = vector.broadcast %cst_57 : f32 to vector<288x4xf32>
    %57 = arith.mulf %56, %53 : vector<288x4xf32>
    %58 = arith.select %55, %53, %57 : vector<288x4xi1>, vector<288x4xf32>
    %59 = vector.shape_cast %58 : vector<288x4xf32> to vector<18x16x4xf32>
    %60 = tpu.iota {dimensions = array<i32: 0>} : vector<18x1x1xi32>
    %c16_i32_58 = arith.constant 16 : i32
    %61 = arith.muli %arg1, %c16_i32_58 : i32
    %c1_i32_59 = arith.constant 1 : i32
    %62 = arith.subi %61, %c1_i32_59 : i32
    %63 = vector.broadcast %62 : i32 to vector<18x1x1xi32>
    %64 = arith.addi %60, %63 : vector<18x1x1xi32>
    %c0_i32_60 = arith.constant 0 : i32
    %65 = vector.broadcast %c0_i32_60 : i32 to vector<18x1x1xi32>
    %66 = arith.cmpi sge, %64, %65 : vector<18x1x1xi32>
    %c16_i32_61 = arith.constant 16 : i32
    %67 = vector.broadcast %c16_i32_61 : i32 to vector<18x1x1xi32>
    %68 = arith.cmpi slt, %64, %67 : vector<18x1x1xi32>
    %69 = arith.andi %66, %68 : vector<18x1x1xi1>
    %cst_62 = arith.constant 0.000000e+00 : f32
    %70 = vector.shape_cast %69 : vector<18x1x1xi1> to vector<18x1x1xi1>
    %71 = vector.broadcast %70 : vector<18x1x1xi1> to vector<18x16x4xi1>
    %72 = vector.broadcast %cst_62 : f32 to vector<18x16x4xf32>
    %73 = arith.select %71, %59, %72 : vector<18x16x4xi1>, vector<18x16x4xf32>
    %cst_63 = arith.constant 0.000000e+00 : f32
    %74 = vector.broadcast %cst_63 : f32 to vector<18x1x4xf32>
    %c0_64 = arith.constant 0 : index
    %c0_65 = arith.constant 0 : index
    %c0_66 = arith.constant 0 : index
    %75 = vector.load %arg8[%c0_64, %c0_65, %c0_66] : memref<18x18x4xf32, #tpu.memory_space<vmem>>, vector<18x1x4xf32>
    tpu.vector_store %arg8[%c0_64, %c0_65, %c0_66], %74 {strides = array<i32>} : memref<18x18x4xf32, #tpu.memory_space<vmem>>, vector<18x1x4xf32>,
    %c0_67 = arith.constant 0 : index
    %c17 = arith.constant 17 : index
    %c0_68 = arith.constant 0 : index
    %76 = vector.load %arg8[%c0_67, %c17, %c0_68] : memref<18x18x4xf32, #tpu.memory_space<vmem>>, vector<18x1x4xf32>
    tpu.vector_store %arg8[%c0_67, %c17, %c0_68], %74 {strides = array<i32>} : memref<18x18x4xf32, #tpu.memory_space<vmem>>, vector<18x1x4xf32>,
    %c0_69 = arith.constant 0 : index
    %c1_70 = arith.constant 1 : index
    %c0_71 = arith.constant 0 : index
    %77 = vector.load %arg8[%c0_69, %c1_70, %c0_71] : memref<18x18x4xf32, #tpu.memory_space<vmem>>, vector<18x16x4xf32>
    tpu.vector_store %arg8[%c0_69, %c1_70, %c0_71], %73 {strides = array<i32>} : memref<18x18x4xf32, #tpu.memory_space<vmem>>, vector<18x16x4xf32>,
    %c0_72 = arith.constant 0 : index
    %c0_73 = arith.constant 0 : index
    %c0_74 = arith.constant 0 : index
    %78 = vector.load %arg8[%c0_72, %c0_73, %c0_74] : memref<18x18x4xf32, #tpu.memory_space<vmem>>, vector<16x16x4xf32>
    %c0_75 = arith.constant 0 : index
    %c0_76 = arith.constant 0 : index
    %c0_77 = arith.constant 0 : index
    %79 = vector.load %arg10[%c0_75, %c0_76, %c0_77] : memref<16x16x36xf32, #tpu.memory_space<vmem>>, vector<16x16x4xf32>
    tpu.vector_store %arg10[%c0_75, %c0_76, %c0_77], %78 {strides = array<i32>} : memref<16x16x36xf32, #tpu.memory_space<vmem>>, vector<16x16x4xf32>,
    %c0_78 = arith.constant 0 : index
    %c1_79 = arith.constant 1 : index
    %c0_80 = arith.constant 0 : index
    %80 = vector.load %arg8[%c0_78, %c1_79, %c0_80] : memref<18x18x4xf32, #tpu.memory_space<vmem>>, vector<16x16x4xf32>
    %c0_81 = arith.constant 0 : index
    %c0_82 = arith.constant 0 : index
    %c4_83 = arith.constant 4 : index
    %81 = vector.load %arg10[%c0_81, %c0_82, %c4_83] : memref<16x16x36xf32, #tpu.memory_space<vmem>>, vector<16x16x4xf32>
    tpu.vector_store %arg10[%c0_81, %c0_82, %c4_83], %80 {strides = array<i32>} : memref<16x16x36xf32, #tpu.memory_space<vmem>>, vector<16x16x4xf32>,
    %c0_84 = arith.constant 0 : index
    %c2_85 = arith.constant 2 : index
    %c0_86 = arith.constant 0 : index
    %82 = vector.load %arg8[%c0_84, %c2_85, %c0_86] : memref<18x18x4xf32, #tpu.memory_space<vmem>>, vector<16x16x4xf32>
    %c0_87 = arith.constant 0 : index
    %c0_88 = arith.constant 0 : index
    %c8_89 = arith.constant 8 : index
    %83 = vector.load %arg10[%c0_87, %c0_88, %c8_89] : memref<16x16x36xf32, #tpu.memory_space<vmem>>, vector<16x16x4xf32>
    tpu.vector_store %arg10[%c0_87, %c0_88, %c8_89], %82 {strides = array<i32>} : memref<16x16x36xf32, #tpu.memory_space<vmem>>, vector<16x16x4xf32>,
    %c1_90 = arith.constant 1 : index
    %c0_91 = arith.constant 0 : index
    %c0_92 = arith.constant 0 : index
    %84 = vector.load %arg8[%c1_90, %c0_91, %c0_92] : memref<18x18x4xf32, #tpu.memory_space<vmem>>, vector<16x16x4xf32>
    %c0_93 = arith.constant 0 : index
    %c0_94 = arith.constant 0 : index
    %c12_95 = arith.constant 12 : index
    %85 = vector.load %arg10[%c0_93, %c0_94, %c12_95] : memref<16x16x36xf32, #tpu.memory_space<vmem>>, vector<16x16x4xf32>
    tpu.vector_store %arg10[%c0_93, %c0_94, %c12_95], %84 {strides = array<i32>} : memref<16x16x36xf32, #tpu.memory_space<vmem>>, vector<16x16x4xf32>,
    %c1_96 = arith.constant 1 : index
    %c1_97 = arith.constant 1 : index
    %c0_98 = arith.constant 0 : index
    %86 = vector.load %arg8[%c1_96, %c1_97, %c0_98] : memref<18x18x4xf32, #tpu.memory_space<vmem>>, vector<16x16x4xf32>
    %c0_99 = arith.constant 0 : index
    %c0_100 = arith.constant 0 : index
    %c16_101 = arith.constant 16 : index
    %87 = vector.load %arg10[%c0_99, %c0_100, %c16_101] : memref<16x16x36xf32, #tpu.memory_space<vmem>>, vector<16x16x4xf32>
    tpu.vector_store %arg10[%c0_99, %c0_100, %c16_101], %86 {strides = array<i32>} : memref<16x16x36xf32, #tpu.memory_space<vmem>>, vector<16x16x4xf32>,
    %c1_102 = arith.constant 1 : index
    %c2_103 = arith.constant 2 : index
    %c0_104 = arith.constant 0 : index
    %88 = vector.load %arg8[%c1_102, %c2_103, %c0_104] : memref<18x18x4xf32, #tpu.memory_space<vmem>>, vector<16x16x4xf32>
    %c0_105 = arith.constant 0 : index
    %c0_106 = arith.constant 0 : index
    %c20_107 = arith.constant 20 : index
    %89 = vector.load %arg10[%c0_105, %c0_106, %c20_107] : memref<16x16x36xf32, #tpu.memory_space<vmem>>, vector<16x16x4xf32>
    tpu.vector_store %arg10[%c0_105, %c0_106, %c20_107], %88 {strides = array<i32>} : memref<16x16x36xf32, #tpu.memory_space<vmem>>, vector<16x16x4xf32>,
    %c2_108 = arith.constant 2 : index
    %c0_109 = arith.constant 0 : index
    %c0_110 = arith.constant 0 : index
    %90 = vector.load %arg8[%c2_108, %c0_109, %c0_110] : memref<18x18x4xf32, #tpu.memory_space<vmem>>, vector<16x16x4xf32>
    %c0_111 = arith.constant 0 : index
    %c0_112 = arith.constant 0 : index
    %c24_113 = arith.constant 24 : index
    %91 = vector.load %arg10[%c0_111, %c0_112, %c24_113] : memref<16x16x36xf32, #tpu.memory_space<vmem>>, vector<16x16x4xf32>
    tpu.vector_store %arg10[%c0_111, %c0_112, %c24_113], %90 {strides = array<i32>} : memref<16x16x36xf32, #tpu.memory_space<vmem>>, vector<16x16x4xf32>,
    %c2_114 = arith.constant 2 : index
    %c1_115 = arith.constant 1 : index
    %c0_116 = arith.constant 0 : index
    %92 = vector.load %arg8[%c2_114, %c1_115, %c0_116] : memref<18x18x4xf32, #tpu.memory_space<vmem>>, vector<16x16x4xf32>
    %c0_117 = arith.constant 0 : index
    %c0_118 = arith.constant 0 : index
    %c28_119 = arith.constant 28 : index
    %93 = vector.load %arg10[%c0_117, %c0_118, %c28_119] : memref<16x16x36xf32, #tpu.memory_space<vmem>>, vector<16x16x4xf32>
    tpu.vector_store %arg10[%c0_117, %c0_118, %c28_119], %92 {strides = array<i32>} : memref<16x16x36xf32, #tpu.memory_space<vmem>>, vector<16x16x4xf32>,
    %c2_120 = arith.constant 2 : index
    %c2_121 = arith.constant 2 : index
    %c0_122 = arith.constant 0 : index
    %94 = vector.load %arg8[%c2_120, %c2_121, %c0_122] : memref<18x18x4xf32, #tpu.memory_space<vmem>>, vector<16x16x4xf32>
    %c0_123 = arith.constant 0 : index
    %c0_124 = arith.constant 0 : index
    %c32_125 = arith.constant 32 : index
    %95 = vector.load %arg10[%c0_123, %c0_124, %c32_125] : memref<16x16x36xf32, #tpu.memory_space<vmem>>, vector<16x16x4xf32>
    tpu.vector_store %arg10[%c0_123, %c0_124, %c32_125], %94 {strides = array<i32>} : memref<16x16x36xf32, #tpu.memory_space<vmem>>, vector<16x16x4xf32>,
    %c0_126 = arith.constant 0 : index
    %c0_127 = arith.constant 0 : index
    %c0_128 = arith.constant 0 : index
    %96 = vector.load %arg10[%c0_126, %c0_127, %c0_128] : memref<16x16x36xf32, #tpu.memory_space<vmem>>, vector<16x16x36xf32>
    %97 = vector.shape_cast %96 : vector<16x16x36xf32> to vector<256x36xf32>
    %c0_129 = arith.constant 0 : index
    %c0_130 = arith.constant 0 : index
    %98 = vector.load %arg5[%c0_129, %c0_130] : memref<36x4xf32, #tpu.memory_space<vmem>>, vector<36x4xf32>
    %cst_131 = arith.constant dense<0.000000e+00> : vector<256x4xf32>
    %99 = tpu.matmul %97, %98, %cst_131 {dimension_numbers = #tpu.dot_dimension_numbers<[1], [0], [0], [1], [0, 0, 1, 1], [], []>} : vector<256x36xf32>, vector<36x4xf32>, vector<256x4xf32> -> vector<256x4xf32>
    %c0_132 = arith.constant 0 : index
    %c0_133 = arith.constant 0 : index
    %100 = vector.load %arg6[%c0_132, %c0_133] : memref<1x4xf32, #tpu.memory_space<vmem>>, vector<1x4xf32>
    %101 = vector.broadcast %100 : vector<1x4xf32> to vector<256x4xf32>
    %102 = arith.addf %99, %101 : vector<256x4xf32>
    %c2_i32_134 = arith.constant 2 : i32
    %103 = arith.addi %1, %c2_i32_134 : i32
    %c0_135 = arith.constant 0 : index
    %104 = arith.index_cast %103 : i32 to index
    %c1_136 = arith.constant 1 : index
    %c0_137 = arith.constant 0 : index
    %105 = vector.load %arg2[%c0_135, %104, %c1_136, %c0_137] : memref<1x20x18x4xf32, #tpu.memory_space<vmem>>, vector<1x16x16x4xf32>
    %106 = vector.shape_cast %105 : vector<1x16x16x4xf32> to vector<16x16x4xf32>
    %107 = vector.shape_cast %102 : vector<256x4xf32> to vector<16x16x4xf32>
    %108 = arith.addf %107, %106 : vector<16x16x4xf32>
    %cst_138 = arith.constant 0.000000e+00 : f32
    %109 = vector.broadcast %cst_138 : f32 to vector<16x16x4xf32>
    %110 = arith.cmpf oge, %108, %109 : vector<16x16x4xf32>
    %cst_139 = arith.constant 1.000000e-01 : f32
    %111 = vector.broadcast %cst_139 : f32 to vector<16x16x4xf32>
    %112 = arith.mulf %111, %108 : vector<16x16x4xf32>
    %113 = arith.select %110, %108, %112 : vector<16x16x4xi1>, vector<16x16x4xf32>
    %c0_140 = arith.constant 0 : index
    %c0_141 = arith.constant 0 : index
    %c0_142 = arith.constant 0 : index
    %c0_143 = arith.constant 0 : index
    %114 = vector.load %arg7[%c0_140, %c0_141, %c0_142, %c0_143] : memref<1x16x16x4xf32, #tpu.memory_space<vmem>>, vector<1x16x16x4xf32>
    %115 = vector.shape_cast %114 : vector<1x16x16x4xf32> to vector<16x16x4xf32>
    %116 = vector.shape_cast %113 : vector<16x16x4xf32> to vector<1x16x16x4xf32>
    tpu.vector_store %arg7[%c0_140, %c0_141, %c0_142, %c0_143], %116 {strides = array<i32>} : memref<1x16x16x4xf32, #tpu.memory_space<vmem>>, vector<1x16x16x4xf32>,
    return
  }
  func.func @transform_0(%arg0: i32, %arg1: i32) -> (i32, i32, i32, i32) {
    %c0_i32 = arith.constant 0 : i32
    %c0_i32_0 = arith.constant 0 : i32
    %c0_i32_1 = arith.constant 0 : i32
    %c0_i32_2 = arith.constant 0 : i32
    return %arg0, %c0_i32, %c0_i32_0, %c0_i32_1 : i32, i32, i32, i32
  }
  func.func @transform_1(%arg0: i32, %arg1: i32) -> (i32, i32) {
    %c0_i32 = arith.constant 0 : i32
    %c0_i32_0 = arith.constant 0 : i32
    %c0_i32_1 = arith.constant 0 : i32
    return %c0_i32, %c0_i32_0 : i32, i32
  }
  func.func @transform_2(%arg0: i32, %arg1: i32) -> (i32, i32) {
    %c0_i32 = arith.constant 0 : i32
    %c0_i32_0 = arith.constant 0 : i32
    %c0_i32_1 = arith.constant 0 : i32
    return %c0_i32, %c0_i32_0 : i32, i32
  }
  func.func @transform_3(%arg0: i32, %arg1: i32) -> (i32, i32) {
    %c0_i32 = arith.constant 0 : i32
    %c0_i32_0 = arith.constant 0 : i32
    %c0_i32_1 = arith.constant 0 : i32
    return %c0_i32, %c0_i32_0 : i32, i32
  }
  func.func @transform_4(%arg0: i32, %arg1: i32) -> (i32, i32) {
    %c0_i32 = arith.constant 0 : i32
    %c0_i32_0 = arith.constant 0 : i32
    %c0_i32_1 = arith.constant 0 : i32
    return %c0_i32, %c0_i32_0 : i32, i32
  }
  func.func @transform_5(%arg0: i32, %arg1: i32) -> (i32, i32, i32, i32) {
    %c0_i32 = arith.constant 0 : i32
    %c0_i32_0 = arith.constant 0 : i32
    %c0_i32_1 = arith.constant 0 : i32
    return %arg0, %arg1, %c0_i32, %c0_i32_0 : i32, i32, i32, i32
  }
}

</mosaic_0001>

<bundles_post_ra>
// kernel: tpu_custom_call.1
= control target key start
LH: loop header
LB: loop body
LE: loop exit
PB: predicated region body
PF: predicated region fallthrough
CT: control target
= control target key end

     0   :  { %s5264_s18 = smov 0   ;;  %s5266_s19 = smov 0   ;;  %s7843_s0 = inlined_call_operand.vmem [shape: f32[2,20,18,4], index: 0, kind: input, shape index: {}]   ;;  %s7844_s1 = inlined_call_operand.vmem [shape: f32[36,4], index: 1, kind: input, shape index: {}]   ;;  %s7845_s2 = inlined_call_operand.vmem [shape: f32[1,4], index: 2, kind: input, shape index: {}]   ;;  %s7846_s3 = inlined_call_operand.vmem [shape: f32[36,4], index: 3, kind: input, shape index: {}]   ;;  %s7847_s4 = inlined_call_operand.vmem [shape: f32[1,4], index: 4, kind: input, shape index: {}]   ;;  %s7848_s5 = inlined_call_operand.vmem [shape: f32[2,16,16,4], index: 5, kind: output, shape index: {}]  }
   0x1   :  { %s5268_s20 = smov 0  }
   0x2 LB: > { %s27_s21 = sadd.s32 1, %s5219_s19  ;;  %p4825_p0 = scmp.ge.s32.totalorder %s5223_s20, 1  ;;  %s5223_s20 = sphi %s5268_s20, %s15_s20   ;;  %s5219_s19 = sphi %s5266_s19, %s8033_s19   ;;  %s5215_s18 = sphi %s5264_s18, %s8032_s18  }
   0x3   : > { %p29_p1 = scmp.ge.s32.totalorder %s27_s21, 2  ;;  %p201_p2 = scmp.lt.s32.totalorder %s5223_s20, 3 }
   0x5   : > { %s8035_s21 = smov (%p29_p1, %s27_s21), 0  ;;  %p202_p3 = pnand %p4825_p0, %p201_p2 }
   0x7   : > { %205 = sbr.rel (%p202_p3) target bundleno = 1973 (0x7b5), region = 40 }
   0xc   : > { %p234_p4 = scmp.lt.s32.totalorder %s5215_s18, 1  ;;  %s5225_s26 = smov 4   ;;  %vm289_vm0 = vcmask 31744   ;;  %vm506_vm1 = vcmask 64544   ;;  %vm723_vm2 = vcmask 97344   ;;  %vm943_vm3 = vcmask 130144  }
   0xd   : > { %s5226_s27 = smov 8   ;;  %s5227_s28 = smov 12   ;;  %vm1160_vm4 = vcmask 162944   ;;  %vm1377_vm5 = vcmask 195744   ;;  %vm1597_vm6 = vcmask 228544   ;;  %vm1814_vm7 = vcmask 261344  }
   0xe   : > { %s8037_s18 = smov (!%p234_p4, %s5215_s18), 1  ;;  %s5228_s29 = smov 16   ;;  %vm2222_vm8 = vcmask 1043456   ;;  %vm2031_vm9 = vcmask 294144   ;;  %vm2113_vm10 = vcmask 293888   ;;  %vm2604_vm11 = vcmask 24576  }
   0xf   : > { %s5165_s22 = smul.u32 480, %s8037_s18  ;;  %s5229_s30 = smov 20  }
  0x10   : > { %s5230_s6 = smov 24   ;;  %s5231_s7 = smov 28  }
  0x11   : > { %s5288_s25 = scalar_lea.vmem %s7843_s0, %s5165_s22  ;;  %s5232_s8 = smov 32  }
  0x12   : > { %v326_v0 = vld [vmem:[%s5288_s25 + $0x1] sm:$0xff]  ;;  %v5292_v1 = vld [vmem:[%s5288_s25 + $0x19] sm:$0xff]  ;;  %v5298_v2 = vld [vmem:[%s5288_s25 + $0x31] sm:$0xff]  ;;  %s5149_s17 = sshll.u32 %s8037_s18, 8 }
  0x13   : > { %398 = vrot.lane.b32.xlu0 %v326_v0, %s5225_s26  ;;  %402 = vrot.lane.b32.xlu1 %v5292_v1, %s5225_s26  ;;  %v327_v3 = vld [vmem:[%s5288_s25 + $0x9] sm:$0xff]  ;;  %v5304_v4 = vld [vmem:[%s5288_s25 + $0x21] sm:$0xff]  ;;  %s7636_s23 = scalar_lea.vmem %s7848_s5, %s5149_s17 }
  0x14   : > { %406 = vrot.lane.b32.xlu2 %v5298_v2, %s5225_s26  ;;  %v5307_v5 = vld [vmem:[%s5288_s25 + $0x39] sm:$0xff]  ;;  %v5315_v6 = vld [vmem:[%s5288_s25 + $0x49] sm:$0xff]  ;;  %v5318_v7 = vld [vmem:[%s5288_s25 + $0x51] sm:$0xff] }
  0x15   : > { %v5321_v8 = vld [vmem:[%s5288_s25 + $0x61] sm:$0xff]  ;;  %v5330_v9 = vld [vmem:[%s5288_s25 + $0x69] sm:$0xff]  ;;  %v5333_v10 = vld [vmem:[%s5288_s25 + $0x79] sm:$0xff] }
  0x16   : > { %v5336_v11 = vld [vmem:[%s5288_s25 + $0x81] sm:$0xff]  ;;  %v5345_v12 = vld [vmem:[%s5288_s25 + $0x91] sm:$0xff]  ;;  %v5348_v13 = vld [vmem:[%s5288_s25 + $0x99] sm:$0xff] }
  0x17   : > { %v5351_v14 = vld [vmem:[%s5288_s25 + $0xa9] sm:$0xff]  ;;  %v5360_v15 = vld [vmem:[%s5288_s25 + $0xb1] sm:$0xff]  ;;  %v5363_v16 = vld [vmem:[%s5288_s25 + $0xc1] sm:$0xff] }
  0x18   : > { %v5366_v17 = vld [vmem:[%s5288_s25 + $0xc9] sm:$0xff]  ;;  %v5375_v18 = vld [vmem:[%s5288_s25 + $0xd9] sm:$0xff]  ;;  %v5378_v19 = vld [vmem:[%s5288_s25 + $0xe1] sm:$0xff] }
  0x19   : > { %v5381_v20 = vld [vmem:[%s5288_s25 + $0xf1] sm:$0xff]  ;;  %v5390_v21 = vld [vmem:[%s5288_s25 + $0xf9] sm:$0xff]  ;;  %v5393_v22 = vld [vmem:[%s5288_s25 + $0x109] sm:$0xff] }
  0x1a   : > { %v5396_v23 = vld [vmem:[%s5288_s25 + $0x111] sm:$0xff]  ;;  %v5405_v24 = vld [vmem:[%s5288_s25 + $0x121] sm:$0xff]  ;;  %v5408_v25 = vld [vmem:[%s5288_s25 + $0x129] sm:$0xff] }
  0x1b   : > { %400 = vrot.lane.b32.xlu0 %v327_v3, %s5225_s26  ;;  %404 = vrot.lane.b32.xlu1 %v5304_v4, %s5225_s26  ;;  %7912 = vst [vmem:[#allocation5_spill] sm:$0xff] %v5405_v24  ;;  %v5411_v26 = vld [vmem:[%s5288_s25 + $0x139] sm:$0xff]  ;;  %v5420_v27 = vld [vmem:[%s5288_s25 + $0x141] sm:$0xff] }
  0x1c   : > { %408 = vrot.lane.b32.xlu2 %v5307_v5, %s5225_s26  ;;  %7913 = vst [vmem:[#allocation6_spill] sm:$0xff] %v5408_v25  ;;  %v5423_v28 = vld [vmem:[%s5288_s25 + $0x151] sm:$0xff]  ;;  %v5426_v29 = vld [vmem:[%s5288_s25 + $0x159] sm:$0xff]  ;;  %v5435_v30 = vld [vmem:[%s5288_s25 + $0x169] sm:$0xff] }
  0x1d   : > { %7914 = vst [vmem:[#allocation7_spill] sm:$0xff] %v5411_v26  ;;  %v5438_v31 = vld [vmem:[%s5288_s25 + $0x171] sm:$0xff]  ;;  %v5441_v32 = vld [vmem:[%s5288_s25 + $0x181] sm:$0xff]  ;;  %v5457_v35 = vld [vmem:[%s5288_s25 + $0x189] sm:$0xff] }
  0x1e   : > { %7915 = vst [vmem:[#allocation8_spill] sm:$0xff] %v5420_v27  ;;  %v5448_v33 = vld [vmem:[%s5288_s25 + $0x30] sm:$0xff]  ;;  %v253_v34 = vld [vmem:[%s5288_s25] sm:$0xff]  ;;  %v5470_v38 = vld [vmem:[%s5288_s25 + $0x38] sm:$0xff] }
  0x1f   : > { %7916 = vst [vmem:[#allocation9_spill] sm:$0xff] %v5423_v28  ;;  %v5460_v36 = vld [vmem:[%s5288_s25 + $0x199] sm:$0xff]  ;;  %v5463_v37 = vld [vmem:[%s5288_s25 + $0x1a1] sm:$0xff]  ;;  %v544_v43 = vld [vmem:[%s5288_s25 + $0xa] sm:$0xff] }
  0x20   : > { %7917 = vst [vmem:[#allocation10_spill] sm:$0xff] %v5426_v29  ;;  %v5473_v39 = vld [vmem:[%s5288_s25 + $0x18] sm:$0xff]  ;;  %v254_v40 = vld [vmem:[%s5288_s25 + $0x8] sm:$0xff]  ;;  %v5492_v45 = vld [vmem:[%s5288_s25 + $0x60] sm:$0xff] }
  0x21   : > { %7918 = vst [vmem:[#allocation11_spill] sm:$0xff] %v5435_v30  ;;  %v543_v42 = vld [vmem:[%s5288_s25 + $0x2] sm:$0xff]  ;;  %v5487_v44 = vld [vmem:[%s5288_s25 + $0x1a] sm:$0xff]  ;;  %v547_v50 = vld [vmem:[%s5288_s25 + $0x32] sm:$0xff] }
  0x22   : > { %7919 = vst [vmem:[#allocation12_spill] sm:$0xff] %v5438_v31  ;;  %v5495_v46 = vld [vmem:[%s5288_s25 + $0x20] sm:$0xff]  ;;  %v5500_v47 = vld [vmem:[%s5288_s25 + $0x48] sm:$0xff]  ;;  %v5523_v53 = vld [vmem:[%s5288_s25 + $0x50] sm:$0xff] }
  0x23   : > { %410 = vrot.lane.b32.xlu0 %v5315_v6, %s5225_s26  ;;  %412 = vrot.lane.b32.xlu1 %v5318_v7, %s5225_s26  ;;  %7920 = vst [vmem:[#allocation13_spill] sm:$0xff] %v5441_v32  ;;  %v5509_v49 = vld [vmem:[%s5288_s25 + $0x22] sm:$0xff]  ;;  %v5514_v51 = vld [vmem:[%s5288_s25 + $0x3a] sm:$0xff] }
  0x24   : > { %414 = vrot.lane.b32.xlu2 %v5321_v8, %s5225_s26  ;;  %294 = vst.msk [vmem:[#allocation3 + $0x20] sm:$0xff] %vm289_vm0, %v5448_v33  ;;  %v5520_v52 = vld [vmem:[%s5288_s25 + $0x80] sm:$0xff]  ;;  %v5528_v54 = vld [vmem:[%s5288_s25 + $0x68] sm:$0xff]  ;;  %v550_v57 = vld [vmem:[%s5288_s25 + $0x52] sm:$0xff] }
  0x25   : > { %290 = vst.msk [vmem:[#allocation3] sm:$0xff] %vm289_vm0, %v253_v34  ;;  %v5537_v56 = vld [vmem:[%s5288_s25 + $0x4a] sm:$0xff]  ;;  %v5542_v58 = vld [vmem:[%s5288_s25 + $0x62] sm:$0xff]  ;;  %v5551_v60 = vld [vmem:[%s5288_s25 + $0x78] sm:$0xff] }
  0x26   : > { %7921 = vst [vmem:[#allocation14_spill] sm:$0xff] %v5457_v35  ;;  %v5548_v59 = vld [vmem:[%s5288_s25 + $0xa8] sm:$0xff]  ;;  %v5561_v63 = vld [vmem:[%s5288_s25 + $0x90] sm:$0xff]  ;;  %v5568_v34 = vld [vmem:[%s5288_s25 + $0x7a] sm:$0xff] }
  0x27   : > { %7922 = vst [vmem:[#allocation15_spill] sm:$0xff] %v5460_v36  ;;  %v5565_v3 = vld [vmem:[%s5288_s25 + $0x6a] sm:$0xff] }
  0x28   : > { %7923 = vst [vmem:[#allocation16_spill] sm:$0xff] %v5463_v37 }
  0x29   : > { %295 = vst.msk [vmem:[#allocation3 + $0x28] sm:$0xff] %vm289_vm0, %v5470_v38 }
  0x2a   : > { %292 = vst.msk [vmem:[#allocation3 + $0x10] sm:$0xff] %vm289_vm0, %v5473_v39 }
  0x2b   : > { %416 = vrot.lane.b32.xlu0 %v5330_v9, %s5225_s26  ;;  %418 = vrot.lane.b32.xlu1 %v5333_v10, %s5225_s26  ;;  %291 = vst.msk [vmem:[#allocation3 + $0x8] sm:$0xff] %vm289_vm0, %v254_v40  ;;  %v5574_v40 = vld [vmem:[%s5288_s25 + $0x82] sm:$0xff] }
  0x2c   : > { %420 = vrot.lane.b32.xlu2 %v5336_v11, %s5225_s26  ;;  %7924 = vst [vmem:[#allocation17_spill] sm:$0xff] %v5487_v44 }
  0x2d   : > { %298 = vst.msk [vmem:[#allocation3 + $0x40] sm:$0xff] %vm289_vm0, %v5492_v45 }
  0x2e   : > { %293 = vst.msk [vmem:[#allocation3 + $0x18] sm:$0xff] %vm289_vm0, %v5495_v46 }
  0x2f   : > { %296 = vst.msk [vmem:[#allocation3 + $0x30] sm:$0xff] %vm289_vm0, %v5500_v47 }
  0x30   : > { %7925 = vst [vmem:[#allocation18_spill] sm:$0xff] %v5509_v49 }
  0x31   : > { %7926 = vst [vmem:[#allocation19_spill] sm:$0xff] %v5514_v51 }
  0x32   : > { %301 = vst.msk [vmem:[#allocation3 + $0x58] sm:$0xff] %vm289_vm0, %v5520_v52 }
  0x33   : > { %422 = vrot.lane.b32.xlu0 %v5345_v12, %s5225_s26  ;;  %424 = vrot.lane.b32.xlu1 %v5348_v13, %s5225_s26  ;;  %297 = vst.msk [vmem:[#allocation3 + $0x38] sm:$0xff] %vm289_vm0, %v5523_v53 }
  0x34   : > { %426 = vrot.lane.b32.xlu2 %v5351_v14, %s5225_s26  ;;  %299 = vst.msk [vmem:[#allocation3 + $0x48] sm:$0xff] %vm289_vm0, %v5528_v54 }
  0x35   : > { %7927 = vst [vmem:[#allocation20_spill] sm:$0xff] %v5537_v56 }
  0x36   : > { %7928 = vst [vmem:[#allocation21_spill] sm:$0xff] %v5542_v58 }
  0x37   : > { %304 = vst.msk [vmem:[#allocation3 + $0x70] sm:$0xff] %vm289_vm0, %v5548_v59 }
  0x38   : > { %300 = vst.msk [vmem:[#allocation3 + $0x50] sm:$0xff] %vm289_vm0, %v5551_v60 }
  0x39   : > { %7929 = vst [vmem:[#allocation22_spill] sm:$0xff] %v5565_v3 }
  0x3a   : > { %7930 = vst [vmem:[#allocation23_spill] sm:$0xff] %v5568_v34 }
  0x3b   : > { %428 = vrot.lane.b32.xlu0 %v5360_v15, %s5225_s26  ;;  %430 = vrot.lane.b32.xlu1 %v5363_v16, %s5225_s26  ;;  %302 = vst.msk [vmem:[#allocation3 + $0x60] sm:$0xff] %vm289_vm0, %v5561_v63 }
  0x3c   : > { %432 = vrot.lane.b32.xlu2 %v5366_v17, %s5225_s26  ;;  %7931 = vst [vmem:[#allocation24_spill] sm:$0xff] %v5574_v40 }
  0x43   : > { %434 = vrot.lane.b32.xlu0 %v5375_v18, %s5225_s26  ;;  %436 = vrot.lane.b32.xlu1 %v5378_v19, %s5225_s26 }
  0x44   : > { %438 = vrot.lane.b32.xlu2 %v5381_v20, %s5225_s26 }
  0x4b   : > { %440 = vrot.lane.b32.xlu0 %v5390_v21, %s5225_s26  ;;  %442 = vrot.lane.b32.xlu1 %v5393_v22, %s5225_s26 }
  0x4c   : > { %444 = vrot.lane.b32.xlu2 %v5396_v23, %s5225_s26 }
  0x53   : > { %446 = vrot.lane.b32.xlu0 %v5405_v24, %s5225_s26  ;;  %448 = vrot.lane.b32.xlu1 %v5408_v25, %s5225_s26  ;;  %v5821_v25 = vld [vmem:[%s5288_s25 + $0x18a] sm:$0xff] }
  0x54   : > { %450 = vrot.lane.b32.xlu2 %v5411_v26, %s5225_s26 }
  0x5b   : > { %452 = vrot.lane.b32.xlu0 %v5420_v27, %s5225_s26  ;;  %454 = vrot.lane.b32.xlu1 %v5423_v28, %s5225_s26  ;;  %v5796_v28 = vld [vmem:[%s5288_s25 + $0x16a] sm:$0xff]  ;;  %v5799_v27 = vld [vmem:[%s5288_s25 + $0x172] sm:$0xff] }
  0x5c   : > { %456 = vrot.lane.b32.xlu2 %v5426_v29, %s5225_s26  ;;  %7950 = vst [vmem:[#allocation43_spill] sm:$0xff] %v5796_v28 }
  0x5d   : > { %7951 = vst [vmem:[#allocation44_spill] sm:$0xff] %v5799_v27 }
  0x63   : > { %458 = vrot.lane.b32.xlu0 %v5435_v30, %s5225_s26  ;;  %460 = vrot.lane.b32.xlu1 %v5438_v31, %s5225_s26  ;;  %v5763_v31 = vld [vmem:[%s5288_s25 + $0x142] sm:$0xff]  ;;  %v5766_v30 = vld [vmem:[%s5288_s25 + $0x152] sm:$0xff] }
  0x64   : > { %462 = vrot.lane.b32.xlu2 %v5441_v32, %s5225_s26  ;;  %7947 = vst [vmem:[#allocation40_spill] sm:$0xff] %v5763_v31 }
  0x65   : > { %7948 = vst [vmem:[#allocation41_spill] sm:$0xff] %v5766_v30 }
  0x6b   : > { %464 = vrot.lane.b32.xlu0 %v5457_v35, %s5225_s26  ;;  %466 = vrot.lane.b32.xlu1 %v5460_v36, %s5225_s26  ;;  %v5730_v36 = vld [vmem:[%s5288_s25 + $0x122] sm:$0xff]  ;;  %v5733_v35 = vld [vmem:[%s5288_s25 + $0x12a] sm:$0xff] }
  0x6c   : > { %468 = vrot.lane.b32.xlu2 %v5463_v37, %s5225_s26  ;;  %7944 = vst [vmem:[#allocation37_spill] sm:$0xff] %v5730_v36 }
  0x6d   : > { %7945 = vst [vmem:[#allocation38_spill] sm:$0xff] %v5733_v35 }
  0x6e   : > { %v407_v41 = vpop.permute.xlu2 %406 }
  0x6f   : > { %511 = vst.msk [vmem:[#allocation3 + $0x20] sm:$0xff] %vm506_vm1, %v407_v41  ;;  %v5581_v41 = vld [vmem:[%s5288_s25 + $0xc8] sm:$0xff] }
  0x70   : > { %307 = vst.msk [vmem:[#allocation3 + $0x88] sm:$0xff] %vm289_vm0, %v5581_v41 }
  0x73   : > { %615 = vrot.lane.b32.xlu0 %v543_v42, %s5226_s27  ;;  %617 = vrot.lane.b32.xlu1 %v544_v43, %s5226_s27  ;;  %v5584_v42 = vld [vmem:[%s5288_s25 + $0x98] sm:$0xff] }
  0x74   : > { %619 = vrot.lane.b32.xlu2 %v5487_v44, %s5226_s27  ;;  %303 = vst.msk [vmem:[#allocation3 + $0x68] sm:$0xff] %vm289_vm0, %v5584_v42  ;;  %v5700_v44 = vld [vmem:[%s5288_s25 + $0x10a] sm:$0xff] }
  0x75   : > { %7942 = vst [vmem:[#allocation35_spill] sm:$0xff] %v5700_v44 }
  0x76   : > { %v409_v48 = vpop.permute.xlu2 %408 }
  0x77   : > { %512 = vst.msk [vmem:[#allocation3 + $0x28] sm:$0xff] %vm506_vm1, %v409_v48 }
  0x7b   : > { %621 = vrot.lane.b32.xlu0 %v5509_v49, %s5226_s27  ;;  %623 = vrot.lane.b32.xlu1 %v547_v50, %s5226_s27  ;;  %v5594_v50 = vld [vmem:[%s5288_s25 + $0xb0] sm:$0xff]  ;;  %v5697_v49 = vld [vmem:[%s5288_s25 + $0xfa] sm:$0xff] }
  0x7c   : > { %625 = vrot.lane.b32.xlu2 %v5514_v51, %s5226_s27  ;;  %305 = vst.msk [vmem:[#allocation3 + $0x78] sm:$0xff] %vm289_vm0, %v5594_v50 }
  0x7d   : > { %7941 = vst [vmem:[#allocation34_spill] sm:$0xff] %v5697_v49 }
  0x7e   : > { %v415_v55 = vpop.permute.xlu2 %414 }
  0x7f   : > { %515 = vst.msk [vmem:[#allocation3 + $0x40] sm:$0xff] %vm506_vm1, %v415_v55 }
  0x83   : > { %627 = vrot.lane.b32.xlu0 %v5537_v56, %s5226_s27  ;;  %629 = vrot.lane.b32.xlu1 %v550_v57, %s5226_s27  ;;  %v5598_v57 = vld [vmem:[%s5288_s25 + $0x92] sm:$0xff]  ;;  %v5667_v56 = vld [vmem:[%s5288_s25 + $0xe2] sm:$0xff] }
  0x84   : > { %631 = vrot.lane.b32.xlu2 %v5542_v58, %s5226_s27  ;;  %7932 = vst [vmem:[#allocation25_spill] sm:$0xff] %v5598_v57  ;;  %v5664_v58 = vld [vmem:[%s5288_s25 + $0xda] sm:$0xff] }
  0x85   : > { %v399_v61 = vpop.permute.xlu0 %398  ;;  %v403_v62 = vpop.permute.xlu1 %402  ;;  %7938 = vst [vmem:[#allocation31_spill] sm:$0xff] %v5664_v58 }
  0x86   : > { %507 = vst.msk [vmem:[#allocation3] sm:$0xff] %vm506_vm1, %v399_v61  ;;  %v421_v0 = vpop.permute.xlu2 %420  ;;  %v5601_v61 = vld [vmem:[%s5288_s25 + $0x9a] sm:$0xff] }
  0x87   : > { %509 = vst.msk [vmem:[#allocation3 + $0x10] sm:$0xff] %vm506_vm1, %v403_v62  ;;  %v5607_v62 = vld [vmem:[%s5288_s25 + $0xaa] sm:$0xff] }
  0x88   : > { %518 = vst.msk [vmem:[#allocation3 + $0x58] sm:$0xff] %vm506_vm1, %v421_v0  ;;  %v5614_v0 = vld [vmem:[%s5288_s25 + $0xf0] sm:$0xff] }
  0x89   : > { %7933 = vst [vmem:[#allocation26_spill] sm:$0xff] %v5601_v61 }
  0x8a   : > { %7934 = vst [vmem:[#allocation27_spill] sm:$0xff] %v5607_v62 }
  0x8b   : > { %633 = vrot.lane.b32.xlu0 %v5565_v3, %s5226_s27  ;;  %635 = vrot.lane.b32.xlu1 %v5568_v34, %s5226_s27  ;;  %310 = vst.msk [vmem:[#allocation3 + $0xa0] sm:$0xff] %vm289_vm0, %v5614_v0  ;;  %v5634_v34 = vld [vmem:[%s5288_s25 + $0xc2] sm:$0xff] }
  0x8c   : > { %637 = vrot.lane.b32.xlu2 %v5574_v40, %s5226_s27  ;;  %v5631_v40 = vld [vmem:[%s5288_s25 + $0xb2] sm:$0xff]  ;;  %7936 = vst [vmem:[#allocation29_spill] sm:$0xff] %v5634_v34 }
  0x8d   : > { %v401_v43 = vpop.permute.xlu0 %400  ;;  %v405_v48 = vpop.permute.xlu1 %404  ;;  %7935 = vst [vmem:[#allocation28_spill] sm:$0xff] %v5631_v40 }
  0x8e   : > { %508 = vst.msk [vmem:[#allocation3 + $0x8] sm:$0xff] %vm506_vm1, %v401_v43  ;;  %v427_v55 = vpop.permute.xlu2 %426  ;;  %v5617_v43 = vld [vmem:[%s5288_s25 + $0xc0] sm:$0xff] }
  0x8f   : > { %510 = vst.msk [vmem:[#allocation3 + $0x18] sm:$0xff] %vm506_vm1, %v405_v48 }
  0x90   : > { %521 = vst.msk [vmem:[#allocation3 + $0x70] sm:$0xff] %vm506_vm1, %v427_v55 }
  0x91   : > { %306 = vst.msk [vmem:[#allocation3 + $0x80] sm:$0xff] %vm289_vm0, %v5617_v43 }
  0x92   : > { %7939 = vst [vmem:[#allocation32_spill] sm:$0xff] %v5667_v56 }
  0x93   : > { %639 = vrot.lane.b32.xlu0 %v5598_v57, %s5226_s27  ;;  %641 = vrot.lane.b32.xlu1 %v5601_v61, %s5226_s27  ;;  %v5627_v61 = vld [vmem:[%s5288_s25 + $0xd8] sm:$0xff] }
  0x94   : > { %643 = vrot.lane.b32.xlu2 %v5607_v62, %s5226_s27  ;;  %308 = vst.msk [vmem:[#allocation3 + $0x90] sm:$0xff] %vm289_vm0, %v5627_v61  ;;  %v5640_v62 = vld [vmem:[%s5288_s25 + $0xca] sm:$0xff] }
  0x95   : > { %v411_v48 = vpop.permute.xlu0 %410  ;;  %v413_v55 = vpop.permute.xlu1 %412  ;;  %7937 = vst [vmem:[#allocation30_spill] sm:$0xff] %v5640_v62 }
  0x96   : > { %513 = vst.msk [vmem:[#allocation3 + $0x30] sm:$0xff] %vm506_vm1, %v411_v48  ;;  %v433_v57 = vpop.permute.xlu2 %432  ;;  %v5647_v48 = vld [vmem:[%s5288_s25 + $0x110] sm:$0xff] }
  0x97   : > { %514 = vst.msk [vmem:[#allocation3 + $0x38] sm:$0xff] %vm506_vm1, %v413_v55  ;;  %v5650_v55 = vld [vmem:[%s5288_s25 + $0xe0] sm:$0xff] }
  0x98   : > { %524 = vst.msk [vmem:[#allocation3 + $0x88] sm:$0xff] %vm506_vm1, %v433_v57 }
  0x99   : > { %313 = vst.msk [vmem:[#allocation3 + $0xb8] sm:$0xff] %vm289_vm0, %v5647_v48 }
  0x9a   : > { %309 = vst.msk [vmem:[#allocation3 + $0x98] sm:$0xff] %vm289_vm0, %v5650_v55 }
  0x9b   : > { %645 = vrot.lane.b32.xlu0 %v5631_v40, %s5226_s27  ;;  %647 = vrot.lane.b32.xlu1 %v5634_v34, %s5226_s27  ;;  %v5660_v34 = vld [vmem:[%s5288_s25 + $0xf8] sm:$0xff] }
  0x9c   : > { %649 = vrot.lane.b32.xlu2 %v5640_v62, %s5226_s27  ;;  %311 = vst.msk [vmem:[#allocation3 + $0xa8] sm:$0xff] %vm289_vm0, %v5660_v34  ;;  %v5673_v62 = vld [vmem:[%s5288_s25 + $0xf2] sm:$0xff] }
  0x9d   : > { %v417_v57 = vpop.permute.xlu0 %416  ;;  %v419_v3 = vpop.permute.xlu1 %418  ;;  %7940 = vst [vmem:[#allocation33_spill] sm:$0xff] %v5673_v62 }
  0x9e   : > { %516 = vst.msk [vmem:[#allocation3 + $0x48] sm:$0xff] %vm506_vm1, %v417_v57  ;;  %v439_v40 = vpop.permute.xlu2 %438  ;;  %v5683_v57 = vld [vmem:[%s5288_s25 + $0x108] sm:$0xff] }
  0x9f   : > { %517 = vst.msk [vmem:[#allocation3 + $0x50] sm:$0xff] %vm506_vm1, %v419_v3  ;;  %v5680_v3 = vld [vmem:[%s5288_s25 + $0x138] sm:$0xff] }
  0xa0   : > { %527 = vst.msk [vmem:[#allocation3 + $0xa0] sm:$0xff] %vm506_vm1, %v439_v40 }
  0xa1   : > { %316 = vst.msk [vmem:[#allocation3 + $0xd0] sm:$0xff] %vm289_vm0, %v5680_v3 }
  0xa2   : > { %312 = vst.msk [vmem:[#allocation3 + $0xb0] sm:$0xff] %vm289_vm0, %v5683_v57 }
  0xa3   : > { %651 = vrot.lane.b32.xlu0 %v5664_v58, %s5226_s27  ;;  %653 = vrot.lane.b32.xlu1 %v5667_v56, %s5226_s27  ;;  %v5693_v56 = vld [vmem:[%s5288_s25 + $0x120] sm:$0xff] }
  0xa4   : > { %655 = vrot.lane.b32.xlu2 %v5673_v62, %s5226_s27  ;;  %314 = vst.msk [vmem:[#allocation3 + $0xc0] sm:$0xff] %vm289_vm0, %v5693_v56  ;;  %v5706_v62 = vld [vmem:[%s5288_s25 + $0x112] sm:$0xff] }
  0xa5   : > { %v423_v40 = vpop.permute.xlu0 %422  ;;  %v425_v51 = vpop.permute.xlu1 %424  ;;  %7943 = vst [vmem:[#allocation36_spill] sm:$0xff] %v5706_v62 }
  0xa6   : > { %519 = vst.msk [vmem:[#allocation3 + $0x60] sm:$0xff] %vm506_vm1, %v423_v40  ;;  %v445_v58 = vpop.permute.xlu2 %444  ;;  %v5716_v40 = vld [vmem:[%s5288_s25 + $0x128] sm:$0xff] }
  0xa7   : > { %520 = vst.msk [vmem:[#allocation3 + $0x68] sm:$0xff] %vm506_vm1, %v425_v51  ;;  %v5713_v51 = vld [vmem:[%s5288_s25 + $0x158] sm:$0xff] }
  0xa8   : > { %530 = vst.msk [vmem:[#allocation3 + $0xb8] sm:$0xff] %vm506_vm1, %v445_v58 }
  0xa9   : > { %319 = vst.msk [vmem:[#allocation3 + $0xe8] sm:$0xff] %vm289_vm0, %v5713_v51 }
  0xaa   : > { %315 = vst.msk [vmem:[#allocation3 + $0xc8] sm:$0xff] %vm289_vm0, %v5716_v40 }
  0xab   : > { %657 = vrot.lane.b32.xlu0 %v5697_v49, %s5226_s27  ;;  %659 = vrot.lane.b32.xlu1 %v5700_v44, %s5226_s27  ;;  %v5726_v44 = vld [vmem:[%s5288_s25 + $0x140] sm:$0xff] }
  0xac   : > { %661 = vrot.lane.b32.xlu2 %v5706_v62, %s5226_s27  ;;  %317 = vst.msk [vmem:[#allocation3 + $0xd8] sm:$0xff] %vm289_vm0, %v5726_v44  ;;  %v5739_v62 = vld [vmem:[%s5288_s25 + $0x13a] sm:$0xff] }
  0xad   : > { %v429_v58 = vpop.permute.xlu0 %428  ;;  %v431_v37 = vpop.permute.xlu1 %430  ;;  %7946 = vst [vmem:[#allocation39_spill] sm:$0xff] %v5739_v62 }
  0xae   : > { %522 = vst.msk [vmem:[#allocation3 + $0x78] sm:$0xff] %vm506_vm1, %v429_v58  ;;  %v451_v49 = vpop.permute.xlu2 %450  ;;  %v5749_v58 = vld [vmem:[%s5288_s25 + $0x150] sm:$0xff] }
  0xaf   : > { %523 = vst.msk [vmem:[#allocation3 + $0x80] sm:$0xff] %vm506_vm1, %v431_v37  ;;  %v5746_v37 = vld [vmem:[%s5288_s25 + $0x180] sm:$0xff] }
  0xb0   : > { %533 = vst.msk [vmem:[#allocation3 + $0xd0] sm:$0xff] %vm506_vm1, %v451_v49 }
  0xb1   : > { %322 = vst.msk [vmem:[#allocation3 + $0x100] sm:$0xff] %vm289_vm0, %v5746_v37 }
  0xb2   : > { %318 = vst.msk [vmem:[#allocation3 + $0xe0] sm:$0xff] %vm289_vm0, %v5749_v58 }
  0xb3   : > { %663 = vrot.lane.b32.xlu0 %v5730_v36, %s5226_s27  ;;  %665 = vrot.lane.b32.xlu1 %v5733_v35, %s5226_s27  ;;  %v5759_v35 = vld [vmem:[%s5288_s25 + $0x168] sm:$0xff] }
  0xb4   : > { %667 = vrot.lane.b32.xlu2 %v5739_v62, %s5226_s27  ;;  %320 = vst.msk [vmem:[#allocation3 + $0xf0] sm:$0xff] %vm289_vm0, %v5759_v35  ;;  %v5772_v62 = vld [vmem:[%s5288_s25 + $0x15a] sm:$0xff] }
  0xb5   : > { %v435_v49 = vpop.permute.xlu0 %434  ;;  %v437_v32 = vpop.permute.xlu1 %436  ;;  %7949 = vst [vmem:[#allocation42_spill] sm:$0xff] %v5772_v62 }
  0xb6   : > { %525 = vst.msk [vmem:[#allocation3 + $0x90] sm:$0xff] %vm506_vm1, %v435_v49  ;;  %v457_v36 = vpop.permute.xlu2 %456  ;;  %v5782_v49 = vld [vmem:[%s5288_s25 + $0x170] sm:$0xff] }
  0xb7   : > { %526 = vst.msk [vmem:[#allocation3 + $0x98] sm:$0xff] %vm506_vm1, %v437_v32  ;;  %v5779_v32 = vld [vmem:[%s5288_s25 + $0x1a0] sm:$0xff] }
  0xb8   : > { %536 = vst.msk [vmem:[#allocation3 + $0xe8] sm:$0xff] %vm506_vm1, %v457_v36 }
  0xb9   : > { %325 = vst.msk [vmem:[#allocation3 + $0x118] sm:$0xff] %vm289_vm0, %v5779_v32 }
  0xba   : > { %321 = vst.msk [vmem:[#allocation3 + $0xf8] sm:$0xff] %vm289_vm0, %v5782_v49 }
  0xbb   : > { %669 = vrot.lane.b32.xlu0 %v5763_v31, %s5226_s27  ;;  %671 = vrot.lane.b32.xlu1 %v5766_v30, %s5226_s27  ;;  %v5792_v30 = vld [vmem:[%s5288_s25 + $0x188] sm:$0xff] }
  0xbc   : > { %673 = vrot.lane.b32.xlu2 %v5772_v62, %s5226_s27  ;;  %323 = vst.msk [vmem:[#allocation3 + $0x108] sm:$0xff] %vm289_vm0, %v5792_v30  ;;  %v5805_v62 = vld [vmem:[%s5288_s25 + $0x182] sm:$0xff] }
  0xbd   : > { %v441_v36 = vpop.permute.xlu0 %440  ;;  %v443_v29 = vpop.permute.xlu1 %442  ;;  %7952 = vst [vmem:[#allocation45_spill] sm:$0xff] %v5805_v62 }
  0xbe   : > { %528 = vst.msk [vmem:[#allocation3 + $0xa8] sm:$0xff] %vm506_vm1, %v441_v36  ;;  %v463_v31 = vpop.permute.xlu2 %462 }
  0xbf   : > { %529 = vst.msk [vmem:[#allocation3 + $0xb0] sm:$0xff] %vm506_vm1, %v443_v29  ;;  %v5812_v29 = vld [vmem:[%s5288_s25 + $0x198] sm:$0xff] }
  0xc0   : > { %539 = vst.msk [vmem:[#allocation3 + $0x100] sm:$0xff] %vm506_vm1, %v463_v31 }
  0xc1   : > { %324 = vst.msk [vmem:[#allocation3 + $0x110] sm:$0xff] %vm289_vm0, %v5812_v29 }
  0xc3   : > { %675 = vrot.lane.b32.xlu0 %v5796_v28, %s5226_s27  ;;  %677 = vrot.lane.b32.xlu1 %v5799_v27, %s5226_s27  ;;  %v5824_v28 = vld [vmem:[%s5288_s25 + $0x19a] sm:$0xff]  ;;  %v5828_v27 = vld [vmem:[%s5288_s25 + $0x1a2] sm:$0xff] }
  0xc4   : > { %679 = vrot.lane.b32.xlu2 %v5805_v62, %s5226_s27 }
  0xc5   : > { %v447_v36 = vpop.permute.xlu0 %446  ;;  %v449_v26 = vpop.permute.xlu1 %448 }
  0xc6   : > { %531 = vst.msk [vmem:[#allocation3 + $0xc0] sm:$0xff] %vm506_vm1, %v447_v36  ;;  %v469_v31 = vpop.permute.xlu2 %468 }
  0xc7   : > { %532 = vst.msk [vmem:[#allocation3 + $0xc8] sm:$0xff] %vm506_vm1, %v449_v26 }
  0xc8   : > { %542 = vst.msk [vmem:[#allocation3 + $0x118] sm:$0xff] %vm506_vm1, %v469_v31 }
  0xcb   : > { %681 = vrot.lane.b32.xlu0 %v5821_v25, %s5226_s27  ;;  %683 = vrot.lane.b32.xlu1 %v5824_v28, %s5226_s27 }
  0xcc   : > { %685 = vrot.lane.b32.xlu2 %v5828_v27, %s5226_s27 }
  0xcd   : > { %v453_v62 = vpop.permute.xlu0 %452  ;;  %v455_v24 = vpop.permute.xlu1 %454 }
  0xce   : > { %534 = vst.msk [vmem:[#allocation3 + $0xd8] sm:$0xff] %vm506_vm1, %v453_v62  ;;  %v620_v26 = vpop.permute.xlu2 %619 }
  0xcf   : > { %535 = vst.msk [vmem:[#allocation3 + $0xe0] sm:$0xff] %vm506_vm1, %v455_v24 }
  0xd0   : > { %726 = vst.msk [vmem:[#allocation3 + $0x10] sm:$0xff] %vm723_vm2, %v620_v26  ;;  %v5942_v26 = vld [vmem:[%s5288_s25 + $0x1b8] sm:$0xff] }
  0xd3   : > { %835 = vrot.lane.b32.xlu0 %v5473_v39, %s5227_s28  ;;  %837 = vrot.lane.b32.xlu1 %v5495_v46, %s5227_s28 }
  0xd4   : > { %839 = vrot.lane.b32.xlu2 %v5448_v33, %s5227_s28 }
  0xd5   : > { %v459_v36 = vpop.permute.xlu0 %458  ;;  %v461_v31 = vpop.permute.xlu1 %460 }
  0xd6   : > { %537 = vst.msk [vmem:[#allocation3 + $0xf0] sm:$0xff] %vm506_vm1, %v459_v36  ;;  %v626_v24 = vpop.permute.xlu2 %625 }
  0xd7   : > { %538 = vst.msk [vmem:[#allocation3 + $0xf8] sm:$0xff] %vm506_vm1, %v461_v31 }
  0xd8   : > { %729 = vst.msk [vmem:[#allocation3 + $0x28] sm:$0xff] %vm723_vm2, %v626_v24 }
  0xdb   : > { %841 = vrot.lane.b32.xlu0 %v5470_v38, %s5227_s28  ;;  %843 = vrot.lane.b32.xlu1 %v5500_v47, %s5227_s28 }
  0xdc   : > { %845 = vrot.lane.b32.xlu2 %v5523_v53, %s5227_s28 }
  0xdd   : > { %v465_v39 = vpop.permute.xlu0 %464  ;;  %v467_v46 = vpop.permute.xlu1 %466 }
  0xde   : > { %540 = vst.msk [vmem:[#allocation3 + $0x108] sm:$0xff] %vm506_vm1, %v465_v39  ;;  %v632_v33 = vpop.permute.xlu2 %631  ;;  %v7954_v39 = vld [vmem:[#allocation6_spill] sm:$0xff] }
  0xdf   : > { %541 = vst.msk [vmem:[#allocation3 + $0x110] sm:$0xff] %vm506_vm1, %v467_v46  ;;  %v7955_v46 = vld [vmem:[#allocation7_spill] sm:$0xff] }
  0xe0   : > { %732 = vst.msk [vmem:[#allocation3 + $0x40] sm:$0xff] %vm723_vm2, %v632_v33 }
  0xe3   : > { %847 = vrot.lane.b32.xlu0 %v5492_v45, %s5227_s28  ;;  %849 = vrot.lane.b32.xlu1 %v5528_v54, %s5227_s28 }
  0xe4   : > { %851 = vrot.lane.b32.xlu2 %v5551_v60, %s5227_s28 }
  0xe5   : > { %v616_v38 = vpop.permute.xlu0 %615  ;;  %v618_v47 = vpop.permute.xlu1 %617 }
  0xe6   : > { %724 = vst.msk [vmem:[#allocation3] sm:$0xff] %vm723_vm2, %v616_v38  ;;  %v638_v53 = vpop.permute.xlu2 %637 }
  0xe7   : > { %725 = vst.msk [vmem:[#allocation3 + $0x8] sm:$0xff] %vm723_vm2, %v618_v47  ;;  %v7957_v47 = vld [vmem:[#allocation9_spill] sm:$0xff] }
  0xe8   : > { %735 = vst.msk [vmem:[#allocation3 + $0x58] sm:$0xff] %vm723_vm2, %v638_v53 }
  0xeb   : > { %853 = vrot.lane.b32.xlu0 %v5520_v52, %s5227_s28  ;;  %855 = vrot.lane.b32.xlu1 %v5561_v63, %s5227_s28 }
  0xec   : > { %857 = vrot.lane.b32.xlu2 %v5584_v42, %s5227_s28 }
  0xed   : > { %v622_v45 = vpop.permute.xlu0 %621  ;;  %v624_v54 = vpop.permute.xlu1 %623 }
  0xee   : > { %727 = vst.msk [vmem:[#allocation3 + $0x18] sm:$0xff] %vm723_vm2, %v622_v45  ;;  %v644_v60 = vpop.permute.xlu2 %643  ;;  %v7958_v45 = vld [vmem:[#allocation10_spill] sm:$0xff] }
  0xef   : > { %728 = vst.msk [vmem:[#allocation3 + $0x20] sm:$0xff] %vm723_vm2, %v624_v54  ;;  %v7959_v54 = vld [vmem:[#allocation11_spill] sm:$0xff] }
  0xf0   : > { %738 = vst.msk [vmem:[#allocation3 + $0x70] sm:$0xff] %vm723_vm2, %v644_v60 }
  0xf3   : > { %859 = vrot.lane.b32.xlu0 %v5548_v59, %s5227_s28  ;;  %861 = vrot.lane.b32.xlu1 %v5594_v50, %s5227_s28 }
  0xf4   : > { %863 = vrot.lane.b32.xlu2 %v5617_v43, %s5227_s28 }
  0xf5   : > { %v628_v52 = vpop.permute.xlu0 %627  ;;  %v630_v63 = vpop.permute.xlu1 %629 }
  0xf6   : > { %730 = vst.msk [vmem:[#allocation3 + $0x30] sm:$0xff] %vm723_vm2, %v628_v52  ;;  %v650_v42 = vpop.permute.xlu2 %649 }
  0xf7   : > { %731 = vst.msk [vmem:[#allocation3 + $0x38] sm:$0xff] %vm723_vm2, %v630_v63  ;;  %v7960_v63 = vld [vmem:[#allocation12_spill] sm:$0xff] }
  0xf8   : > { %741 = vst.msk [vmem:[#allocation3 + $0x88] sm:$0xff] %vm723_vm2, %v650_v42 }
  0xfb   : > { %865 = vrot.lane.b32.xlu0 %v5581_v41, %s5227_s28  ;;  %867 = vrot.lane.b32.xlu1 %v5627_v61, %s5227_s28 }
  0xfc   : > { %869 = vrot.lane.b32.xlu2 %v5650_v55, %s5227_s28 }
  0xfd   : > { %v634_v59 = vpop.permute.xlu0 %633  ;;  %v636_v50 = vpop.permute.xlu1 %635 }
  0xfe   : > { %733 = vst.msk [vmem:[#allocation3 + $0x48] sm:$0xff] %vm723_vm2, %v634_v59  ;;  %v656_v62 = vpop.permute.xlu2 %655  ;;  %v7961_v59 = vld [vmem:[#allocation13_spill] sm:$0xff] }
  0xff   : > { %734 = vst.msk [vmem:[#allocation3 + $0x50] sm:$0xff] %vm723_vm2, %v636_v50  ;;  %v7962_v50 = vld [vmem:[#allocation14_spill] sm:$0xff] }
 0x100   : > { %744 = vst.msk [vmem:[#allocation3 + $0xa0] sm:$0xff] %vm723_vm2, %v656_v62 }
 0x103   : > { %871 = vrot.lane.b32.xlu0 %v5614_v0, %s5227_s28  ;;  %873 = vrot.lane.b32.xlu1 %v5660_v34, %s5227_s28 }
 0x104   : > { %875 = vrot.lane.b32.xlu2 %v5683_v57, %s5227_s28 }
 0x105   : > { %v640_v41 = vpop.permute.xlu0 %639  ;;  %v642_v61 = vpop.permute.xlu1 %641 }
 0x106   : > { %736 = vst.msk [vmem:[#allocation3 + $0x60] sm:$0xff] %vm723_vm2, %v640_v41  ;;  %v662_v43 = vpop.permute.xlu2 %661 }
 0x107   : > { %737 = vst.msk [vmem:[#allocation3 + $0x68] sm:$0xff] %vm723_vm2, %v642_v61  ;;  %v7963_v61 = vld [vmem:[#allocation15_spill] sm:$0xff] }
 0x108   : > { %747 = vst.msk [vmem:[#allocation3 + $0xb8] sm:$0xff] %vm723_vm2, %v662_v43 }
 0x10b   : > { %877 = vrot.lane.b32.xlu0 %v5647_v48, %s5227_s28  ;;  %879 = vrot.lane.b32.xlu1 %v5693_v56, %s5227_s28 }
 0x10c   : > { %881 = vrot.lane.b32.xlu2 %v5716_v40, %s5227_s28 }
 0x10d   : > { %v646_v0 = vpop.permute.xlu0 %645  ;;  %v648_v34 = vpop.permute.xlu1 %647 }
 0x10e   : > { %739 = vst.msk [vmem:[#allocation3 + $0x78] sm:$0xff] %vm723_vm2, %v646_v0  ;;  %v668_v55 = vpop.permute.xlu2 %667  ;;  %v6052_v0 = vld [vmem:[%s5288_s25 + $0x1b1] sm:$0xff] }
 0x10f   : > { %740 = vst.msk [vmem:[#allocation3 + $0x80] sm:$0xff] %vm723_vm2, %v648_v34  ;;  %v6056_v34 = vld [vmem:[%s5288_s25 + $0x1b9] sm:$0xff] }
 0x110   : > { %750 = vst.msk [vmem:[#allocation3 + $0xd0] sm:$0xff] %vm723_vm2, %v668_v55  ;;  %v7964_v55 = vld [vmem:[#allocation16_spill] sm:$0xff] }
 0x113   : > { %883 = vrot.lane.b32.xlu0 %v5680_v3, %s5227_s28  ;;  %885 = vrot.lane.b32.xlu1 %v5726_v44, %s5227_s28 }
 0x114   : > { %887 = vrot.lane.b32.xlu2 %v5749_v58, %s5227_s28 }
 0x115   : > { %v652_v48 = vpop.permute.xlu0 %651  ;;  %v654_v56 = vpop.permute.xlu1 %653 }
 0x116   : > { %742 = vst.msk [vmem:[#allocation3 + $0x90] sm:$0xff] %vm723_vm2, %v652_v48  ;;  %v674_v57 = vpop.permute.xlu2 %673 }
 0x117   : > { %743 = vst.msk [vmem:[#allocation3 + $0x98] sm:$0xff] %vm723_vm2, %v654_v56 }
 0x118   : > { %753 = vst.msk [vmem:[#allocation3 + $0xe8] sm:$0xff] %vm723_vm2, %v674_v57 }
 0x11b   : > { %889 = vrot.lane.b32.xlu0 %v5713_v51, %s5227_s28  ;;  %891 = vrot.lane.b32.xlu1 %v5759_v35, %s5227_s28 }
 0x11c   : > { %893 = vrot.lane.b32.xlu2 %v5782_v49, %s5227_s28  ;;  %v5938_v49 = vld [vmem:[%s5288_s25 + $0x1b0] sm:$0xff] }
 0x11d   : > { %v658_v44 = vpop.permute.xlu0 %657  ;;  %v660_v3 = vpop.permute.xlu1 %659 }
 0x11e   : > { %745 = vst.msk [vmem:[#allocation3 + $0xa8] sm:$0xff] %vm723_vm2, %v658_v44  ;;  %v680_v40 = vpop.permute.xlu2 %679  ;;  %v6068_v44 = vld [vmem:[%s5288_s25 + $0x32] sm:$0xff] }
 0x11f   : > { %746 = vst.msk [vmem:[#allocation3 + $0xb0] sm:$0xff] %vm723_vm2, %v660_v3  ;;  %v7965_v3 = vld [vmem:[#allocation17_spill] sm:$0xff] }
 0x120   : > { %756 = vst.msk [vmem:[#allocation3 + $0x100] sm:$0xff] %vm723_vm2, %v680_v40  ;;  %v7966_v40 = vld [vmem:[#allocation18_spill] sm:$0xff] }
 0x123   : > { %895 = vrot.lane.b32.xlu0 %v5746_v37, %s5227_s28  ;;  %897 = vrot.lane.b32.xlu1 %v5792_v30, %s5227_s28 }
 0x124   : > { %899 = vrot.lane.b32.xlu2 %v5812_v29, %s5227_s28 }
 0x125   : > { %v664_v35 = vpop.permute.xlu0 %663  ;;  %v666_v51 = vpop.permute.xlu1 %665 }
 0x126   : > { %748 = vst.msk [vmem:[#allocation3 + $0xc0] sm:$0xff] %vm723_vm2, %v664_v35  ;;  %v686_v58 = vpop.permute.xlu2 %685 }
 0x127   : > { %749 = vst.msk [vmem:[#allocation3 + $0xc8] sm:$0xff] %vm723_vm2, %v666_v51 }
 0x128   : > { %759 = vst.msk [vmem:[#allocation3 + $0x118] sm:$0xff] %vm723_vm2, %v686_v58 }
 0x12b   : > { %901 = vrot.lane.b32.xlu0 %v5779_v32, %s5227_s28  ;;  %903 = vrot.lane.b32.xlu1 %v5938_v49, %s5227_s28 }
 0x12c   : > { %905 = vrot.lane.b32.xlu2 %v5942_v26, %s5227_s28 }
 0x12d   : > { %v670_v30 = vpop.permute.xlu0 %669  ;;  %v672_v37 = vpop.permute.xlu1 %671 }
 0x12e   : > { %751 = vst.msk [vmem:[#allocation3 + $0xd8] sm:$0xff] %vm723_vm2, %v670_v30  ;;  %v840_v29 = vpop.permute.xlu2 %839  ;;  %v6080_v30 = vld [vmem:[%s5288_s25 + $0x52] sm:$0xff] }
 0x12f   : > { %752 = vst.msk [vmem:[#allocation3 + $0xe0] sm:$0xff] %vm723_vm2, %v672_v37  ;;  %v7967_v37 = vld [vmem:[#allocation19_spill] sm:$0xff] }
 0x130   : > { %946 = vst.msk [vmem:[#allocation3 + $0x10] sm:$0xff] %vm943_vm3, %v840_v29  ;;  %v7968_v29 = vld [vmem:[#allocation20_spill] sm:$0xff] }
 0x133   : > { %1052 = vrot.lane.b32.xlu0 %v5292_v1, %s5228_s29  ;;  %1054 = vrot.lane.b32.xlu1 %v5304_v4, %s5228_s29 }
 0x134   : > { %1056 = vrot.lane.b32.xlu2 %v5298_v2, %s5228_s29 }
 0x135   : > { %v676_v32 = vpop.permute.xlu0 %675  ;;  %v678_v36 = vpop.permute.xlu1 %677 }
 0x136   : > { %754 = vst.msk [vmem:[#allocation3 + $0xf0] sm:$0xff] %vm723_vm2, %v676_v32  ;;  %v846_v31 = vpop.permute.xlu2 %845 }
 0x137   : > { %755 = vst.msk [vmem:[#allocation3 + $0xf8] sm:$0xff] %vm723_vm2, %v678_v36 }
 0x138   : > { %949 = vst.msk [vmem:[#allocation3 + $0x28] sm:$0xff] %vm943_vm3, %v846_v31 }
 0x13b   : > { %1058 = vrot.lane.b32.xlu0 %v5307_v5, %s5228_s29  ;;  %1060 = vrot.lane.b32.xlu1 %v5315_v6, %s5228_s29 }
 0x13c   : > { %1062 = vrot.lane.b32.xlu2 %v5318_v7, %s5228_s29 }
 0x13d   : > { %v682_v1 = vpop.permute.xlu0 %681  ;;  %v684_v4 = vpop.permute.xlu1 %683 }
 0x13e   : > { %757 = vst.msk [vmem:[#allocation3 + $0x108] sm:$0xff] %vm723_vm2, %v682_v1  ;;  %v852_v2 = vpop.permute.xlu2 %851  ;;  %v7969_v1 = vld [vmem:[#allocation21_spill] sm:$0xff] }
 0x13f   : > { %758 = vst.msk [vmem:[#allocation3 + $0x110] sm:$0xff] %vm723_vm2, %v684_v4  ;;  %v7970_v4 = vld [vmem:[#allocation22_spill] sm:$0xff] }
 0x140   : > { %952 = vst.msk [vmem:[#allocation3 + $0x40] sm:$0xff] %vm943_vm3, %v852_v2 }
 0x143   : > { %1064 = vrot.lane.b32.xlu0 %v5321_v8, %s5228_s29  ;;  %1066 = vrot.lane.b32.xlu1 %v5330_v9, %s5228_s29 }
 0x144   : > { %1068 = vrot.lane.b32.xlu2 %v5333_v10, %s5228_s29 }
 0x145   : > { %v836_v5 = vpop.permute.xlu0 %835  ;;  %v838_v6 = vpop.permute.xlu1 %837 }
 0x146   : > { %944 = vst.msk [vmem:[#allocation3] sm:$0xff] %vm943_vm3, %v836_v5  ;;  %v858_v7 = vpop.permute.xlu2 %857 }
 0x147   : > { %945 = vst.msk [vmem:[#allocation3 + $0x8] sm:$0xff] %vm943_vm3, %v838_v6  ;;  %v7971_v6 = vld [vmem:[#allocation23_spill] sm:$0xff] }
 0x148   : > { %955 = vst.msk [vmem:[#allocation3 + $0x58] sm:$0xff] %vm943_vm3, %v858_v7 }
 0x14b   : > { %1070 = vrot.lane.b32.xlu0 %v5336_v11, %s5228_s29  ;;  %1072 = vrot.lane.b32.xlu1 %v5345_v12, %s5228_s29 }
 0x14c   : > { %1074 = vrot.lane.b32.xlu2 %v5348_v13, %s5228_s29 }
 0x14d   : > { %v842_v8 = vpop.permute.xlu0 %841  ;;  %v844_v9 = vpop.permute.xlu1 %843 }
 0x14e   : > { %947 = vst.msk [vmem:[#allocation3 + $0x18] sm:$0xff] %vm943_vm3, %v842_v8  ;;  %v864_v10 = vpop.permute.xlu2 %863  ;;  %v7972_v8 = vld [vmem:[#allocation24_spill] sm:$0xff] }
 0x14f   : > { %948 = vst.msk [vmem:[#allocation3 + $0x20] sm:$0xff] %vm943_vm3, %v844_v9  ;;  %v7973_v9 = vld [vmem:[#allocation25_spill] sm:$0xff] }
 0x150   : > { %958 = vst.msk [vmem:[#allocation3 + $0x70] sm:$0xff] %vm943_vm3, %v864_v10 }
 0x153   : > { %1076 = vrot.lane.b32.xlu0 %v5351_v14, %s5228_s29  ;;  %1078 = vrot.lane.b32.xlu1 %v5360_v15, %s5228_s29 }
 0x154   : > { %1080 = vrot.lane.b32.xlu2 %v5363_v16, %s5228_s29 }
 0x155   : > { %v848_v11 = vpop.permute.xlu0 %847  ;;  %v850_v12 = vpop.permute.xlu1 %849 }
 0x156   : > { %950 = vst.msk [vmem:[#allocation3 + $0x30] sm:$0xff] %vm943_vm3, %v848_v11  ;;  %v870_v13 = vpop.permute.xlu2 %869 }
 0x157   : > { %951 = vst.msk [vmem:[#allocation3 + $0x38] sm:$0xff] %vm943_vm3, %v850_v12  ;;  %v7974_v12 = vld [vmem:[#allocation26_spill] sm:$0xff] }
 0x158   : > { %961 = vst.msk [vmem:[#allocation3 + $0x88] sm:$0xff] %vm943_vm3, %v870_v13 }
 0x15b   : > { %1082 = vrot.lane.b32.xlu0 %v5366_v17, %s5228_s29  ;;  %1084 = vrot.lane.b32.xlu1 %v5375_v18, %s5228_s29 }
 0x15c   : > { %1086 = vrot.lane.b32.xlu2 %v5378_v19, %s5228_s29 }
 0x15d   : > { %v854_v14 = vpop.permute.xlu0 %853  ;;  %v856_v15 = vpop.permute.xlu1 %855 }
 0x15e   : > { %953 = vst.msk [vmem:[#allocation3 + $0x48] sm:$0xff] %vm943_vm3, %v854_v14  ;;  %v876_v16 = vpop.permute.xlu2 %875  ;;  %v7975_v14 = vld [vmem:[#allocation27_spill] sm:$0xff] }
 0x15f   : > { %954 = vst.msk [vmem:[#allocation3 + $0x50] sm:$0xff] %vm943_vm3, %v856_v15  ;;  %v7976_v15 = vld [vmem:[#allocation28_spill] sm:$0xff] }
 0x160   : > { %964 = vst.msk [vmem:[#allocation3 + $0xa0] sm:$0xff] %vm943_vm3, %v876_v16 }
 0x163   : > { %1088 = vrot.lane.b32.xlu0 %v5381_v20, %s5228_s29  ;;  %1090 = vrot.lane.b32.xlu1 %v5390_v21, %s5228_s29  ;;  %v7953_v20 = vld [vmem:[#allocation5_spill] sm:$0xff] }
 0x164   : > { %1092 = vrot.lane.b32.xlu2 %v5393_v22, %s5228_s29 }
 0x165   : > { %v860_v17 = vpop.permute.xlu0 %859  ;;  %v862_v18 = vpop.permute.xlu1 %861 }
 0x166   : > { %956 = vst.msk [vmem:[#allocation3 + $0x60] sm:$0xff] %vm943_vm3, %v860_v17  ;;  %v882_v19 = vpop.permute.xlu2 %881 }
 0x167   : > { %957 = vst.msk [vmem:[#allocation3 + $0x68] sm:$0xff] %vm943_vm3, %v862_v18  ;;  %v7977_v18 = vld [vmem:[#allocation29_spill] sm:$0xff] }
 0x168   : > { %967 = vst.msk [vmem:[#allocation3 + $0xb8] sm:$0xff] %vm943_vm3, %v882_v19 }
 0x16b   : > { %1094 = vrot.lane.b32.xlu0 %v5396_v23, %s5228_s29  ;;  %1096 = vrot.lane.b32.xlu1 %v7953_v20, %s5228_s29  ;;  %v7956_v23 = vld [vmem:[#allocation8_spill] sm:$0xff]  ;;  %v7978_v20 = vld [vmem:[#allocation30_spill] sm:$0xff] }
 0x16c   : > { %1098 = vrot.lane.b32.xlu2 %v7954_v39, %s5228_s29 }
 0x16d   : > { %v866_v24 = vpop.permute.xlu0 %865  ;;  %v868_v21 = vpop.permute.xlu1 %867 }
 0x16e   : > { %959 = vst.msk [vmem:[#allocation3 + $0x78] sm:$0xff] %vm943_vm3, %v866_v24  ;;  %v888_v22 = vpop.permute.xlu2 %887  ;;  %v7979_v24 = vld [vmem:[#allocation31_spill] sm:$0xff] }
 0x16f   : > { %960 = vst.msk [vmem:[#allocation3 + $0x80] sm:$0xff] %vm943_vm3, %v868_v21 }
 0x170   : > { %970 = vst.msk [vmem:[#allocation3 + $0xd0] sm:$0xff] %vm943_vm3, %v888_v22  ;;  %v7980_v22 = vld [vmem:[#allocation32_spill] sm:$0xff] }
 0x173   : > { %1100 = vrot.lane.b32.xlu0 %v7955_v46, %s5228_s29  ;;  %1102 = vrot.lane.b32.xlu1 %v7956_v23, %s5228_s29  ;;  %v7981_v23 = vld [vmem:[#allocation33_spill] sm:$0xff] }
 0x174   : > { %1104 = vrot.lane.b32.xlu2 %v7957_v47, %s5228_s29 }
 0x175   : > { %v872_v33 = vpop.permute.xlu0 %871  ;;  %v874_v38 = vpop.permute.xlu1 %873 }
 0x176   : > { %962 = vst.msk [vmem:[#allocation3 + $0x90] sm:$0xff] %vm943_vm3, %v872_v33  ;;  %v894_v53 = vpop.permute.xlu2 %893  ;;  %v7982_v33 = vld [vmem:[#allocation34_spill] sm:$0xff] }
 0x177   : > { %963 = vst.msk [vmem:[#allocation3 + $0x98] sm:$0xff] %vm943_vm3, %v874_v38 }
 0x178   : > { %973 = vst.msk [vmem:[#allocation3 + $0xe8] sm:$0xff] %vm943_vm3, %v894_v53  ;;  %v7983_v53 = vld [vmem:[#allocation35_spill] sm:$0xff] }
 0x17b   : > { %1106 = vrot.lane.b32.xlu0 %v7958_v45, %s5228_s29  ;;  %1108 = vrot.lane.b32.xlu1 %v7959_v54, %s5228_s29  ;;  %v7984_v54 = vld [vmem:[#allocation36_spill] sm:$0xff] }
 0x17c   : > { %1110 = vrot.lane.b32.xlu2 %v7960_v63, %s5228_s29 }
 0x17d   : > { %v878_v60 = vpop.permute.xlu0 %877  ;;  %v880_v52 = vpop.permute.xlu1 %879 }
 0x17e   : > { %965 = vst.msk [vmem:[#allocation3 + $0xa8] sm:$0xff] %vm943_vm3, %v878_v60  ;;  %v900_v42 = vpop.permute.xlu2 %899  ;;  %v7985_v60 = vld [vmem:[#allocation37_spill] sm:$0xff] }
 0x17f   : > { %966 = vst.msk [vmem:[#allocation3 + $0xb0] sm:$0xff] %vm943_vm3, %v880_v52 }
 0x180   : > { %976 = vst.msk [vmem:[#allocation3 + $0x100] sm:$0xff] %vm943_vm3, %v900_v42  ;;  %v7986_v42 = vld [vmem:[#allocation38_spill] sm:$0xff] }
 0x183   : > { %1112 = vrot.lane.b32.xlu0 %v7961_v59, %s5228_s29  ;;  %1114 = vrot.lane.b32.xlu1 %v7962_v50, %s5228_s29  ;;  %v7987_v50 = vld [vmem:[#allocation39_spill] sm:$0xff] }
 0x184   : > { %1116 = vrot.lane.b32.xlu2 %v7963_v61, %s5228_s29 }
 0x185   : > { %v884_v62 = vpop.permute.xlu0 %883  ;;  %v886_v41 = vpop.permute.xlu1 %885 }
 0x186   : > { %968 = vst.msk [vmem:[#allocation3 + $0xc0] sm:$0xff] %vm943_vm3, %v884_v62  ;;  %v906_v43 = vpop.permute.xlu2 %905  ;;  %v7988_v62 = vld [vmem:[#allocation40_spill] sm:$0xff] }
 0x187   : > { %969 = vst.msk [vmem:[#allocation3 + $0xc8] sm:$0xff] %vm943_vm3, %v886_v41 }
 0x188   : > { %979 = vst.msk [vmem:[#allocation3 + $0x118] sm:$0xff] %vm943_vm3, %v906_v43  ;;  %v7989_v43 = vld [vmem:[#allocation41_spill] sm:$0xff] }
 0x18b   : > { %1118 = vrot.lane.b32.xlu0 %v7964_v55, %s5228_s29  ;;  %1120 = vrot.lane.b32.xlu1 %v6052_v0, %s5228_s29 }
 0x18c   : > { %1122 = vrot.lane.b32.xlu2 %v6056_v34, %s5228_s29 }
 0x18d   : > { %v890_v48 = vpop.permute.xlu0 %889  ;;  %v892_v56 = vpop.permute.xlu1 %891 }
 0x18e   : > { %971 = vst.msk [vmem:[#allocation3 + $0xd8] sm:$0xff] %vm943_vm3, %v890_v48  ;;  %v1057_v57 = vpop.permute.xlu2 %1056  ;;  %v7990_v48 = vld [vmem:[#allocation42_spill] sm:$0xff] }
 0x18f   : > { %972 = vst.msk [vmem:[#allocation3 + $0xe0] sm:$0xff] %vm943_vm3, %v892_v56  ;;  %v7991_v56 = vld [vmem:[#allocation43_spill] sm:$0xff] }
 0x190   : > { %1163 = vst.msk [vmem:[#allocation3 + $0x10] sm:$0xff] %vm1160_vm4, %v1057_v57 }
 0x193   : > { %1269 = vrot.lane.b32.xlu0 %v7965_v3, %s5229_s30  ;;  %1271 = vrot.lane.b32.xlu1 %v7966_v40, %s5229_s30  ;;  %v7992_v40 = vld [vmem:[#allocation44_spill] sm:$0xff] }
 0x194   : > { %1273 = vrot.lane.b32.xlu2 %v6068_v44, %s5229_s30 }
 0x195   : > { %v896_v35 = vpop.permute.xlu0 %895  ;;  %v898_v51 = vpop.permute.xlu1 %897 }
 0x196   : > { %974 = vst.msk [vmem:[#allocation3 + $0xf0] sm:$0xff] %vm943_vm3, %v896_v35  ;;  %v1063_v58 = vpop.permute.xlu2 %1062 }
 0x197   : > { %975 = vst.msk [vmem:[#allocation3 + $0xf8] sm:$0xff] %vm943_vm3, %v898_v51  ;;  %v7993_v51 = vld [vmem:[#allocation45_spill] sm:$0xff] }
 0x198   : > { %1166 = vst.msk [vmem:[#allocation3 + $0x28] sm:$0xff] %vm1160_vm4, %v1063_v58 }
 0x19b   : > { %1275 = vrot.lane.b32.xlu0 %v7967_v37, %s5229_s30  ;;  %1277 = vrot.lane.b32.xlu1 %v7968_v29, %s5229_s30 }
 0x19c   : > { %1279 = vrot.lane.b32.xlu2 %v6080_v30, %s5229_s30 }
 0x19d   : > { %v902_v32 = vpop.permute.xlu0 %901  ;;  %v904_v36 = vpop.permute.xlu1 %903 }
 0x19e   : > { %977 = vst.msk [vmem:[#allocation3 + $0x108] sm:$0xff] %vm943_vm3, %v902_v32  ;;  %v1069_v31 = vpop.permute.xlu2 %1068  ;;  %v4935_v32 = vld [vmem:[%s5288_s25 + $0x1b2] sm:$0xff] }
 0x19f   : > { %978 = vst.msk [vmem:[#allocation3 + $0x110] sm:$0xff] %vm943_vm3, %v904_v36  ;;  %v4936_v36 = vld [vmem:[%s5288_s25 + $0x1ba] sm:$0xff] }
 0x1a0   : > { %1169 = vst.msk [vmem:[#allocation3 + $0x40] sm:$0xff] %vm1160_vm4, %v1069_v31 }
 0x1a3   : > { %1281 = vrot.lane.b32.xlu0 %v7969_v1, %s5229_s30  ;;  %1283 = vrot.lane.b32.xlu1 %v7970_v4, %s5229_s30  ;;  %v4937_v1 = vld [vmem:[%s5288_s25 + $0x30] sm:$0xff]  ;;  %v4938_v4 = vld [vmem:[%s5288_s25 + $0x38] sm:$0xff] }
 0x1a4   : > { %1285 = vrot.lane.b32.xlu2 %v7971_v6, %s5229_s30 }
 0x1a5   : > { %v1053_v2 = vpop.permute.xlu0 %1052  ;;  %v1055_v5 = vpop.permute.xlu1 %1054 }
 0x1a6   : > { %1161 = vst.msk [vmem:[#allocation3] sm:$0xff] %vm1160_vm4, %v1053_v2  ;;  %v1075_v7 = vpop.permute.xlu2 %1074 }
 0x1a7   : > { %1162 = vst.msk [vmem:[#allocation3 + $0x8] sm:$0xff] %vm1160_vm4, %v1055_v5 }
 0x1a8   : > { %1172 = vst.msk [vmem:[#allocation3 + $0x58] sm:$0xff] %vm1160_vm4, %v1075_v7  ;;  %v4940_v7 = vld [vmem:[%s5288_s25 + $0x50] sm:$0xff] }
 0x1ab   : > { %1287 = vrot.lane.b32.xlu0 %v7972_v8, %s5229_s30  ;;  %1289 = vrot.lane.b32.xlu1 %v7973_v9, %s5229_s30  ;;  %v4941_v8 = vld [vmem:[%s5288_s25 + $0x60] sm:$0xff]  ;;  %v4942_v9 = vld [vmem:[%s5288_s25 + $0x68] sm:$0xff] }
 0x1ac   : > { %1291 = vrot.lane.b32.xlu2 %v7974_v12, %s5229_s30 }
 0x1ad   : > { %v1059_v10 = vpop.permute.xlu0 %1058  ;;  %v1061_v11 = vpop.permute.xlu1 %1060 }
 0x1ae   : > { %1164 = vst.msk [vmem:[#allocation3 + $0x18] sm:$0xff] %vm1160_vm4, %v1059_v10  ;;  %v1081_v13 = vpop.permute.xlu2 %1080 }
 0x1af   : > { %1165 = vst.msk [vmem:[#allocation3 + $0x20] sm:$0xff] %vm1160_vm4, %v1061_v11 }
 0x1b0   : > { %1175 = vst.msk [vmem:[#allocation3 + $0x70] sm:$0xff] %vm1160_vm4, %v1081_v13  ;;  %v4943_v13 = vld [vmem:[%s5288_s25 + $0x78] sm:$0xff] }
 0x1b3   : > { %1293 = vrot.lane.b32.xlu0 %v7975_v14, %s5229_s30  ;;  %1295 = vrot.lane.b32.xlu1 %v7976_v15, %s5229_s30  ;;  %v4944_v14 = vld [vmem:[%s5288_s25 + $0x80] sm:$0xff]  ;;  %v4945_v15 = vld [vmem:[%s5288_s25 + $0x90] sm:$0xff] }
 0x1b4   : > { %1297 = vrot.lane.b32.xlu2 %v7977_v18, %s5229_s30 }
 0x1b5   : > { %v1065_v16 = vpop.permute.xlu0 %1064  ;;  %v1067_v17 = vpop.permute.xlu1 %1066 }
 0x1b6   : > { %1167 = vst.msk [vmem:[#allocation3 + $0x30] sm:$0xff] %vm1160_vm4, %v1065_v16  ;;  %v1087_v19 = vpop.permute.xlu2 %1086 }
 0x1b7   : > { %1168 = vst.msk [vmem:[#allocation3 + $0x38] sm:$0xff] %vm1160_vm4, %v1067_v17 }
 0x1b8   : > { %1178 = vst.msk [vmem:[#allocation3 + $0x88] sm:$0xff] %vm1160_vm4, %v1087_v19  ;;  %v4946_v19 = vld [vmem:[%s5288_s25 + $0x98] sm:$0xff] }
 0x1bb   : > { %1299 = vrot.lane.b32.xlu0 %v7978_v20, %s5229_s30  ;;  %1301 = vrot.lane.b32.xlu1 %v7979_v24, %s5229_s30  ;;  %v4947_v20 = vld [vmem:[%s5288_s25 + $0xa8] sm:$0xff]  ;;  %v4948_v24 = vld [vmem:[%s5288_s25 + $0xb0] sm:$0xff] }
 0x1bc   : > { %1303 = vrot.lane.b32.xlu2 %v7980_v22, %s5229_s30 }
 0x1bd   : > { %v1071_v21 = vpop.permute.xlu0 %1070  ;;  %v1073_v39 = vpop.permute.xlu1 %1072 }
 0x1be   : > { %1170 = vst.msk [vmem:[#allocation3 + $0x48] sm:$0xff] %vm1160_vm4, %v1071_v21  ;;  %v1093_v46 = vpop.permute.xlu2 %1092 }
 0x1bf   : > { %1171 = vst.msk [vmem:[#allocation3 + $0x50] sm:$0xff] %vm1160_vm4, %v1073_v39 }
 0x1c0   : > { %1181 = vst.msk [vmem:[#allocation3 + $0xa0] sm:$0xff] %vm1160_vm4, %v1093_v46  ;;  %v4949_v46 = vld [vmem:[%s5288_s25 + $0xc0] sm:$0xff] }
 0x1c3   : > { %1305 = vrot.lane.b32.xlu0 %v7981_v23, %s5229_s30  ;;  %1307 = vrot.lane.b32.xlu1 %v7982_v33, %s5229_s30  ;;  %v4950_v23 = vld [vmem:[%s5288_s25 + $0xc8] sm:$0xff]  ;;  %v4951_v33 = vld [vmem:[%s5288_s25 + $0xd8] sm:$0xff] }
 0x1c4   : > { %1309 = vrot.lane.b32.xlu2 %v7983_v53, %s5229_s30 }
 0x1c5   : > { %v1077_v38 = vpop.permute.xlu0 %1076  ;;  %v1079_v47 = vpop.permute.xlu1 %1078 }
 0x1c6   : > { %1173 = vst.msk [vmem:[#allocation3 + $0x60] sm:$0xff] %vm1160_vm4, %v1077_v38  ;;  %v1099_v45 = vpop.permute.xlu2 %1098 }
 0x1c7   : > { %1174 = vst.msk [vmem:[#allocation3 + $0x68] sm:$0xff] %vm1160_vm4, %v1079_v47 }
 0x1c8   : > { %1184 = vst.msk [vmem:[#allocation3 + $0xb8] sm:$0xff] %vm1160_vm4, %v1099_v45  ;;  %v4952_v45 = vld [vmem:[%s5288_s25 + $0xe0] sm:$0xff] }
 0x1cb   : > { %1311 = vrot.lane.b32.xlu0 %v7984_v54, %s5229_s30  ;;  %1313 = vrot.lane.b32.xlu1 %v7985_v60, %s5229_s30  ;;  %v4953_v54 = vld [vmem:[%s5288_s25 + $0xf0] sm:$0xff]  ;;  %v4954_v60 = vld [vmem:[%s5288_s25 + $0xf8] sm:$0xff] }
 0x1cc   : > { %1315 = vrot.lane.b32.xlu2 %v7986_v42, %s5229_s30 }
 0x1cd   : > { %v1083_v52 = vpop.permute.xlu0 %1082  ;;  %v1085_v63 = vpop.permute.xlu1 %1084 }
 0x1ce   : > { %1176 = vst.msk [vmem:[#allocation3 + $0x78] sm:$0xff] %vm1160_vm4, %v1083_v52  ;;  %v1105_v59 = vpop.permute.xlu2 %1104 }
 0x1cf   : > { %1177 = vst.msk [vmem:[#allocation3 + $0x80] sm:$0xff] %vm1160_vm4, %v1085_v63 }
 0x1d0   : > { %1187 = vst.msk [vmem:[#allocation3 + $0xd0] sm:$0xff] %vm1160_vm4, %v1105_v59  ;;  %v4955_v59 = vld [vmem:[%s5288_s25 + $0x108] sm:$0xff] }
 0x1d3   : > { %1317 = vrot.lane.b32.xlu0 %v7987_v50, %s5229_s30  ;;  %1319 = vrot.lane.b32.xlu1 %v7988_v62, %s5229_s30  ;;  %v4956_v50 = vld [vmem:[%s5288_s25 + $0x110] sm:$0xff]  ;;  %v4957_v62 = vld [vmem:[%s5288_s25 + $0x120] sm:$0xff] }
 0x1d4   : > { %1321 = vrot.lane.b32.xlu2 %v7989_v43, %s5229_s30 }
 0x1d5   : > { %v1089_v41 = vpop.permute.xlu0 %1088  ;;  %v1091_v61 = vpop.permute.xlu1 %1090 }
 0x1d6   : > { %1179 = vst.msk [vmem:[#allocation3 + $0x90] sm:$0xff] %vm1160_vm4, %v1089_v41  ;;  %v1111_v55 = vpop.permute.xlu2 %1110 }
 0x1d7   : > { %1180 = vst.msk [vmem:[#allocation3 + $0x98] sm:$0xff] %vm1160_vm4, %v1091_v61 }
 0x1d8   : > { %1190 = vst.msk [vmem:[#allocation3 + $0xe8] sm:$0xff] %vm1160_vm4, %v1111_v55  ;;  %v4958_v55 = vld [vmem:[%s5288_s25 + $0x128] sm:$0xff] }
 0x1db   : > { %1323 = vrot.lane.b32.xlu0 %v7990_v48, %s5229_s30  ;;  %1325 = vrot.lane.b32.xlu1 %v7991_v56, %s5229_s30  ;;  %v4959_v48 = vld [vmem:[%s5288_s25 + $0x138] sm:$0xff]  ;;  %v4960_v56 = vld [vmem:[%s5288_s25 + $0x140] sm:$0xff] }
 0x1dc   : > { %1327 = vrot.lane.b32.xlu2 %v7992_v40, %s5229_s30 }
 0x1dd   : > { %v1095_v57 = vpop.permute.xlu0 %1094  ;;  %v1097_v3 = vpop.permute.xlu1 %1096 }
 0x1de   : > { %1182 = vst.msk [vmem:[#allocation3 + $0xa8] sm:$0xff] %vm1160_vm4, %v1095_v57  ;;  %v1117_v35 = vpop.permute.xlu2 %1116 }
 0x1df   : > { %1183 = vst.msk [vmem:[#allocation3 + $0xb0] sm:$0xff] %vm1160_vm4, %v1097_v3 }
 0x1e0   : > { %1193 = vst.msk [vmem:[#allocation3 + $0x100] sm:$0xff] %vm1160_vm4, %v1117_v35  ;;  %v4961_v35 = vld [vmem:[%s5288_s25 + $0x150] sm:$0xff] }
 0x1e3   : > { %1329 = vrot.lane.b32.xlu0 %v7993_v51, %s5229_s30  ;;  %1331 = vrot.lane.b32.xlu1 %v5821_v25, %s5229_s30  ;;  %v4962_v51 = vld [vmem:[%s5288_s25 + $0x158] sm:$0xff] }
 0x1e4   : > { %1333 = vrot.lane.b32.xlu2 %v5824_v28, %s5229_s30 }
 0x1e5   : > { %v1101_v58 = vpop.permute.xlu0 %1100  ;;  %v1103_v37 = vpop.permute.xlu1 %1102 }
 0x1e6   : > { %1185 = vst.msk [vmem:[#allocation3 + $0xc0] sm:$0xff] %vm1160_vm4, %v1101_v58  ;;  %v1123_v29 = vpop.permute.xlu2 %1122  ;;  %v4963_v58 = vld [vmem:[%s5288_s25 + $0x168] sm:$0xff] }
 0x1e7   : > { %1186 = vst.msk [vmem:[#allocation3 + $0xc8] sm:$0xff] %vm1160_vm4, %v1103_v37 }
 0x1e8   : > { %1196 = vst.msk [vmem:[#allocation3 + $0x118] sm:$0xff] %vm1160_vm4, %v1123_v29 }
 0x1eb   : > { %1335 = vrot.lane.b32.xlu0 %v5828_v27, %s5229_s30  ;;  %1337 = vrot.lane.b32.xlu1 %v4935_v32, %s5229_s30  ;;  %v4939_v27 = vld [vmem:[%s5288_s25 + $0x48] sm:$0xff] }
 0x1ec   : > { %1339 = vrot.lane.b32.xlu2 %v4936_v36, %s5229_s30  ;;  %v4964_v36 = vld [vmem:[%s5288_s25 + $0x170] sm:$0xff] }
 0x1ed   : > { %v1107_v25 = vpop.permute.xlu0 %1106  ;;  %v1109_v31 = vpop.permute.xlu1 %1108 }
 0x1ee   : > { %1188 = vst.msk [vmem:[#allocation3 + $0xd8] sm:$0xff] %vm1160_vm4, %v1107_v25  ;;  %v1274_v28 = vpop.permute.xlu2 %1273  ;;  %v4965_v25 = vld [vmem:[%s5288_s25 + $0x180] sm:$0xff] }
 0x1ef   : > { %1189 = vst.msk [vmem:[#allocation3 + $0xe0] sm:$0xff] %vm1160_vm4, %v1109_v31  ;;  %v4966_v31 = vld [vmem:[%s5288_s25 + $0x188] sm:$0xff] }
 0x1f0   : > { %1380 = vst.msk [vmem:[#allocation3 + $0x10] sm:$0xff] %vm1377_vm5, %v1274_v28 }
 0x1f3   : > { %1489 = vrot.lane.b32.xlu0 %v4937_v1, %s5230_s6  ;;  %1491 = vrot.lane.b32.xlu1 %v4938_v4, %s5230_s6 }
 0x1f4   : > { %1493 = vrot.lane.b32.xlu2 %v4939_v27, %s5230_s6  ;;  %v4967_v27 = vld [vmem:[%s5288_s25 + $0x198] sm:$0xff] }
 0x1f5   : > { %v1113_v2 = vpop.permute.xlu0 %1112  ;;  %v1115_v5 = vpop.permute.xlu1 %1114 }
 0x1f6   : > { %1191 = vst.msk [vmem:[#allocation3 + $0xf0] sm:$0xff] %vm1160_vm4, %v1113_v2  ;;  %v1280_v6 = vpop.permute.xlu2 %1279  ;;  %v4968_v2 = vld [vmem:[%s5288_s25 + $0x1a0] sm:$0xff] }
 0x1f7   : > { %1192 = vst.msk [vmem:[#allocation3 + $0xf8] sm:$0xff] %vm1160_vm4, %v1115_v5 }
 0x1f8   : > { %1383 = vst.msk [vmem:[#allocation3 + $0x28] sm:$0xff] %vm1377_vm5, %v1280_v6 }
 0x1fb   : > { %1495 = vrot.lane.b32.xlu0 %v4940_v7, %s5230_s6  ;;  %1497 = vrot.lane.b32.xlu1 %v4941_v8, %s5230_s6  ;;  %v4971_v8 = vld [vmem:[%s5288_s25 + $0x1c8] sm:$0xff] }
 0x1fc   : > { %1499 = vrot.lane.b32.xlu2 %v4942_v9, %s5230_s6  ;;  %v4972_v9 = vld [vmem:[%s5288_s25 + $0x1d0] sm:$0xff] }
 0x1fd   : > { %v1119_v10 = vpop.permute.xlu0 %1118  ;;  %v1121_v11 = vpop.permute.xlu1 %1120 }
 0x1fe   : > { %1194 = vst.msk [vmem:[#allocation3 + $0x108] sm:$0xff] %vm1160_vm4, %v1119_v10  ;;  %v1286_v12 = vpop.permute.xlu2 %1285 }
 0x1ff   : > { %1195 = vst.msk [vmem:[#allocation3 + $0x110] sm:$0xff] %vm1160_vm4, %v1121_v11 }
 0x200   : > { %1386 = vst.msk [vmem:[#allocation3 + $0x40] sm:$0xff] %vm1377_vm5, %v1286_v12  ;;  %v4973_v12 = vld [vmem:[%s5288_s25 + $0x31] sm:$0xff] }
 0x203   : > { %1501 = vrot.lane.b32.xlu0 %v4943_v13, %s5230_s6  ;;  %1503 = vrot.lane.b32.xlu1 %v4944_v14, %s5230_s6  ;;  %v4974_v13 = vld [vmem:[%s5288_s25 + $0x39] sm:$0xff] }
 0x204   : > { %1505 = vrot.lane.b32.xlu2 %v4945_v15, %s5230_s6 }
 0x205   : > { %v1270_v16 = vpop.permute.xlu0 %1269  ;;  %v1272_v17 = vpop.permute.xlu1 %1271 }
 0x206   : > { %1378 = vst.msk [vmem:[#allocation3] sm:$0xff] %vm1377_vm5, %v1270_v16  ;;  %v1292_v18 = vpop.permute.xlu2 %1291 }
 0x207   : > { %1379 = vst.msk [vmem:[#allocation3 + $0x8] sm:$0xff] %vm1377_vm5, %v1272_v17  ;;  %v4976_v17 = vld [vmem:[%s5288_s25 + $0x51] sm:$0xff] }
 0x208   : > { %1389 = vst.msk [vmem:[#allocation3 + $0x58] sm:$0xff] %vm1377_vm5, %v1292_v18  ;;  %v4977_v18 = vld [vmem:[%s5288_s25 + $0x61] sm:$0xff] }
 0x20b   : > { %1507 = vrot.lane.b32.xlu0 %v4946_v19, %s5230_s6  ;;  %1509 = vrot.lane.b32.xlu1 %v4947_v20, %s5230_s6  ;;  %v4978_v19 = vld [vmem:[%s5288_s25 + $0x69] sm:$0xff] }
 0x20c   : > { %1511 = vrot.lane.b32.xlu2 %v4948_v24, %s5230_s6 }
 0x20d   : > { %v1276_v21 = vpop.permute.xlu0 %1275  ;;  %v1278_v39 = vpop.permute.xlu1 %1277 }
 0x20e   : > { %1381 = vst.msk [vmem:[#allocation3 + $0x18] sm:$0xff] %vm1377_vm5, %v1276_v21  ;;  %v1298_v22 = vpop.permute.xlu2 %1297 }
 0x20f   : > { %1382 = vst.msk [vmem:[#allocation3 + $0x20] sm:$0xff] %vm1377_vm5, %v1278_v39  ;;  %v4979_v39 = vld [vmem:[%s5288_s25 + $0x79] sm:$0xff] }
 0x210   : > { %1392 = vst.msk [vmem:[#allocation3 + $0x70] sm:$0xff] %vm1377_vm5, %v1298_v22  ;;  %v4980_v22 = vld [vmem:[%s5288_s25 + $0x81] sm:$0xff] }
 0x213   : > { %1513 = vrot.lane.b32.xlu0 %v4949_v46, %s5230_s6  ;;  %1515 = vrot.lane.b32.xlu1 %v4950_v23, %s5230_s6  ;;  %v4981_v46 = vld [vmem:[%s5288_s25 + $0x91] sm:$0xff] }
 0x214   : > { %1517 = vrot.lane.b32.xlu2 %v4951_v33, %s5230_s6 }
 0x215   : > { %v1282_v38 = vpop.permute.xlu0 %1281  ;;  %v1284_v47 = vpop.permute.xlu1 %1283 }
 0x216   : > { %1384 = vst.msk [vmem:[#allocation3 + $0x30] sm:$0xff] %vm1377_vm5, %v1282_v38  ;;  %v1304_v53 = vpop.permute.xlu2 %1303 }
 0x217   : > { %1385 = vst.msk [vmem:[#allocation3 + $0x38] sm:$0xff] %vm1377_vm5, %v1284_v47  ;;  %v4982_v47 = vld [vmem:[%s5288_s25 + $0x99] sm:$0xff] }
 0x218   : > { %1395 = vst.msk [vmem:[#allocation3 + $0x88] sm:$0xff] %vm1377_vm5, %v1304_v53  ;;  %v4983_v53 = vld [vmem:[%s5288_s25 + $0xa9] sm:$0xff] }
 0x21b   : > { %1519 = vrot.lane.b32.xlu0 %v4952_v45, %s5230_s6  ;;  %1521 = vrot.lane.b32.xlu1 %v4953_v54, %s5230_s6  ;;  %v4984_v45 = vld [vmem:[%s5288_s25 + $0xb1] sm:$0xff] }
 0x21c   : > { %1523 = vrot.lane.b32.xlu2 %v4954_v60, %s5230_s6 }
 0x21d   : > { %v1288_v52 = vpop.permute.xlu0 %1287  ;;  %v1290_v63 = vpop.permute.xlu1 %1289 }
 0x21e   : > { %1387 = vst.msk [vmem:[#allocation3 + $0x48] sm:$0xff] %vm1377_vm5, %v1288_v52  ;;  %v1310_v42 = vpop.permute.xlu2 %1309 }
 0x21f   : > { %1388 = vst.msk [vmem:[#allocation3 + $0x50] sm:$0xff] %vm1377_vm5, %v1290_v63  ;;  %v4985_v63 = vld [vmem:[%s5288_s25 + $0xc1] sm:$0xff] }
 0x220   : > { %1398 = vst.msk [vmem:[#allocation3 + $0xa0] sm:$0xff] %vm1377_vm5, %v1310_v42  ;;  %v4986_v42 = vld [vmem:[%s5288_s25 + $0xc9] sm:$0xff] }
 0x223   : > { %1525 = vrot.lane.b32.xlu0 %v4955_v59, %s5230_s6  ;;  %1527 = vrot.lane.b32.xlu1 %v4956_v50, %s5230_s6  ;;  %v4987_v59 = vld [vmem:[%s5288_s25 + $0xd9] sm:$0xff] }
 0x224   : > { %1529 = vrot.lane.b32.xlu2 %v4957_v62, %s5230_s6 }
 0x225   : > { %v1294_v41 = vpop.permute.xlu0 %1293  ;;  %v1296_v61 = vpop.permute.xlu1 %1295 }
 0x226   : > { %1390 = vst.msk [vmem:[#allocation3 + $0x60] sm:$0xff] %vm1377_vm5, %v1294_v41  ;;  %v1316_v43 = vpop.permute.xlu2 %1315 }
 0x227   : > { %1391 = vst.msk [vmem:[#allocation3 + $0x68] sm:$0xff] %vm1377_vm5, %v1296_v61  ;;  %v4988_v61 = vld [vmem:[%s5288_s25 + $0xe1] sm:$0xff] }
 0x228   : > { %1401 = vst.msk [vmem:[#allocation3 + $0xb8] sm:$0xff] %vm1377_vm5, %v1316_v43  ;;  %v4989_v43 = vld [vmem:[%s5288_s25 + $0xf1] sm:$0xff] }
 0x22b   : > { %1531 = vrot.lane.b32.xlu0 %v4958_v55, %s5230_s6  ;;  %1533 = vrot.lane.b32.xlu1 %v4959_v48, %s5230_s6  ;;  %v4990_v55 = vld [vmem:[%s5288_s25 + $0xf9] sm:$0xff] }
 0x22c   : > { %1535 = vrot.lane.b32.xlu2 %v4960_v56, %s5230_s6 }
 0x22d   : > { %v1300_v57 = vpop.permute.xlu0 %1299  ;;  %v1302_v3 = vpop.permute.xlu1 %1301 }
 0x22e   : > { %1393 = vst.msk [vmem:[#allocation3 + $0x78] sm:$0xff] %vm1377_vm5, %v1300_v57  ;;  %v1322_v40 = vpop.permute.xlu2 %1321 }
 0x22f   : > { %1394 = vst.msk [vmem:[#allocation3 + $0x80] sm:$0xff] %vm1377_vm5, %v1302_v3  ;;  %v4991_v3 = vld [vmem:[%s5288_s25 + $0x109] sm:$0xff] }
 0x230   : > { %1404 = vst.msk [vmem:[#allocation3 + $0xd0] sm:$0xff] %vm1377_vm5, %v1322_v40  ;;  %v4992_v40 = vld [vmem:[%s5288_s25 + $0x111] sm:$0xff] }
 0x233   : > { %1537 = vrot.lane.b32.xlu0 %v4961_v35, %s5230_s6  ;;  %1539 = vrot.lane.b32.xlu1 %v4962_v51, %s5230_s6  ;;  %v4993_v35 = vld [vmem:[%s5288_s25 + $0x121] sm:$0xff] }
 0x234   : > { %1541 = vrot.lane.b32.xlu2 %v4963_v58, %s5230_s6 }
 0x235   : > { %v1306_v37 = vpop.permute.xlu0 %1305  ;;  %v1308_v29 = vpop.permute.xlu1 %1307 }
 0x236   : > { %1396 = vst.msk [vmem:[#allocation3 + $0x90] sm:$0xff] %vm1377_vm5, %v1306_v37  ;;  %v1328_v32 = vpop.permute.xlu2 %1327 }
 0x237   : > { %1397 = vst.msk [vmem:[#allocation3 + $0x98] sm:$0xff] %vm1377_vm5, %v1308_v29  ;;  %v4994_v29 = vld [vmem:[%s5288_s25 + $0x129] sm:$0xff] }
 0x238   : > { %1407 = vst.msk [vmem:[#allocation3 + $0xe8] sm:$0xff] %vm1377_vm5, %v1328_v32  ;;  %v4995_v32 = vld [vmem:[%s5288_s25 + $0x139] sm:$0xff] }
 0x23b   : > { %1543 = vrot.lane.b32.xlu0 %v4964_v36, %s5230_s6  ;;  %1545 = vrot.lane.b32.xlu1 %v4965_v25, %s5230_s6  ;;  %v4996_v36 = vld [vmem:[%s5288_s25 + $0x141] sm:$0xff] }
 0x23c   : > { %1547 = vrot.lane.b32.xlu2 %v4966_v31, %s5230_s6 }
 0x23d   : > { %v1312_v28 = vpop.permute.xlu0 %1311  ;;  %v1314_v1 = vpop.permute.xlu1 %1313 }
 0x23e   : > { %1399 = vst.msk [vmem:[#allocation3 + $0xa8] sm:$0xff] %vm1377_vm5, %v1312_v28  ;;  %v1334_v4 = vpop.permute.xlu2 %1333 }
 0x23f   : > { %1400 = vst.msk [vmem:[#allocation3 + $0xb0] sm:$0xff] %vm1377_vm5, %v1314_v1  ;;  %v4997_v1 = vld [vmem:[%s5288_s25 + $0x151] sm:$0xff] }
 0x240   : > { %1410 = vst.msk [vmem:[#allocation3 + $0x100] sm:$0xff] %vm1377_vm5, %v1334_v4  ;;  %v4998_v4 = vld [vmem:[%s5288_s25 + $0x159] sm:$0xff] }
 0x243   : > { %1549 = vrot.lane.b32.xlu0 %v4967_v27, %s5230_s6  ;;  %1551 = vrot.lane.b32.xlu1 %v4968_v2, %s5230_s6  ;;  %v4999_v27 = vld [vmem:[%s5288_s25 + $0x169] sm:$0xff] }
 0x244   : > { %1553 = vrot.lane.b32.xlu2 %v5938_v49, %s5230_s6 }
 0x245   : > { %v1318_v5 = vpop.permute.xlu0 %1317  ;;  %v1320_v6 = vpop.permute.xlu1 %1319 }
 0x246   : > { %1402 = vst.msk [vmem:[#allocation3 + $0xc0] sm:$0xff] %vm1377_vm5, %v1318_v5  ;;  %v1340_v7 = vpop.permute.xlu2 %1339 }
 0x247   : > { %1403 = vst.msk [vmem:[#allocation3 + $0xc8] sm:$0xff] %vm1377_vm5, %v1320_v6 }
 0x248   : > { %1413 = vst.msk [vmem:[#allocation3 + $0x118] sm:$0xff] %vm1377_vm5, %v1340_v7  ;;  %v5000_v7 = vld [vmem:[%s5288_s25 + $0x171] sm:$0xff] }
 0x24b   : > { %1555 = vrot.lane.b32.xlu0 %v5942_v26, %s5230_s6  ;;  %1557 = vrot.lane.b32.xlu1 %v4971_v8, %s5230_s6  ;;  %v4975_v26 = vld [vmem:[%s5288_s25 + $0x49] sm:$0xff]  ;;  %v5001_v8 = vld [vmem:[%s5288_s25 + $0x181] sm:$0xff] }
 0x24c   : > { %1559 = vrot.lane.b32.xlu2 %v4972_v9, %s5230_s6  ;;  %v5002_v9 = vld [vmem:[%s5288_s25 + $0x189] sm:$0xff] }
 0x24d   : > { %v1324_v10 = vpop.permute.xlu0 %1323  ;;  %v1326_v11 = vpop.permute.xlu1 %1325 }
 0x24e   : > { %1405 = vst.msk [vmem:[#allocation3 + $0xd8] sm:$0xff] %vm1377_vm5, %v1324_v10  ;;  %v1494_v49 = vpop.permute.xlu2 %1493 }
 0x24f   : > { %1406 = vst.msk [vmem:[#allocation3 + $0xe0] sm:$0xff] %vm1377_vm5, %v1326_v11 }
 0x250   : > { %1600 = vst.msk [vmem:[#allocation3 + $0x10] sm:$0xff] %vm1597_vm6, %v1494_v49 }
 0x253   : > { %1706 = vrot.lane.b32.xlu0 %v4973_v12, %s5231_s7  ;;  %1708 = vrot.lane.b32.xlu1 %v4974_v13, %s5231_s7  ;;  %v5003_v12 = vld [vmem:[%s5288_s25 + $0x199] sm:$0xff]  ;;  %v5004_v13 = vld [vmem:[%s5288_s25 + $0x1a1] sm:$0xff] }
 0x254   : > { %1710 = vrot.lane.b32.xlu2 %v4975_v26, %s5231_s7 }
 0x255   : > { %v1330_v14 = vpop.permute.xlu0 %1329  ;;  %v1332_v15 = vpop.permute.xlu1 %1331 }
 0x256   : > { %1408 = vst.msk [vmem:[#allocation3 + $0xf0] sm:$0xff] %vm1377_vm5, %v1330_v14  ;;  %v1500_v16 = vpop.permute.xlu2 %1499 }
 0x257   : > { %1409 = vst.msk [vmem:[#allocation3 + $0xf8] sm:$0xff] %vm1377_vm5, %v1332_v15 }
 0x258   : > { %1603 = vst.msk [vmem:[#allocation3 + $0x28] sm:$0xff] %vm1597_vm6, %v1500_v16  ;;  %v5007_v16 = vld [vmem:[%s5288_s25 + $0x1c9] sm:$0xff] }
 0x25b   : > { %1712 = vrot.lane.b32.xlu0 %v4976_v17, %s5231_s7  ;;  %1714 = vrot.lane.b32.xlu1 %v4977_v18, %s5231_s7  ;;  %v5008_v17 = vld [vmem:[%s5288_s25 + $0x1d1] sm:$0xff] }
 0x25c   : > { %1716 = vrot.lane.b32.xlu2 %v4978_v19, %s5231_s7 }
 0x25d   : > { %v1336_v20 = vpop.permute.xlu0 %1335  ;;  %v1338_v24 = vpop.permute.xlu1 %1337 }
 0x25e   : > { %1411 = vst.msk [vmem:[#allocation3 + $0x108] sm:$0xff] %vm1377_vm5, %v1336_v20  ;;  %v1506_v21 = vpop.permute.xlu2 %1505  ;;  %v5010_v20 = vld [vmem:[%s5288_s25 + $0x3a] sm:$0xff] }
 0x25f   : > { %1412 = vst.msk [vmem:[#allocation3 + $0x110] sm:$0xff] %vm1377_vm5, %v1338_v24  ;;  %v5011_v24 = vld [vmem:[%s5288_s25 + $0x4a] sm:$0xff] }
 0x260   : > { %1606 = vst.msk [vmem:[#allocation3 + $0x40] sm:$0xff] %vm1597_vm6, %v1506_v21 }
 0x263   : > { %1718 = vrot.lane.b32.xlu0 %v4979_v39, %s5231_s7  ;;  %1720 = vrot.lane.b32.xlu1 %v4980_v22, %s5231_s7  ;;  %v5013_v22 = vld [vmem:[%s5288_s25 + $0x62] sm:$0xff] }
 0x264   : > { %1722 = vrot.lane.b32.xlu2 %v4981_v46, %s5231_s7  ;;  %v5014_v46 = vld [vmem:[%s5288_s25 + $0x6a] sm:$0xff] }
 0x265   : > { %v1490_v23 = vpop.permute.xlu0 %1489  ;;  %v1492_v33 = vpop.permute.xlu1 %1491 }
 0x266   : > { %1598 = vst.msk [vmem:[#allocation3] sm:$0xff] %vm1597_vm6, %v1490_v23  ;;  %v1512_v38 = vpop.permute.xlu2 %1511 }
 0x267   : > { %1599 = vst.msk [vmem:[#allocation3 + $0x8] sm:$0xff] %vm1597_vm6, %v1492_v33 }
 0x268   : > { %1609 = vst.msk [vmem:[#allocation3 + $0x58] sm:$0xff] %vm1597_vm6, %v1512_v38  ;;  %v5015_v38 = vld [vmem:[%s5288_s25 + $0x7a] sm:$0xff] }
 0x26b   : > { %1724 = vrot.lane.b32.xlu0 %v4982_v47, %s5231_s7  ;;  %1726 = vrot.lane.b32.xlu1 %v4983_v53, %s5231_s7  ;;  %v5016_v47 = vld [vmem:[%s5288_s25 + $0x82] sm:$0xff]  ;;  %v5017_v53 = vld [vmem:[%s5288_s25 + $0x92] sm:$0xff] }
 0x26c   : > { %1728 = vrot.lane.b32.xlu2 %v4984_v45, %s5231_s7 }
 0x26d   : > { %v1496_v54 = vpop.permute.xlu0 %1495  ;;  %v1498_v60 = vpop.permute.xlu1 %1497 }
 0x26e   : > { %1601 = vst.msk [vmem:[#allocation3 + $0x18] sm:$0xff] %vm1597_vm6, %v1496_v54  ;;  %v1518_v52 = vpop.permute.xlu2 %1517 }
 0x26f   : > { %1602 = vst.msk [vmem:[#allocation3 + $0x20] sm:$0xff] %vm1597_vm6, %v1498_v60  ;;  %v5018_v60 = vld [vmem:[%s5288_s25 + $0x9a] sm:$0xff] }
 0x270   : > { %1612 = vst.msk [vmem:[#allocation3 + $0x70] sm:$0xff] %vm1597_vm6, %v1518_v52  ;;  %v5019_v52 = vld [vmem:[%s5288_s25 + $0xaa] sm:$0xff] }
 0x273   : > { %1730 = vrot.lane.b32.xlu0 %v4985_v63, %s5231_s7  ;;  %1732 = vrot.lane.b32.xlu1 %v4986_v42, %s5231_s7  ;;  %v5020_v63 = vld [vmem:[%s5288_s25 + $0xb2] sm:$0xff] }
 0x274   : > { %1734 = vrot.lane.b32.xlu2 %v4987_v59, %s5231_s7 }
 0x275   : > { %v1502_v50 = vpop.permute.xlu0 %1501  ;;  %v1504_v62 = vpop.permute.xlu1 %1503 }
 0x276   : > { %1604 = vst.msk [vmem:[#allocation3 + $0x30] sm:$0xff] %vm1597_vm6, %v1502_v50  ;;  %v1524_v41 = vpop.permute.xlu2 %1523 }
 0x277   : > { %1605 = vst.msk [vmem:[#allocation3 + $0x38] sm:$0xff] %vm1597_vm6, %v1504_v62  ;;  %v5021_v62 = vld [vmem:[%s5288_s25 + $0xc2] sm:$0xff] }
 0x278   : > { %1615 = vst.msk [vmem:[#allocation3 + $0x88] sm:$0xff] %vm1597_vm6, %v1524_v41  ;;  %v5022_v41 = vld [vmem:[%s5288_s25 + $0xca] sm:$0xff] }
 0x27b   : > { %1736 = vrot.lane.b32.xlu0 %v4988_v61, %s5231_s7  ;;  %1738 = vrot.lane.b32.xlu1 %v4989_v43, %s5231_s7  ;;  %v5023_v61 = vld [vmem:[%s5288_s25 + $0xda] sm:$0xff] }
 0x27c   : > { %1740 = vrot.lane.b32.xlu2 %v4990_v55, %s5231_s7 }
 0x27d   : > { %v1508_v48 = vpop.permute.xlu0 %1507  ;;  %v1510_v56 = vpop.permute.xlu1 %1509 }
 0x27e   : > { %1607 = vst.msk [vmem:[#allocation3 + $0x48] sm:$0xff] %vm1597_vm6, %v1508_v48  ;;  %v1530_v57 = vpop.permute.xlu2 %1529 }
 0x27f   : > { %1608 = vst.msk [vmem:[#allocation3 + $0x50] sm:$0xff] %vm1597_vm6, %v1510_v56  ;;  %v5024_v56 = vld [vmem:[%s5288_s25 + $0xe2] sm:$0xff] }
 0x280   : > { %1618 = vst.msk [vmem:[#allocation3 + $0xa0] sm:$0xff] %vm1597_vm6, %v1530_v57  ;;  %v5025_v57 = vld [vmem:[%s5288_s25 + $0xf2] sm:$0xff] }
 0x283   : > { %1742 = vrot.lane.b32.xlu0 %v4991_v3, %s5231_s7  ;;  %1744 = vrot.lane.b32.xlu1 %v4992_v40, %s5231_s7  ;;  %v5026_v3 = vld [vmem:[%s5288_s25 + $0xfa] sm:$0xff] }
 0x284   : > { %1746 = vrot.lane.b32.xlu2 %v4993_v35, %s5231_s7 }
 0x285   : > { %v1514_v51 = vpop.permute.xlu0 %1513  ;;  %v1516_v58 = vpop.permute.xlu1 %1515 }
 0x286   : > { %1610 = vst.msk [vmem:[#allocation3 + $0x60] sm:$0xff] %vm1597_vm6, %v1514_v51  ;;  %v1536_v37 = vpop.permute.xlu2 %1535 }
 0x287   : > { %1611 = vst.msk [vmem:[#allocation3 + $0x68] sm:$0xff] %vm1597_vm6, %v1516_v58  ;;  %v5027_v58 = vld [vmem:[%s5288_s25 + $0x10a] sm:$0xff] }
 0x288   : > { %1621 = vst.msk [vmem:[#allocation3 + $0xb8] sm:$0xff] %vm1597_vm6, %v1536_v37  ;;  %v5028_v37 = vld [vmem:[%s5288_s25 + $0x112] sm:$0xff] }
 0x28b   : > { %1748 = vrot.lane.b32.xlu0 %v4994_v29, %s5231_s7  ;;  %1750 = vrot.lane.b32.xlu1 %v4995_v32, %s5231_s7 }
 0x28c   : > { %1752 = vrot.lane.b32.xlu2 %v4996_v36, %s5231_s7  ;;  %v5029_v36 = vld [vmem:[%s5288_s25 + $0x122] sm:$0xff] }
 0x28d   : > { %v1520_v25 = vpop.permute.xlu0 %1519  ;;  %v1522_v31 = vpop.permute.xlu1 %1521 }
 0x28e   : > { %1613 = vst.msk [vmem:[#allocation3 + $0x78] sm:$0xff] %vm1597_vm6, %v1520_v25  ;;  %v1542_v28 = vpop.permute.xlu2 %1541 }
 0x28f   : > { %1614 = vst.msk [vmem:[#allocation3 + $0x80] sm:$0xff] %vm1597_vm6, %v1522_v31  ;;  %v5030_v31 = vld [vmem:[%s5288_s25 + $0x12a] sm:$0xff] }
 0x290   : > { %1624 = vst.msk [vmem:[#allocation3 + $0xd0] sm:$0xff] %vm1597_vm6, %v1542_v28  ;;  %v5031_v28 = vld [vmem:[%s5288_s25 + $0x13a] sm:$0xff] }
 0x293   : > { %1754 = vrot.lane.b32.xlu0 %v4997_v1, %s5231_s7  ;;  %1756 = vrot.lane.b32.xlu1 %v4998_v4, %s5231_s7 }
 0x294   : > { %1758 = vrot.lane.b32.xlu2 %v4999_v27, %s5231_s7 }
 0x295   : > { %v1526_v2 = vpop.permute.xlu0 %1525  ;;  %v1528_v5 = vpop.permute.xlu1 %1527 }
 0x296   : > { %1616 = vst.msk [vmem:[#allocation3 + $0x90] sm:$0xff] %vm1597_vm6, %v1526_v2  ;;  %v1548_v6 = vpop.permute.xlu2 %1547  ;;  %v5033_v2 = vld [vmem:[%s5288_s25 + $0x152] sm:$0xff] }
 0x297   : > { %1617 = vst.msk [vmem:[#allocation3 + $0x98] sm:$0xff] %vm1597_vm6, %v1528_v5 }
 0x298   : > { %1627 = vst.msk [vmem:[#allocation3 + $0xe8] sm:$0xff] %vm1597_vm6, %v1548_v6 }
 0x29b   : > { %1760 = vrot.lane.b32.xlu0 %v5000_v7, %s5231_s7  ;;  %1762 = vrot.lane.b32.xlu1 %v5001_v8, %s5231_s7  ;;  %v5034_v7 = vld [vmem:[%s5288_s25 + $0x15a] sm:$0xff] }
 0x29c   : > { %1764 = vrot.lane.b32.xlu2 %v5002_v9, %s5231_s7 }
 0x29d   : > { %v1532_v10 = vpop.permute.xlu0 %1531  ;;  %v1534_v11 = vpop.permute.xlu1 %1533 }
 0x29e   : > { %1619 = vst.msk [vmem:[#allocation3 + $0xa8] sm:$0xff] %vm1597_vm6, %v1532_v10  ;;  %v1554_v49 = vpop.permute.xlu2 %1553 }
 0x29f   : > { %1620 = vst.msk [vmem:[#allocation3 + $0xb0] sm:$0xff] %vm1597_vm6, %v1534_v11  ;;  %v5032_v11 = vld [vmem:[%s5288_s25 + $0x142] sm:$0xff] }
 0x2a0   : > { %1630 = vst.msk [vmem:[#allocation3 + $0x100] sm:$0xff] %vm1597_vm6, %v1554_v49  ;;  %v2108_v49 = vld [vmem:[%s7844_s1 + $0x20] sm:$0xf] }
 0x2a1   : > { %5045 = vmatpush.msk.msra.mxu0 %vm2222_vm8, %v2108_v49  ;;  %5150 = vmatpush.msk.msra.mxu2 %vm2222_vm8, %v2108_v49 }
 0x2a2   : > { %5151 = vmatpush.msk.msra.mxu3 %vm2222_vm8, %v2108_v49 }
 0x2a3   : > { %1766 = vrot.lane.b32.xlu0 %v5003_v12, %s5231_s7  ;;  %1768 = vrot.lane.b32.xlu1 %v5004_v13, %s5231_s7 }
 0x2a4   : > { %1770 = vrot.lane.b32.xlu2 %v6052_v0, %s5231_s7 }
 0x2a5   : > { %v1538_v26 = vpop.permute.xlu0 %1537  ;;  %v1540_v14 = vpop.permute.xlu1 %1539 }
 0x2a6   : > { %1622 = vst.msk [vmem:[#allocation3 + $0xc0] sm:$0xff] %vm1597_vm6, %v1538_v26  ;;  %v1560_v15 = vpop.permute.xlu2 %1559 }
 0x2a7   : > { %1623 = vst.msk [vmem:[#allocation3 + $0xc8] sm:$0xff] %vm1597_vm6, %v1540_v14  ;;  %v2107_v14 = vld [vmem:[%s7844_s1 + $0x18] sm:$0xff] }
 0x2a8   : > { %1633 = vst.msk [vmem:[#allocation3 + $0x118] sm:$0xff] %vm1597_vm6, %v1560_v15  ;;  %v2106_v15 = vld [vmem:[%s7844_s1 + $0x10] sm:$0xff]  ;;  %2238 = vmatpush.msra.mxu0 %v2107_v14  ;;  %5152 = vmatpush.msra.mxu2 %v2107_v14 }
 0x2a9   : > { %5153 = vmatpush.msra.mxu3 %v2107_v14 }
 0x2aa   : > { %2239 = vmatpush.msra.mxu0 %v2106_v15  ;;  %5154 = vmatpush.msra.mxu2 %v2106_v15 }
 0x2ab   : > { %1772 = vrot.lane.b32.xlu0 %v6056_v34, %s5231_s7  ;;  %1774 = vrot.lane.b32.xlu1 %v5007_v16, %s5231_s7 }
 0x2ac   : > { %1776 = vrot.lane.b32.xlu2 %v5008_v17, %s5231_s7  ;;  %v5036_v17 = vld [vmem:[%s5288_s25 + $0x172] sm:$0xff]  ;;  %5155 = vmatpush.msra.mxu3 %v2106_v15 }
 0x2ad   : > { %v1544_v18 = vpop.permute.xlu0 %1543  ;;  %v1546_v19 = vpop.permute.xlu1 %1545 }
 0x2ae   : > { %1625 = vst.msk [vmem:[#allocation3 + $0xd8] sm:$0xff] %vm1597_vm6, %v1544_v18  ;;  %v1711_v0 = vpop.permute.xlu2 %1710  ;;  %v2105_v18 = vld [vmem:[%s7844_s1 + $0x8] sm:$0xff] }
 0x2af   : > { %1626 = vst.msk [vmem:[#allocation3 + $0xe0] sm:$0xff] %vm1597_vm6, %v1546_v19  ;;  %v2104_v19 = vld [vmem:[%s7844_s1] sm:$0xff]  ;;  %2240 = vmatpush.msra.mxu0 %v2105_v18  ;;  %5156 = vmatpush.msra.mxu2 %v2105_v18 }
 0x2b0   : > { %1817 = vst.msk [vmem:[#allocation3 + $0x10] sm:$0xff] %vm1814_vm7, %v1711_v0  ;;  %5157 = vmatpush.msra.mxu3 %v2105_v18 }
 0x2b1   : > { %2241 = vmatpush.msra.mxu0 %v2104_v19  ;;  %5158 = vmatpush.msra.mxu2 %v2104_v19 }
 0x2b2   : > { %5159 = vmatpush.msra.mxu3 %v2104_v19 }
 0x2b3   : > { %1923 = vrot.lane.b32.xlu0 %v6068_v44, %s5232_s8  ;;  %1925 = vrot.lane.b32.xlu1 %v5010_v20, %s5232_s8 }
 0x2b4   : > { %1927 = vrot.lane.b32.xlu2 %v5011_v24, %s5232_s8  ;;  %v5037_v24 = vld [vmem:[%s5288_s25 + $0x182] sm:$0xff] }
 0x2b5   : > { %v1550_v34 = vpop.permute.xlu0 %1549  ;;  %v1552_v21 = vpop.permute.xlu1 %1551 }
 0x2b6   : > { %1628 = vst.msk [vmem:[#allocation3 + $0xf0] sm:$0xff] %vm1597_vm6, %v1550_v34  ;;  %v1717_v39 = vpop.permute.xlu2 %1716 }
 0x2b7   : > { %1629 = vst.msk [vmem:[#allocation3 + $0xf8] sm:$0xff] %vm1597_vm6, %v1552_v21 }
 0x2b8   : > { %1820 = vst.msk [vmem:[#allocation3 + $0x28] sm:$0xff] %vm1814_vm7, %v1717_v39 }
 0x2bb   : > { %1929 = vrot.lane.b32.xlu0 %v6080_v30, %s5232_s8  ;;  %1931 = vrot.lane.b32.xlu1 %v5013_v22, %s5232_s8  ;;  %v5035_v22 = vld [vmem:[%s5288_s25 + $0x16a] sm:$0xff] }
 0x2bc   : > { %1933 = vrot.lane.b32.xlu2 %v5014_v46, %s5232_s8 }
 0x2bd   : > { %v1556_v44 = vpop.permute.xlu0 %1555  ;;  %v1558_v23 = vpop.permute.xlu1 %1557 }
 0x2be   : > { %1631 = vst.msk [vmem:[#allocation3 + $0x108] sm:$0xff] %vm1597_vm6, %v1556_v44  ;;  %v1723_v33 = vpop.permute.xlu2 %1722 }
 0x2bf   : > { %1632 = vst.msk [vmem:[#allocation3 + $0x110] sm:$0xff] %vm1597_vm6, %v1558_v23 }
 0x2c0   : > { %1823 = vst.msk [vmem:[#allocation3 + $0x40] sm:$0xff] %vm1814_vm7, %v1723_v33  ;;  %v5039_v33 = vld [vmem:[%s5288_s25 + $0x19a] sm:$0xff] }
 0x2c3   : > { %1935 = vrot.lane.b32.xlu0 %v5015_v38, %s5232_s8  ;;  %1937 = vrot.lane.b32.xlu1 %v5016_v47, %s5232_s8 }
 0x2c4   : > { %1939 = vrot.lane.b32.xlu2 %v5017_v53, %s5232_s8 }
 0x2c5   : > { %v1707_v30 = vpop.permute.xlu0 %1706  ;;  %v1709_v45 = vpop.permute.xlu1 %1708 }
 0x2c6   : > { %1815 = vst.msk [vmem:[#allocation3] sm:$0xff] %vm1814_vm7, %v1707_v30  ;;  %v1729_v54 = vpop.permute.xlu2 %1728  ;;  %v5040_v30 = vld [vmem:[%s5288_s25 + $0x1a2] sm:$0xff] }
 0x2c7   : > { %1816 = vst.msk [vmem:[#allocation3 + $0x8] sm:$0xff] %vm1814_vm7, %v1709_v45 }
 0x2c8   : > { %1826 = vst.msk [vmem:[#allocation3 + $0x58] sm:$0xff] %vm1814_vm7, %v1729_v54 }
 0x2cb   : > { %1941 = vrot.lane.b32.xlu0 %v5018_v60, %s5232_s8  ;;  %1943 = vrot.lane.b32.xlu1 %v5019_v52, %s5232_s8 }
 0x2cc   : > { %1945 = vrot.lane.b32.xlu2 %v5020_v63, %s5232_s8  ;;  %v5038_v63 = vld [vmem:[%s5288_s25 + $0x18a] sm:$0xff] }
 0x2cd   : > { %v1713_v42 = vpop.permute.xlu0 %1712  ;;  %v1715_v59 = vpop.permute.xlu1 %1714 }
 0x2ce   : > { %1818 = vst.msk [vmem:[#allocation3 + $0x18] sm:$0xff] %vm1814_vm7, %v1713_v42  ;;  %v1735_v50 = vpop.permute.xlu2 %1734 }
 0x2cf   : > { %1819 = vst.msk [vmem:[#allocation3 + $0x20] sm:$0xff] %vm1814_vm7, %v1715_v59 }
 0x2d0   : > { %1829 = vst.msk [vmem:[#allocation3 + $0x70] sm:$0xff] %vm1814_vm7, %v1735_v50 }
 0x2d3   : > { %1947 = vrot.lane.b32.xlu0 %v5021_v62, %s5232_s8  ;;  %1949 = vrot.lane.b32.xlu1 %v5022_v41, %s5232_s8 }
 0x2d4   : > { %1951 = vrot.lane.b32.xlu2 %v5023_v61, %s5232_s8 }
 0x2d5   : > { %v1719_v43 = vpop.permute.xlu0 %1718  ;;  %v1721_v55 = vpop.permute.xlu1 %1720 }
 0x2d6   : > { %1821 = vst.msk [vmem:[#allocation3 + $0x30] sm:$0xff] %vm1814_vm7, %v1719_v43  ;;  %v1741_v48 = vpop.permute.xlu2 %1740 }
 0x2d7   : > { %1822 = vst.msk [vmem:[#allocation3 + $0x38] sm:$0xff] %vm1814_vm7, %v1721_v55 }
 0x2d8   : > { %1832 = vst.msk [vmem:[#allocation3 + $0x88] sm:$0xff] %vm1814_vm7, %v1741_v48 }
 0x2db   : > { %1953 = vrot.lane.b32.xlu0 %v5024_v56, %s5232_s8  ;;  %1955 = vrot.lane.b32.xlu1 %v5025_v57, %s5232_s8 }
 0x2dc   : > { %1957 = vrot.lane.b32.xlu2 %v5026_v3, %s5232_s8 }
 0x2dd   : > { %v1725_v40 = vpop.permute.xlu0 %1724  ;;  %v1727_v35 = vpop.permute.xlu1 %1726 }
 0x2de   : > { %1824 = vst.msk [vmem:[#allocation3 + $0x48] sm:$0xff] %vm1814_vm7, %v1725_v40  ;;  %v1747_v51 = vpop.permute.xlu2 %1746 }
 0x2df   : > { %1825 = vst.msk [vmem:[#allocation3 + $0x50] sm:$0xff] %vm1814_vm7, %v1727_v35 }
 0x2e0   : > { %1835 = vst.msk [vmem:[#allocation3 + $0xa0] sm:$0xff] %vm1814_vm7, %v1747_v51 }
 0x2e3   : > { %1959 = vrot.lane.b32.xlu0 %v5027_v58, %s5232_s8  ;;  %1961 = vrot.lane.b32.xlu1 %v5028_v37, %s5232_s8 }
 0x2e4   : > { %1963 = vrot.lane.b32.xlu2 %v5029_v36, %s5232_s8 }
 0x2e5   : > { %v1731_v29 = vpop.permute.xlu0 %1730  ;;  %v1733_v32 = vpop.permute.xlu1 %1732 }
 0x2e6   : > { %1827 = vst.msk [vmem:[#allocation3 + $0x60] sm:$0xff] %vm1814_vm7, %v1731_v29  ;;  %v1753_v25 = vpop.permute.xlu2 %1752 }
 0x2e7   : > { %1828 = vst.msk [vmem:[#allocation3 + $0x68] sm:$0xff] %vm1814_vm7, %v1733_v32 }
 0x2e8   : > { %1838 = vst.msk [vmem:[#allocation3 + $0xb8] sm:$0xff] %vm1814_vm7, %v1753_v25 }
 0x2eb   : > { %1965 = vrot.lane.b32.xlu0 %v5030_v31, %s5232_s8  ;;  %1967 = vrot.lane.b32.xlu1 %v5031_v28, %s5232_s8 }
 0x2ec   : > { %1969 = vrot.lane.b32.xlu2 %v5032_v11, %s5232_s8 }
 0x2ed   : > { %v1737_v1 = vpop.permute.xlu0 %1736  ;;  %v1739_v4 = vpop.permute.xlu1 %1738 }
 0x2ee   : > { %1830 = vst.msk [vmem:[#allocation3 + $0x78] sm:$0xff] %vm1814_vm7, %v1737_v1  ;;  %v1759_v27 = vpop.permute.xlu2 %1758 }
 0x2ef   : > { %1831 = vst.msk [vmem:[#allocation3 + $0x80] sm:$0xff] %vm1814_vm7, %v1739_v4 }
 0x2f0   : > { %1841 = vst.msk [vmem:[#allocation3 + $0xd0] sm:$0xff] %vm1814_vm7, %v1759_v27 }
 0x2f3   : > { %1971 = vrot.lane.b32.xlu0 %v5033_v2, %s5232_s8  ;;  %1973 = vrot.lane.b32.xlu1 %v5034_v7, %s5232_s8 }
 0x2f4   : > { %1975 = vrot.lane.b32.xlu2 %v5035_v22, %s5232_s8  ;;  %v5042_v22 = vld [vmem:[%s5288_s25 + $0x1ba] sm:$0xff] }
 0x2f5   : > { %v1743_v5 = vpop.permute.xlu0 %1742  ;;  %v1745_v6 = vpop.permute.xlu1 %1744 }
 0x2f6   : > { %1833 = vst.msk [vmem:[#allocation3 + $0x90] sm:$0xff] %vm1814_vm7, %v1743_v5  ;;  %v1765_v8 = vpop.permute.xlu2 %1764 }
 0x2f7   : > { %1834 = vst.msk [vmem:[#allocation3 + $0x98] sm:$0xff] %vm1814_vm7, %v1745_v6 }
 0x2f8   : > { %1844 = vst.msk [vmem:[#allocation3 + $0xe8] sm:$0xff] %vm1814_vm7, %v1765_v8 }
 0x2fb   : > { %1977 = vrot.lane.b32.xlu0 %v5036_v17, %s5232_s8  ;;  %1979 = vrot.lane.b32.xlu1 %v5037_v24, %s5232_s8 }
 0x2fc   : > { %1981 = vrot.lane.b32.xlu2 %v5038_v63, %s5232_s8 }
 0x2fd   : > { %v1749_v9 = vpop.permute.xlu0 %1748  ;;  %v1751_v10 = vpop.permute.xlu1 %1750 }
 0x2fe   : > { %1836 = vst.msk [vmem:[#allocation3 + $0xa8] sm:$0xff] %vm1814_vm7, %v1749_v9  ;;  %v1771_v12 = vpop.permute.xlu2 %1770 }
 0x2ff   : > { %1837 = vst.msk [vmem:[#allocation3 + $0xb0] sm:$0xff] %vm1814_vm7, %v1751_v10 }
 0x300   : > { %1847 = vst.msk [vmem:[#allocation3 + $0x100] sm:$0xff] %vm1814_vm7, %v1771_v12 }
 0x303   : > { %1983 = vrot.lane.b32.xlu0 %v5039_v33, %s5232_s8  ;;  %1985 = vrot.lane.b32.xlu1 %v5040_v30, %s5232_s8  ;;  %v5043_v33 = vld [vmem:[%s5288_s25 + $0x1ca] sm:$0xff] }
 0x305   : > { %v1755_v13 = vpop.permute.xlu0 %1754  ;;  %v1757_v26 = vpop.permute.xlu1 %1756 }
 0x306   : > { %1839 = vst.msk [vmem:[#allocation3 + $0xc0] sm:$0xff] %vm1814_vm7, %v1755_v13  ;;  %v1777_v16 = vpop.permute.xlu2 %1776 }
 0x307   : > { %1840 = vst.msk [vmem:[#allocation3 + $0xc8] sm:$0xff] %vm1814_vm7, %v1757_v26 }
 0x308   : > { %1850 = vst.msk [vmem:[#allocation3 + $0x118] sm:$0xff] %vm1814_vm7, %v1777_v16 }
 0x30b   : > { %1989 = vrot.lane.b32.xlu0 %v5042_v22, %s5232_s8  ;;  %1991 = vrot.lane.b32.xlu1 %v5043_v33, %s5232_s8 }
 0x30d   : > { %v1761_v0 = vpop.permute.xlu0 %1760  ;;  %v1763_v20 = vpop.permute.xlu1 %1762 }
 0x30e   : > { %1842 = vst.msk [vmem:[#allocation3 + $0xd8] sm:$0xff] %vm1814_vm7, %v1761_v0  ;;  %v1928_v34 = vpop.permute.xlu2 %1927 }
 0x30f   : > { %1843 = vst.msk [vmem:[#allocation3 + $0xe0] sm:$0xff] %vm1814_vm7, %v1763_v20  ;;  %v5041_v20 = vld [vmem:[%s5288_s25 + $0x1b2] sm:$0xff] }
 0x310   : > { %2034 = vst.msk [vmem:[#allocation3 + $0x10] sm:$0xff] %vm2031_vm9, %v1928_v34  ;;  %1987 = vrot.lane.b32.xlu2 %v5041_v20, %s5232_s8 }
 0x315   : > { %v1767_v21 = vpop.permute.xlu0 %1766  ;;  %v1769_v39 = vpop.permute.xlu1 %1768 }
 0x316   : > { %1845 = vst.msk [vmem:[#allocation3 + $0xf0] sm:$0xff] %vm1814_vm7, %v1767_v21  ;;  %v1934_v46 = vpop.permute.xlu2 %1933 }
 0x317   : > { %1846 = vst.msk [vmem:[#allocation3 + $0xf8] sm:$0xff] %vm1814_vm7, %v1769_v39  ;;  %v2070_v43 = vld [vmem:[#allocation3 + $0x10] sm:$0xff]  ;;  %v5044_v39 = vld [vmem:[%s5288_s25 + $0x1d2] sm:$0xff] }
 0x318   : > { %2037 = vst.msk [vmem:[#allocation3 + $0x28] sm:$0xff] %vm2031_vm9, %v1934_v46  ;;  %1993 = vrot.lane.b32.xlu2 %v5044_v39, %s5232_s8  ;;  %v5233_v46 = vmov 0.0  }
 0x319   : > { %2641 = vst.msk [vmem:[#allocation2 + $0x1] sm:$0xff] %vm289_vm0, %v5233_v46 }
 0x31a   : > { %2642 = vst.msk [vmem:[#allocation2 + $0x9] sm:$0xff] %vm289_vm0, %v5233_v46 }
 0x31b   : > { %2675 = vst.msk [vmem:[#allocation2 + $0x199] sm:$0xff] %vm289_vm0, %v5233_v46 }
 0x31c   : > { %2676 = vst.msk [vmem:[#allocation2 + $0x1a1] sm:$0xff] %vm289_vm0, %v5233_v46 }
 0x31d   : > { %v1773_v44 = vpop.permute.xlu0 %1772  ;;  %v1775_v23 = vpop.permute.xlu1 %1774  ;;  %2606 = vst.msk [vmem:[#allocation2 + $0x18] sm:$0x1] %vm2604_vm11, %v5233_v46 }
 0x31e   : > { %1848 = vst.msk [vmem:[#allocation3 + $0x108] sm:$0xff] %vm1814_vm7, %v1773_v44  ;;  %v1940_v38 = vpop.permute.xlu2 %1939 }
 0x31f   : > { %1849 = vst.msk [vmem:[#allocation3 + $0x110] sm:$0xff] %vm1814_vm7, %v1775_v23  ;;  %v2073_v29 = vld [vmem:[#allocation3 + $0x28] sm:$0xff] }
 0x320   : > { %2040 = vst.msk [vmem:[#allocation3 + $0x40] sm:$0xff] %vm2031_vm9, %v1940_v38  ;;  %v2741_v38 = vld [vmem:[#allocation2 + $0x1] sm:$0xff] }
 0x321   : > { %2605 = vst.msk [vmem:[#allocation2] sm:$0x1] %vm2604_vm11, %v5233_v46  ;;  %2805 = vrot.lane.b32.xlu0 %v2741_v38, %s5225_s26 }
 0x322   : > { %2607 = vst.msk [vmem:[#allocation2 + $0x30] sm:$0x1] %vm2604_vm11, %v5233_v46 }
 0x323   : > { %2608 = vst.msk [vmem:[#allocation2 + $0x48] sm:$0x1] %vm2604_vm11, %v5233_v46 }
 0x324   : > { %2609 = vst.msk [vmem:[#allocation2 + $0x60] sm:$0x1] %vm2604_vm11, %v5233_v46 }
 0x325   : > { %v1924_v47 = vpop.permute.xlu0 %1923  ;;  %v1926_v53 = vpop.permute.xlu1 %1925  ;;  %2610 = vst.msk [vmem:[#allocation2 + $0x78] sm:$0x1] %vm2604_vm11, %v5233_v46 }
 0x326   : > { %2032 = vst.msk [vmem:[#allocation3] sm:$0xff] %vm2031_vm9, %v1924_v47  ;;  %v1946_v45 = vpop.permute.xlu2 %1945 }
 0x327   : > { %2033 = vst.msk [vmem:[#allocation3 + $0x8] sm:$0xff] %vm2031_vm9, %v1926_v53  ;;  %v2076_v7 = vld [vmem:[#allocation3 + $0x40] sm:$0xff] }
 0x328   : > { %2043 = vst.msk [vmem:[#allocation3 + $0x58] sm:$0xff] %vm2031_vm9, %v1946_v45  ;;  %v2742_v45 = vld [vmem:[#allocation2 + $0x9] sm:$0xff] }
 0x329   : > { %2611 = vst.msk [vmem:[#allocation2 + $0x90] sm:$0x1] %vm2604_vm11, %v5233_v46  ;;  %2807 = vrot.lane.b32.xlu1 %v2742_v45, %s5225_s26 }
 0x32a   : > { %2612 = vst.msk [vmem:[#allocation2 + $0xa8] sm:$0x1] %vm2604_vm11, %v5233_v46 }
 0x32b   : > { %2613 = vst.msk [vmem:[#allocation2 + $0xc0] sm:$0x1] %vm2604_vm11, %v5233_v46 }
 0x32c   : > { %2614 = vst.msk [vmem:[#allocation2 + $0xd8] sm:$0x1] %vm2604_vm11, %v5233_v46 }
 0x32d   : > { %v1930_v54 = vpop.permute.xlu0 %1929  ;;  %v2068_v60 = vld [vmem:[#allocation3] sm:$0xff]  ;;  %v1932_v52 = vpop.permute.xlu1 %1931  ;;  %2615 = vst.msk [vmem:[#allocation2 + $0xf0] sm:$0x1] %vm2604_vm11, %v5233_v46 }
 0x32e   : > { %2035 = vst.msk [vmem:[#allocation3 + $0x18] sm:$0xff] %vm2031_vm9, %v1930_v54  ;;  %5046 = vmatmul.msk.f32.vlgmr.msra.gmra.mxu0 %vm2113_vm10, %v2068_v60  ;;  %v1952_v42 = vpop.permute.xlu2 %1951  ;;  %v2069_v59 = vld [vmem:[#allocation3 + $0x8] sm:$0xff] }
 0x32f   : > { %2036 = vst.msk [vmem:[#allocation3 + $0x20] sm:$0xff] %vm2031_vm9, %v1932_v52  ;;  %v2079_v14 = vld [vmem:[#allocation3 + $0x58] sm:$0xff]  ;;  %v6639_v52 = vld [vmem:[%s7845_s2] ss:$0 sm:$0xff] }
 0x330   : > { %2046 = vst.msk [vmem:[#allocation3 + $0x70] sm:$0xff] %vm2031_vm9, %v1952_v42 }
 0x331   : > { %2616 = vst.msk [vmem:[#allocation2 + $0x108] sm:$0x1] %vm2604_vm11, %v5233_v46 }
 0x332   : > { %2617 = vst.msk [vmem:[#allocation2 + $0x120] sm:$0x1] %vm2604_vm11, %v5233_v46 }
 0x333   : > { %2618 = vst.msk [vmem:[#allocation2 + $0x138] sm:$0x1] %vm2604_vm11, %v5233_v46 }
 0x334   : > { %2619 = vst.msk [vmem:[#allocation2 + $0x150] sm:$0x1] %vm2604_vm11, %v5233_v46 }
 0x335   : > { %v1936_v50 = vpop.permute.xlu0 %1935  ;;  %v1938_v62 = vpop.permute.xlu1 %1937  ;;  %v2071_v3 = vld [vmem:[#allocation3 + $0x18] sm:$0xff]  ;;  %2620 = vst.msk [vmem:[#allocation2 + $0x168] sm:$0x1] %vm2604_vm11, %v5233_v46 }
 0x336   : > { %2038 = vst.msk [vmem:[#allocation3 + $0x30] sm:$0xff] %vm2031_vm9, %v1936_v50  ;;  %5047 = vmatmul.msk.f32.gmra.mxu0 %vm2113_vm10, %v2069_v59  ;;  %v1958_v41 = vpop.permute.xlu2 %1957  ;;  %v2072_v51 = vld [vmem:[#allocation3 + $0x20] sm:$0xff] }
 0x337   : > { %2039 = vst.msk [vmem:[#allocation3 + $0x38] sm:$0xff] %vm2031_vm9, %v1938_v62  ;;  %v2082_v34 = vld [vmem:[#allocation3 + $0x70] sm:$0xff] }
 0x338   : > { %2049 = vst.msk [vmem:[#allocation3 + $0x88] sm:$0xff] %vm2031_vm9, %v1958_v41 }
 0x339   : > { %2621 = vst.msk [vmem:[#allocation2 + $0x180] sm:$0x1] %vm2604_vm11, %v5233_v46 }
 0x33a   : > { %2622 = vst.msk [vmem:[#allocation2 + $0x198] sm:$0x1] %vm2604_vm11, %v5233_v46 }
 0x33b   : > { %2623 = vst.msk [vmem:[#allocation2 + $0x11] sm:$0x1] %vm2604_vm11, %v5233_v46 }
 0x33c   : > { %2624 = vst.msk [vmem:[#allocation2 + $0x29] sm:$0x1] %vm2604_vm11, %v5233_v46 }
 0x33d   : > { %v1942_v61 = vpop.permute.xlu0 %1941  ;;  %v1944_v55 = vpop.permute.xlu1 %1943  ;;  %v2074_v25 = vld [vmem:[#allocation3 + $0x30] sm:$0xff]  ;;  %2625 = vst.msk [vmem:[#allocation2 + $0x41] sm:$0x1] %vm2604_vm11, %v5233_v46 }
 0x33e   : > { %2041 = vst.msk [vmem:[#allocation3 + $0x48] sm:$0xff] %vm2031_vm9, %v1942_v61  ;;  %5048 = vmatmul.msk.f32.gmra.mxu0 %vm2113_vm10, %v2070_v43  ;;  %v1964_v56 = vpop.permute.xlu2 %1963  ;;  %v2075_v27 = vld [vmem:[#allocation3 + $0x38] sm:$0xff] }
 0x33f   : > { %2042 = vst.msk [vmem:[#allocation3 + $0x50] sm:$0xff] %vm2031_vm9, %v1944_v55  ;;  %v2085_v48 = vld [vmem:[#allocation3 + $0x88] sm:$0xff] }
 0x340   : > { %5063 = vmatmul.msk.f32.vlgmr.msra.gmra.mxu2 %vm2113_vm10, %v2085_v48  ;;  %2052 = vst.msk [vmem:[#allocation3 + $0xa0] sm:$0xff] %vm2031_vm9, %v1964_v56 }
 0x341   : > { %2626 = vst.msk [vmem:[#allocation2 + $0x59] sm:$0x1] %vm2604_vm11, %v5233_v46 }
 0x342   : > { %2627 = vst.msk [vmem:[#allocation2 + $0x71] sm:$0x1] %vm2604_vm11, %v5233_v46 }
 0x343   : > { %2628 = vst.msk [vmem:[#allocation2 + $0x89] sm:$0x1] %vm2604_vm11, %v5233_v46 }
 0x344   : > { %2629 = vst.msk [vmem:[#allocation2 + $0xa1] sm:$0x1] %vm2604_vm11, %v5233_v46 }
 0x345   : > { %v1948_v57 = vpop.permute.xlu0 %1947  ;;  %v1950_v40 = vpop.permute.xlu1 %1949  ;;  %v2077_v10 = vld [vmem:[#allocation3 + $0x48] sm:$0xff]  ;;  %2630 = vst.msk [vmem:[#allocation2 + $0xb9] sm:$0x1] %vm2604_vm11, %v5233_v46 }
 0x346   : > { %2044 = vst.msk [vmem:[#allocation3 + $0x60] sm:$0xff] %vm2031_vm9, %v1948_v57  ;;  %5049 = vmatmul.msk.f32.gmra.mxu0 %vm2113_vm10, %v2071_v3  ;;  %v1970_v36 = vpop.permute.xlu2 %1969  ;;  %v2078_v12 = vld [vmem:[#allocation3 + $0x50] sm:$0xff] }
 0x347   : > { %2045 = vst.msk [vmem:[#allocation3 + $0x68] sm:$0xff] %vm2031_vm9, %v1950_v40  ;;  %v2088_v6 = vld [vmem:[#allocation3 + $0xa0] sm:$0xff] }
 0x348   : > { %2055 = vst.msk [vmem:[#allocation3 + $0xb8] sm:$0xff] %vm2031_vm9, %v1970_v36 }
 0x349   : > { %2631 = vst.msk [vmem:[#allocation2 + $0xd1] sm:$0x1] %vm2604_vm11, %v5233_v46 }
 0x34a   : > { %2632 = vst.msk [vmem:[#allocation2 + $0xe9] sm:$0x1] %vm2604_vm11, %v5233_v46 }
 0x34b   : > { %2633 = vst.msk [vmem:[#allocation2 + $0x101] sm:$0x1] %vm2604_vm11, %v5233_v46 }
 0x34c   : > { %2634 = vst.msk [vmem:[#allocation2 + $0x119] sm:$0x1] %vm2604_vm11, %v5233_v46 }
 0x34d   : > { %v1954_v35 = vpop.permute.xlu0 %1953  ;;  %v1956_v58 = vpop.permute.xlu1 %1955  ;;  %v2080_v17 = vld [vmem:[#allocation3 + $0x60] sm:$0xff]  ;;  %2635 = vst.msk [vmem:[#allocation2 + $0x131] sm:$0x1] %vm2604_vm11, %v5233_v46 }
 0x34e   : > { %2047 = vst.msk [vmem:[#allocation3 + $0x78] sm:$0xff] %vm2031_vm9, %v1954_v35  ;;  %5050 = vmatmul.msk.f32.gmra.mxu0 %vm2113_vm10, %v2072_v51  ;;  %v1976_v8 = vpop.permute.xlu2 %1975  ;;  %v2081_v0 = vld [vmem:[#allocation3 + $0x68] sm:$0xff] }
 0x34f   : > { %2048 = vst.msk [vmem:[#allocation3 + $0x80] sm:$0xff] %vm2031_vm9, %v1956_v58  ;;  %v2091_v26 = vld [vmem:[#allocation3 + $0xb8] sm:$0xff] }
 0x350   : > { %2058 = vst.msk [vmem:[#allocation3 + $0xd0] sm:$0xff] %vm2031_vm9, %v1976_v8 }
 0x351   : > { %2636 = vst.msk [vmem:[#allocation2 + $0x149] sm:$0x1] %vm2604_vm11, %v5233_v46 }
 0x352   : > { %2637 = vst.msk [vmem:[#allocation2 + $0x161] sm:$0x1] %vm2604_vm11, %v5233_v46 }
 0x353   : > { %2638 = vst.msk [vmem:[#allocation2 + $0x179] sm:$0x1] %vm2604_vm11, %v5233_v46 }
 0x354   : > { %2639 = vst.msk [vmem:[#allocation2 + $0x191] sm:$0x1] %vm2604_vm11, %v5233_v46 }
 0x355   : > { %v1960_v37 = vpop.permute.xlu0 %1959  ;;  %v1962_v32 = vpop.permute.xlu1 %1961  ;;  %v2083_v23 = vld [vmem:[#allocation3 + $0x78] sm:$0xff]  ;;  %2640 = vst.msk [vmem:[#allocation2 + $0x1a9] sm:$0x1] %vm2604_vm11, %v5233_v46 }
 0x356   : > { %2050 = vst.msk [vmem:[#allocation3 + $0x90] sm:$0xff] %vm2031_vm9, %v1960_v37  ;;  %5051 = vmatmul.msk.f32.gmra.mxu0 %vm2113_vm10, %v2073_v29  ;;  %v1982_v16 = vpop.permute.xlu2 %1981  ;;  %v2084_v30 = vld [vmem:[#allocation3 + $0x80] sm:$0xff] }
 0x357   : > { %2051 = vst.msk [vmem:[#allocation3 + $0x98] sm:$0xff] %vm2031_vm9, %v1962_v32  ;;  %v2094_v24 = vld [vmem:[#allocation3 + $0xd0] sm:$0xff] }
 0x358   : > { %2061 = vst.msk [vmem:[#allocation3 + $0xe8] sm:$0xff] %vm2031_vm9, %v1982_v16 }
 0x35d   : > { %v2086_v31 = vld [vmem:[#allocation3 + $0x90] sm:$0xff]  ;;  %v1966_v28 = vpop.permute.xlu0 %1965  ;;  %v1968_v1 = vpop.permute.xlu1 %1967 }
 0x35e   : > { %5052 = vmatmul.msk.f32.gmra.mxu0 %vm2113_vm10, %v2074_v25  ;;  %5064 = vmatmul.msk.f32.gmra.mxu2 %vm2113_vm10, %v2086_v31  ;;  %2053 = vst.msk [vmem:[#allocation3 + $0xa8] sm:$0xff] %vm2031_vm9, %v1966_v28  ;;  %v2087_v4 = vld [vmem:[#allocation3 + $0x98] sm:$0xff] }
 0x35f   : > { %2054 = vst.msk [vmem:[#allocation3 + $0xb0] sm:$0xff] %vm2031_vm9, %v1968_v1  ;;  %v2097_v60 = vld [vmem:[#allocation3 + $0xe8] sm:$0xff] }
 0x365   : > { %v1972_v2 = vpop.permute.xlu0 %1971  ;;  %v1974_v5 = vpop.permute.xlu1 %1973  ;;  %v2089_v9 = vld [vmem:[#allocation3 + $0xa8] sm:$0xff] }
 0x366   : > { %5053 = vmatmul.msk.f32.gmra.mxu0 %vm2113_vm10, %v2075_v27  ;;  %5065 = vmatmul.msk.f32.gmra.mxu2 %vm2113_vm10, %v2087_v4  ;;  %2056 = vst.msk [vmem:[#allocation3 + $0xc0] sm:$0xff] %vm2031_vm9, %v1972_v2  ;;  %v2090_v49 = vld [vmem:[#allocation3 + $0xb0] sm:$0xff] }
 0x367   : > { %2057 = vst.msk [vmem:[#allocation3 + $0xc8] sm:$0xff] %vm2031_vm9, %v1974_v5 }
 0x36d   : > { %v1978_v11 = vpop.permute.xlu0 %1977  ;;  %v1980_v13 = vpop.permute.xlu1 %1979  ;;  %v2092_v15 = vld [vmem:[#allocation3 + $0xc0] sm:$0xff] }
 0x36e   : > { %5054 = vmatmul.msk.f32.gmra.mxu0 %vm2113_vm10, %v2076_v7  ;;  %5066 = vmatmul.msk.f32.gmra.mxu2 %vm2113_vm10, %v2088_v6  ;;  %2059 = vst.msk [vmem:[#allocation3 + $0xd8] sm:$0xff] %vm2031_vm9, %v1978_v11  ;;  %v2093_v18 = vld [vmem:[#allocation3 + $0xc8] sm:$0xff] }
 0x36f   : > { %2060 = vst.msk [vmem:[#allocation3 + $0xe0] sm:$0xff] %vm2031_vm9, %v1980_v13 }
 0x375   : > { %v1984_v19 = vpop.permute.xlu0 %1983  ;;  %v1986_v21 = vpop.permute.xlu1 %1985  ;;  %v2095_v44 = vld [vmem:[#allocation3 + $0xd8] sm:$0xff] }
 0x376   : > { %5055 = vmatmul.msk.f32.gmra.mxu0 %vm2113_vm10, %v2077_v10  ;;  %5067 = vmatmul.msk.f32.gmra.mxu2 %vm2113_vm10, %v2089_v9  ;;  %2062 = vst.msk [vmem:[#allocation3 + $0xf0] sm:$0xff] %vm2031_vm9, %v1984_v19  ;;  %v2096_v53 = vld [vmem:[#allocation3 + $0xe0] sm:$0xff] }
 0x377   : > { %2063 = vst.msk [vmem:[#allocation3 + $0xf8] sm:$0xff] %vm2031_vm9, %v1986_v21 }
 0x37d   : > { %v2098_v42 = vld [vmem:[#allocation3 + $0xf0] sm:$0xff] }
 0x37e   : > { %5056 = vmatmul.msk.f32.gmra.mxu0 %vm2113_vm10, %v2078_v12  ;;  %5068 = vmatmul.msk.f32.gmra.mxu2 %vm2113_vm10, %v2090_v49  ;;  %v2099_v61 = vld [vmem:[#allocation3 + $0xf8] sm:$0xff] }
 0x386   : > { %5057 = vmatmul.msk.f32.gmra.mxu0 %vm2113_vm10, %v2079_v14  ;;  %5069 = vmatmul.msk.f32.gmra.mxu2 %vm2113_vm10, %v2091_v26 }
 0x38e   : > { %5058 = vmatmul.msk.f32.gmra.mxu0 %vm2113_vm10, %v2080_v17  ;;  %5070 = vmatmul.msk.f32.gmra.mxu2 %vm2113_vm10, %v2092_v15 }
 0x396   : > { %5059 = vmatmul.msk.f32.gmra.mxu0 %vm2113_vm10, %v2081_v0  ;;  %5071 = vmatmul.msk.f32.gmra.mxu2 %vm2113_vm10, %v2093_v18 }
 0x39e   : > { %5060 = vmatmul.msk.f32.gmra.mxu0 %vm2113_vm10, %v2082_v34  ;;  %5072 = vmatmul.msk.f32.gmra.mxu2 %vm2113_vm10, %v2094_v24 }
 0x3a6   : > { %5061 = vmatmul.msk.f32.gmra.mxu0 %vm2113_vm10, %v2083_v23  ;;  %5073 = vmatmul.msk.f32.gmra.mxu2 %vm2113_vm10, %v2095_v44 }
 0x3ab   : > { %v2243_v47 = vpop.f32.mrf.mxu0 }
 0x3ae   : > { %5062 = vmatmul.msk.f32.gmra.mxu0 %vm2113_vm10, %v2084_v30  ;;  %5074 = vmatmul.msk.f32.gmra.mxu2 %vm2113_vm10, %v2096_v53  ;;  %v1988_v53 = vpop.permute.xlu2 %1987 }
 0x3af   : > { %2064 = vst.msk [vmem:[#allocation3 + $0x100] sm:$0xff] %vm2031_vm9, %v1988_v53 }
 0x3b3   : > { %v2246_v54 = vpop.f32.mrf.mxu0 }
 0x3b6   : > { %5075 = vmatmul.msk.f32.gmra.mxu2 %vm2113_vm10, %v2097_v60 }
 0x3bb   : > { %v2249_v63 = vpop.f32.mrf.mxu0 }
 0x3bc   : > { %v2250_v59 = vadd.f32 %v6639_v52, %v2249_v63 }
 0x3be   : > { %vm2353_vm12 = vcmp.ge.f32.partialorder %v2250_v59, 0.0  ;;  %v2389_v50 = vmul.f32 0.1, %v2250_v59  ;;  %5076 = vmatmul.msk.f32.gmra.mxu2 %vm2113_vm10, %v2098_v42 }
 0x3c0   : > { %v2425_v62 = vsel %vm2353_vm12, %v2250_v59, %v2389_v50 }
 0x3c1   : > { %2643 = vst.msk [vmem:[#allocation2 + $0x19] sm:$0xff] %vm289_vm0, %v2425_v62 }
 0x3c3   : > { %v2252_v41 = vpop.f32.mrf.mxu0  ;;  %v2294_v43 = vpop.f32.mrf.mxu2 }
 0x3c4   : > { %v2253_v55 = vadd.f32 %v6639_v52, %v2252_v41  ;;  %v2295_v48 = vadd.f32 %v6639_v52, %v2294_v43  ;;  %v1994_v43 = vpop.permute.xlu2 %1993 }
 0x3c5   : > { %2067 = vst.msk [vmem:[#allocation3 + $0x118] sm:$0xff] %vm2031_vm9, %v1994_v43 }
 0x3c6   : > { %vm2354_vm13 = vcmp.ge.f32.partialorder %v2253_v55, 0.0  ;;  %v2390_v56 = vmul.f32 0.1, %v2253_v55  ;;  %5077 = vmatmul.msk.f32.gmra.mxu2 %vm2113_vm10, %v2099_v61  ;;  %vm2368_vm14 = vcmp.ge.f32.partialorder %v2295_v48, 0.0  ;;  %v2404_v57 = vmul.f32 0.1, %v2295_v48 }
 0x3c8   : > { %v2426_v3 = vsel %vm2354_vm13, %v2253_v55, %v2390_v56  ;;  %v2743_v40 = vld [vmem:[#allocation2 + $0x19] sm:$0xff]  ;;  %v2440_v35 = vsel %vm2368_vm14, %v2295_v48, %v2404_v57 }
 0x3c9   : > { %v6675_v51 = vld [vmem:[#allocation2 + $0x18] sm:$0xff]  ;;  %2644 = vst.msk [vmem:[#allocation2 + $0x21] sm:$0xff] %vm289_vm0, %v2426_v3  ;;  %2809 = vrot.lane.b32.xlu2 %v2743_v40, %s5225_s26 }
 0x3ca   : > { %2658 = vst.msk [vmem:[#allocation2 + $0xc9] sm:$0xff] %vm289_vm0, %v2440_v35 }
 0x3cb   : > { %v2255_v58 = vpop.f32.mrf.mxu0  ;;  %2711 = vst.msk [vmem:[#allocation4 + $0x10] sm:$0xff] %vm289_vm0, %v6675_v51 }
 0x3cc   : > { %v2256_v37 = vadd.f32 %v6639_v52, %v2255_v58 }
 0x3ce   : > { %vm2355_vm15 = vcmp.ge.f32.partialorder %v2256_v37, 0.0  ;;  %v2391_v29 = vmul.f32 0.1, %v2256_v37 }
 0x3d0   : > { %v2427_v32 = vsel %vm2355_vm15, %v2256_v37, %v2391_v29  ;;  %v2744_v36 = vld [vmem:[#allocation2 + $0x21] sm:$0xff] }
 0x3d1   : > { %v6689_v25 = vld [vmem:[#allocation2 + $0x20] sm:$0xff]  ;;  %2645 = vst.msk [vmem:[#allocation2 + $0x31] sm:$0xff] %vm289_vm0, %v2427_v32  ;;  %2811 = vrot.lane.b32.xlu0 %v2744_v36, %s5225_s26 }
 0x3d2   : > { %2712 = vst.msk [vmem:[#allocation4 + $0x18] sm:$0xff] %vm289_vm0, %v6689_v25 }
 0x3d3   : > { %v2258_v31 = vpop.f32.mrf.mxu0 }
 0x3d4   : > { %v2259_v28 = vadd.f32 %v6639_v52, %v2258_v31 }
 0x3d6   : > { %vm2356_vm12 = vcmp.ge.f32.partialorder %v2259_v28, 0.0  ;;  %v2392_v1 = vmul.f32 0.1, %v2259_v28 }
 0x3d8   : > { %v2428_v4 = vsel %vm2356_vm12, %v2259_v28, %v2392_v1  ;;  %v2745_v27 = vld [vmem:[#allocation2 + $0x31] sm:$0xff] }
 0x3d9   : > { %v6696_v2 = vld [vmem:[#allocation2 + $0x30] sm:$0xff]  ;;  %2646 = vst.msk [vmem:[#allocation2 + $0x39] sm:$0xff] %vm289_vm0, %v2428_v4  ;;  %2813 = vrot.lane.b32.xlu1 %v2745_v27, %s5225_s26 }
 0x3da   : > { %2713 = vst.msk [vmem:[#allocation4 + $0x20] sm:$0xff] %vm289_vm0, %v6696_v2 }
 0x3db   : > { %v2261_v5 = vpop.f32.mrf.mxu0 }
 0x3dc   : > { %v2262_v6 = vadd.f32 %v6639_v52, %v2261_v5 }
 0x3de   : > { %vm2357_vm11 = vcmp.ge.f32.partialorder %v2262_v6, 0.0  ;;  %v2393_v7 = vmul.f32 0.1, %v2262_v6 }
 0x3e0   : > { %v2429_v8 = vsel %vm2357_vm11, %v2262_v6, %v2393_v7  ;;  %v2746_v9 = vld [vmem:[#allocation2 + $0x39] sm:$0xff] }
 0x3e1   : > { %v6703_v10 = vld [vmem:[#allocation2 + $0x38] sm:$0xff]  ;;  %2647 = vst.msk [vmem:[#allocation2 + $0x49] sm:$0xff] %vm289_vm0, %v2429_v8  ;;  %v2297_v11 = vpop.f32.mrf.mxu2  ;;  %2815 = vrot.lane.b32.xlu2 %v2746_v9, %s5225_s26 }
 0x3e2   : > { %v2298_v49 = vadd.f32 %v6639_v52, %v2297_v11  ;;  %2714 = vst.msk [vmem:[#allocation4 + $0x28] sm:$0xff] %vm289_vm0, %v6703_v10 }
 0x3e3   : > { %v2264_v12 = vpop.f32.mrf.mxu0 }
 0x3e4   : > { %vm2369_vm13 = vcmp.ge.f32.partialorder %v2298_v49, 0.0  ;;  %v2405_v13 = vmul.f32 0.1, %v2298_v49  ;;  %v2265_v26 = vadd.f32 %v6639_v52, %v2264_v12 }
 0x3e6   : > { %v2441_v14 = vsel %vm2369_vm13, %v2298_v49, %v2405_v13  ;;  %vm2358_vm14 = vcmp.ge.f32.partialorder %v2265_v26, 0.0  ;;  %v2394_v15 = vmul.f32 0.1, %v2265_v26 }
 0x3e7   : > { %2659 = vst.msk [vmem:[#allocation2 + $0xd9] sm:$0xff] %vm289_vm0, %v2441_v14 }
 0x3e8   : > { %v2430_v16 = vsel %vm2358_vm14, %v2265_v26, %v2394_v15  ;;  %v2747_v17 = vld [vmem:[#allocation2 + $0x49] sm:$0xff] }
 0x3e9   : > { %v6712_v18 = vld [vmem:[#allocation2 + $0x48] sm:$0xff]  ;;  %2648 = vst.msk [vmem:[#allocation2 + $0x51] sm:$0xff] %vm289_vm0, %v2430_v16  ;;  %v2300_v19 = vpop.f32.mrf.mxu2  ;;  %2817 = vrot.lane.b32.xlu0 %v2747_v17, %s5225_s26 }
 0x3ea   : > { %v2301_v0 = vadd.f32 %v6639_v52, %v2300_v19  ;;  %2715 = vst.msk [vmem:[#allocation4 + $0x30] sm:$0xff] %vm289_vm0, %v6712_v18 }
 0x3eb   : > { %v2267_v20 = vpop.f32.mrf.mxu0 }
 0x3ec   : > { %vm2370_vm15 = vcmp.ge.f32.partialorder %v2301_v0, 0.0  ;;  %v2406_v24 = vmul.f32 0.1, %v2301_v0  ;;  %v2268_v34 = vadd.f32 %v6639_v52, %v2267_v20 }
 0x3ee   : > { %v2442_v21 = vsel %vm2370_vm15, %v2301_v0, %v2406_v24  ;;  %vm2359_vm12 = vcmp.ge.f32.partialorder %v2268_v34, 0.0  ;;  %v2395_v39 = vmul.f32 0.1, %v2268_v34  ;;  %v6720_v22 = vld [vmem:[#allocation2 + $0xd8] sm:$0xff] }
 0x3ef   : > { %2660 = vst.msk [vmem:[#allocation2 + $0xe1] sm:$0xff] %vm289_vm0, %v2442_v21 }
 0x3f0   : > { %v2431_v46 = vsel %vm2359_vm12, %v2268_v34, %v2395_v39  ;;  %v2748_v44 = vld [vmem:[#allocation2 + $0x51] sm:$0xff]  ;;  %2727 = vst.msk [vmem:[#allocation4 + $0x90] sm:$0xff] %vm289_vm0, %v6720_v22  ;;  %v1990_v34 = vpop.permute.xlu0 %1989 }
 0x3f1   : > { %v6723_v23 = vld [vmem:[#allocation2 + $0x50] sm:$0xff]  ;;  %2649 = vst.msk [vmem:[#allocation2 + $0x61] sm:$0xff] %vm289_vm0, %v2431_v46  ;;  %v2303_v33 = vpop.f32.mrf.mxu2  ;;  %2819 = vrot.lane.b32.xlu1 %v2748_v44, %s5225_s26 }
 0x3f2   : > { %v2304_v38 = vadd.f32 %v6639_v52, %v2303_v33  ;;  %2716 = vst.msk [vmem:[#allocation4 + $0x38] sm:$0xff] %vm289_vm0, %v6723_v23 }
 0x3f3   : > { %v2270_v47 = vpop.f32.mrf.mxu0  ;;  %2065 = vst.msk [vmem:[#allocation3 + $0x108] sm:$0xff] %vm2031_vm9, %v1990_v34 }
 0x3f4   : > { %vm2371_vm11 = vcmp.ge.f32.partialorder %v2304_v38, 0.0  ;;  %v2407_v30 = vmul.f32 0.1, %v2304_v38  ;;  %v2271_v45 = vadd.f32 %v6639_v52, %v2270_v47 }
 0x3f6   : > { %v2443_v54 = vsel %vm2371_vm11, %v2304_v38, %v2407_v30  ;;  %vm2360_vm13 = vcmp.ge.f32.partialorder %v2271_v45, 0.0  ;;  %v2396_v60 = vmul.f32 0.1, %v2271_v45  ;;  %v6735_v63 = vld [vmem:[#allocation2 + $0xe0] sm:$0xff] }
 0x3f7   : > { %2661 = vst.msk [vmem:[#allocation2 + $0xf1] sm:$0xff] %vm289_vm0, %v2443_v54 }
 0x3f8   : > { %v2432_v42 = vsel %vm2360_vm13, %v2271_v45, %v2396_v60  ;;  %v2749_v59 = vld [vmem:[#allocation2 + $0x61] sm:$0xff]  ;;  %2728 = vst.msk [vmem:[#allocation4 + $0x98] sm:$0xff] %vm289_vm0, %v6735_v63  ;;  %v1992_v60 = vpop.permute.xlu1 %1991 }
 0x3f9   : > { %v6737_v50 = vld [vmem:[#allocation2 + $0x60] sm:$0xff]  ;;  %2650 = vst.msk [vmem:[#allocation2 + $0x69] sm:$0xff] %vm289_vm0, %v2432_v42  ;;  %v2306_v62 = vpop.f32.mrf.mxu2  ;;  %2821 = vrot.lane.b32.xlu2 %v2749_v59, %s5225_s26 }
 0x3fa   : > { %v2307_v41 = vadd.f32 %v6639_v52, %v2306_v62  ;;  %2717 = vst.msk [vmem:[#allocation4 + $0x40] sm:$0xff] %vm289_vm0, %v6737_v50  ;;  %v2677_v62 = vld [vmem:[#allocation2] sm:$0xff] }
 0x3fb   : > { %v2273_v61 = vpop.f32.mrf.mxu0  ;;  %2066 = vst.msk [vmem:[#allocation3 + $0x110] sm:$0xff] %vm2031_vm9, %v1992_v60 }
 0x3fc   : > { %vm2372_vm14 = vcmp.ge.f32.partialorder %v2307_v41, 0.0  ;;  %v2408_v55 = vmul.f32 0.1, %v2307_v41  ;;  %v2274_v48 = vadd.f32 %v6639_v52, %v2273_v61  ;;  %2709 = vst.msk [vmem:[#allocation4] sm:$0xff] %vm289_vm0, %v2677_v62 }
 0x3fe   : > { %v2444_v56 = vsel %vm2372_vm14, %v2307_v41, %v2408_v55  ;;  %vm2361_vm15 = vcmp.ge.f32.partialorder %v2274_v48, 0.0  ;;  %v2397_v57 = vmul.f32 0.1, %v2274_v48  ;;  %v6748_v3 = vld [vmem:[#allocation2 + $0xf0] sm:$0xff]  ;;  %v2806_v55 = vpop.permute.xlu0 %2805 }
 0x3ff   : > { %2662 = vst.msk [vmem:[#allocation2 + $0xf9] sm:$0xff] %vm289_vm0, %v2444_v56 }
 0x400   : > { %v2433_v40 = vsel %vm2361_vm15, %v2274_v48, %v2397_v57  ;;  %v2750_v35 = vld [vmem:[#allocation2 + $0x69] sm:$0xff]  ;;  %2729 = vst.msk [vmem:[#allocation4 + $0xa0] sm:$0xff] %vm289_vm0, %v6748_v3 }
 0x401   : > { %v6751_v58 = vld [vmem:[#allocation2 + $0x68] sm:$0xff]  ;;  %2651 = vst.msk [vmem:[#allocation2 + $0x79] sm:$0xff] %vm289_vm0, %v2433_v40  ;;  %v2309_v37 = vpop.f32.mrf.mxu2  ;;  %2823 = vrot.lane.b32.xlu0 %v2750_v35, %s5225_s26 }
 0x402   : > { %v2310_v29 = vadd.f32 %v6639_v52, %v2309_v37  ;;  %2718 = vst.msk [vmem:[#allocation4 + $0x48] sm:$0xff] %vm289_vm0, %v6751_v58 }
 0x403   : > { %v2276_v32 = vpop.f32.mrf.mxu0  ;;  %2901 = vst.msk [vmem:[#allocation4] sm:$0xff] %vm506_vm1, %v2806_v55 }
 0x404   : > { %vm2373_vm12 = vcmp.ge.f32.partialorder %v2310_v29, 0.0  ;;  %v2409_v36 = vmul.f32 0.1, %v2310_v29  ;;  %v2277_v31 = vadd.f32 %v6639_v52, %v2276_v32 }
 0x406   : > { %v2445_v28 = vsel %vm2373_vm12, %v2310_v29, %v2409_v36  ;;  %vm2362_vm11 = vcmp.ge.f32.partialorder %v2277_v31, 0.0  ;;  %v2398_v1 = vmul.f32 0.1, %v2277_v31  ;;  %v6762_v4 = vld [vmem:[#allocation2 + $0xf8] sm:$0xff] }
 0x407   : > { %2663 = vst.msk [vmem:[#allocation2 + $0x109] sm:$0xff] %vm289_vm0, %v2445_v28  ;;  %v6890_v55 = vld [vmem:[#allocation2 + $0xf9] sm:$0xff] }
 0x408   : > { %v2434_v27 = vsel %vm2362_vm11, %v2277_v31, %v2398_v1  ;;  %v2751_v5 = vld [vmem:[#allocation2 + $0x79] sm:$0xff]  ;;  %2730 = vst.msk [vmem:[#allocation4 + $0xa8] sm:$0xff] %vm289_vm0, %v6762_v4  ;;  %v2678_v31 = vld [vmem:[#allocation2 + $0x8] sm:$0xff] }
 0x409   : > { %v6764_v6 = vld [vmem:[#allocation2 + $0x78] sm:$0xff]  ;;  %2652 = vst.msk [vmem:[#allocation2 + $0x81] sm:$0xff] %vm289_vm0, %v2434_v27  ;;  %v2312_v7 = vpop.f32.mrf.mxu2  ;;  %2825 = vrot.lane.b32.xlu1 %v2751_v5, %s5225_s26 }
 0x40a   : > { %v2313_v8 = vadd.f32 %v6639_v52, %v2312_v7  ;;  %2719 = vst.msk [vmem:[#allocation4 + $0x50] sm:$0xff] %vm289_vm0, %v6764_v6  ;;  %v2808_v7 = vpop.permute.xlu1 %2807 }
 0x40b   : > { %v2279_v9 = vpop.f32.mrf.mxu0  ;;  %2710 = vst.msk [vmem:[#allocation4 + $0x8] sm:$0xff] %vm289_vm0, %v2678_v31 }
 0x40c   : > { %vm2374_vm13 = vcmp.ge.f32.partialorder %v2313_v8, 0.0  ;;  %v2410_v11 = vmul.f32 0.1, %v2313_v8  ;;  %v2280_v49 = vadd.f32 %v6639_v52, %v2279_v9  ;;  %2902 = vst.msk [vmem:[#allocation4 + $0x8] sm:$0xff] %vm506_vm1, %v2808_v7 }
 0x40e   : > { %v2446_v12 = vsel %vm2374_vm13, %v2313_v8, %v2410_v11  ;;  %vm2363_vm14 = vcmp.ge.f32.partialorder %v2280_v49, 0.0  ;;  %v2399_v13 = vmul.f32 0.1, %v2280_v49  ;;  %v6774_v26 = vld [vmem:[#allocation2 + $0x108] sm:$0xff] }
 0x40f   : > { %2664 = vst.msk [vmem:[#allocation2 + $0x111] sm:$0xff] %vm289_vm0, %v2446_v12 }
 0x410   : > { %v2435_v14 = vsel %vm2363_vm14, %v2280_v49, %v2399_v13  ;;  %v2752_v15 = vld [vmem:[#allocation2 + $0x81] sm:$0xff]  ;;  %2731 = vst.msk [vmem:[#allocation4 + $0xb0] sm:$0xff] %vm289_vm0, %v6774_v26 }
 0x411   : > { %v6777_v16 = vld [vmem:[#allocation2 + $0x80] sm:$0xff]  ;;  %2653 = vst.msk [vmem:[#allocation2 + $0x91] sm:$0xff] %vm289_vm0, %v2435_v14  ;;  %v2315_v17 = vpop.f32.mrf.mxu2  ;;  %2827 = vrot.lane.b32.xlu2 %v2752_v15, %s5225_s26 }
 0x412   : > { %v2316_v19 = vadd.f32 %v6639_v52, %v2315_v17  ;;  %2720 = vst.msk [vmem:[#allocation4 + $0x58] sm:$0xff] %vm289_vm0, %v6777_v16 }
 0x413   : > { %v2282_v0 = vpop.f32.mrf.mxu0 }
 0x414   : > { %vm2375_vm15 = vcmp.ge.f32.partialorder %v2316_v19, 0.0  ;;  %v2411_v20 = vmul.f32 0.1, %v2316_v19  ;;  %v2283_v24 = vadd.f32 %v6639_v52, %v2282_v0  ;;  %v6844_v0 = vld [vmem:[#allocation2 + $0xc9] sm:$0xff] }
 0x416   : > { %v2447_v21 = vsel %vm2375_vm15, %v2316_v19, %v2411_v20  ;;  %vm2364_vm12 = vcmp.ge.f32.partialorder %v2283_v24, 0.0  ;;  %v2400_v39 = vmul.f32 0.1, %v2283_v24  ;;  %v6789_v46 = vld [vmem:[#allocation2 + $0x110] sm:$0xff] }
 0x417   : > { %2665 = vst.msk [vmem:[#allocation2 + $0x121] sm:$0xff] %vm289_vm0, %v2447_v21 }
 0x418   : > { %v2436_v44 = vsel %vm2364_vm12, %v2283_v24, %v2400_v39  ;;  %v2753_v33 = vld [vmem:[#allocation2 + $0x91] sm:$0xff]  ;;  %2732 = vst.msk [vmem:[#allocation4 + $0xb8] sm:$0xff] %vm289_vm0, %v6789_v46 }
 0x419   : > { %v6791_v38 = vld [vmem:[#allocation2 + $0x90] sm:$0xff]  ;;  %2654 = vst.msk [vmem:[#allocation2 + $0x99] sm:$0xff] %vm289_vm0, %v2436_v44  ;;  %v2318_v47 = vpop.f32.mrf.mxu2  ;;  %2829 = vrot.lane.b32.xlu0 %v2753_v33, %s5225_s26 }
 0x41a   : > { %v2319_v53 = vadd.f32 %v6639_v52, %v2318_v47  ;;  %2721 = vst.msk [vmem:[#allocation4 + $0x60] sm:$0xff] %vm289_vm0, %v6791_v38  ;;  %v6863_v47 = vld [vmem:[#allocation2 + $0xd9] sm:$0xff] }
 0x41b   : > { %v2285_v30 = vpop.f32.mrf.mxu0 }
 0x41c   : > { %vm2376_vm11 = vcmp.ge.f32.partialorder %v2319_v53, 0.0  ;;  %v2412_v45 = vmul.f32 0.1, %v2319_v53  ;;  %v2286_v54 = vadd.f32 %v6639_v52, %v2285_v30 }
 0x41e   : > { %v2448_v42 = vsel %vm2376_vm11, %v2319_v53, %v2412_v45  ;;  %vm2365_vm13 = vcmp.ge.f32.partialorder %v2286_v54, 0.0  ;;  %v2401_v59 = vmul.f32 0.1, %v2286_v54  ;;  %v6813_v57 = vld [vmem:[#allocation2 + $0x120] sm:$0xff]  ;;  %v6873_v45 = vld [vmem:[#allocation2 + $0xf1] sm:$0xff] }
 0x41f   : > { %2666 = vst.msk [vmem:[#allocation2 + $0x129] sm:$0xff] %vm289_vm0, %v2448_v42 }
 0x420   : > { %v2437_v41 = vsel %vm2365_vm13, %v2286_v54, %v2401_v59  ;;  %v6803_v61 = vld [vmem:[#allocation2 + $0x99] sm:$0xff]  ;;  %2733 = vst.msk [vmem:[#allocation4 + $0xc0] sm:$0xff] %vm289_vm0, %v6813_v57 }
 0x421   : > { %2655 = vst.msk [vmem:[#allocation2 + $0xa9] sm:$0xff] %vm289_vm0, %v2437_v41  ;;  %v2321_v43 = vpop.f32.mrf.mxu2  ;;  %2831 = vrot.lane.b32.xlu1 %v6803_v61, %s5225_s26  ;;  %v6809_v48 = vld [vmem:[#allocation2 + $0x98] sm:$0xff] }
 0x422   : > { %v2322_v56 = vadd.f32 %v6639_v52, %v2321_v43  ;;  %2722 = vst.msk [vmem:[#allocation4 + $0x68] sm:$0xff] %vm289_vm0, %v6809_v48  ;;  %v6888_v43 = vld [vmem:[#allocation2 + $0xe1] sm:$0xff] }
 0x423   : > { %v2288_v40 = vpop.f32.mrf.mxu0  ;;  %v2810_v35 = vpop.permute.xlu2 %2809 }
 0x424   : > { %vm2377_vm14 = vcmp.ge.f32.partialorder %v2322_v56, 0.0  ;;  %v2413_v37 = vmul.f32 0.1, %v2322_v56  ;;  %v2289_v29 = vadd.f32 %v6639_v52, %v2288_v40  ;;  %2903 = vst.msk [vmem:[#allocation4 + $0x10] sm:$0xff] %vm506_vm1, %v2810_v35  ;;  %v6898_v40 = vld [vmem:[#allocation2 + $0x111] sm:$0xff] }
 0x426   : > { %v2449_v32 = vsel %vm2377_vm14, %v2322_v56, %v2413_v37  ;;  %vm2366_vm15 = vcmp.ge.f32.partialorder %v2289_v29, 0.0  ;;  %v2402_v36 = vmul.f32 0.1, %v2289_v29  ;;  %v6830_v8 = vld [vmem:[#allocation2 + $0x128] sm:$0xff] }
 0x427   : > { %2667 = vst.msk [vmem:[#allocation2 + $0x139] sm:$0xff] %vm289_vm0, %v2449_v32  ;;  %v2100_v32 = vld [vmem:[#allocation3 + $0x100] sm:$0xff] }
 0x428   : > { %v2438_v28 = vsel %vm2366_vm15, %v2289_v29, %v2402_v36  ;;  %v6822_v1 = vld [vmem:[#allocation2 + $0xa9] sm:$0xff]  ;;  %2734 = vst.msk [vmem:[#allocation4 + $0xc8] sm:$0xff] %vm289_vm0, %v6830_v8  ;;  %5078 = vmatmul.msk.f32.gmra.mxu2 %vm2113_vm10, %v2100_v32 }
 0x429   : > { %v6825_v27 = vld [vmem:[#allocation2 + $0xa8] sm:$0xff]  ;;  %2656 = vst.msk [vmem:[#allocation2 + $0xb1] sm:$0xff] %vm289_vm0, %v2438_v28  ;;  %v2324_v5 = vpop.f32.mrf.mxu2  ;;  %2833 = vrot.lane.b32.xlu2 %v6822_v1, %s5225_s26 }
 0x42a   : > { %v2325_v9 = vadd.f32 %v6639_v52, %v2324_v5  ;;  %2723 = vst.msk [vmem:[#allocation4 + $0x70] sm:$0xff] %vm289_vm0, %v6825_v27  ;;  %v6908_v28 = vld [vmem:[#allocation2 + $0x109] sm:$0xff]  ;;  %v6910_v5 = vld [vmem:[#allocation2 + $0x121] sm:$0xff] }
 0x42b   : > { %v2291_v11 = vpop.f32.mrf.mxu0 }
 0x42c   : > { %vm2378_vm12 = vcmp.ge.f32.partialorder %v2325_v9, 0.0  ;;  %v2414_v49 = vmul.f32 0.1, %v2325_v9  ;;  %v2292_v12 = vadd.f32 %v6639_v52, %v2291_v11 }
 0x42e   : > { %v2450_v13 = vsel %vm2378_vm12, %v2325_v9, %v2414_v49  ;;  %vm2367_vm11 = vcmp.ge.f32.partialorder %v2292_v12, 0.0  ;;  %v2403_v14 = vmul.f32 0.1, %v2292_v12  ;;  %v6839_v15 = vld [vmem:[#allocation2 + $0x138] sm:$0xff] }
 0x42f   : > { %2668 = vst.msk [vmem:[#allocation2 + $0x141] sm:$0xff] %vm289_vm0, %v2450_v13  ;;  %v6918_v9 = vld [vmem:[#allocation2 + $0x139] sm:$0xff] }
 0x430   : > { %v2439_v17 = vsel %vm2367_vm11, %v2292_v12, %v2403_v14  ;;  %v6842_v19 = vld [vmem:[#allocation2 + $0xb1] sm:$0xff]  ;;  %2735 = vst.msk [vmem:[#allocation4 + $0xd0] sm:$0xff] %vm289_vm0, %v6839_v15 }
 0x431   : > { %2657 = vst.msk [vmem:[#allocation2 + $0xc1] sm:$0xff] %vm289_vm0, %v2439_v17  ;;  %v2327_v20 = vpop.f32.mrf.mxu2  ;;  %2835 = vrot.lane.b32.xlu0 %v6842_v19, %s5225_s26  ;;  %2839 = vrot.lane.b32.xlu2 %v6844_v0, %s5225_s26  ;;  %v6853_v24 = vld [vmem:[#allocation2 + $0xb0] sm:$0xff]  ;;  %v2101_v13 = vld [vmem:[#allocation3 + $0x108] sm:$0xff] }
 0x432   : > { %v2328_v34 = vadd.f32 %v6639_v52, %v2327_v20  ;;  %2724 = vst.msk [vmem:[#allocation4 + $0x78] sm:$0xff] %vm289_vm0, %v6853_v24  ;;  %5079 = vmatmul.msk.f32.gmra.mxu2 %vm2113_vm10, %v2101_v13  ;;  %v6928_v20 = vld [vmem:[#allocation2 + $0x129] sm:$0xff]  ;;  %v6982_v13 = vld [vmem:[#allocation2 + $0x52] sm:$0xff] }
 0x433   : > { %7994 = vst [vmem:[#allocation5_spill] sm:$0xff] %v6982_v13 }
 0x434   : > { %vm2379_vm13 = vcmp.ge.f32.partialorder %v2328_v34, 0.0  ;;  %v2415_v21 = vmul.f32 0.1, %v2328_v34 }
 0x436   : > { %v2451_v39 = vsel %vm2379_vm13, %v2328_v34, %v2415_v21  ;;  %v6859_v44 = vld [vmem:[#allocation2 + $0x140] sm:$0xff] }
 0x437   : > { %2669 = vst.msk [vmem:[#allocation2 + $0x151] sm:$0xff] %vm289_vm0, %v2451_v39  ;;  %v6930_v34 = vld [vmem:[#allocation2 + $0x141] sm:$0xff] }
 0x438   : > { %v6861_v33 = vld [vmem:[#allocation2 + $0xc1] sm:$0xff]  ;;  %2736 = vst.msk [vmem:[#allocation4 + $0xd8] sm:$0xff] %vm289_vm0, %v6859_v44 }
 0x439   : > { %v6865_v53 = vld [vmem:[#allocation2 + $0xc8] sm:$0xff]  ;;  %v2330_v30 = vpop.f32.mrf.mxu2  ;;  %2837 = vrot.lane.b32.xlu1 %v6861_v33, %s5225_s26  ;;  %2841 = vrot.lane.b32.xlu0 %v6863_v47, %s5225_s26  ;;  %v6877_v54 = vld [vmem:[#allocation2 + $0xc0] sm:$0xff] }
 0x43a   : > { %2726 = vst.msk [vmem:[#allocation4 + $0x88] sm:$0xff] %vm289_vm0, %v6865_v53  ;;  %v2331_v60 = vadd.f32 %v6639_v52, %v2330_v30  ;;  %2845 = vrot.lane.b32.xlu2 %v6873_v45, %s5225_s26  ;;  %v2933_v30 = vld [vmem:[#allocation2 + $0x2] sm:$0xff] }
 0x43b   : > { %2725 = vst.msk [vmem:[#allocation4 + $0x80] sm:$0xff] %vm289_vm0, %v6877_v54  ;;  %v2816_v42 = vpop.permute.xlu2 %2815 }
 0x43c   : > { %vm2380_vm14 = vcmp.ge.f32.partialorder %v2331_v60, 0.0  ;;  %v2416_v59 = vmul.f32 0.1, %v2331_v60  ;;  %2906 = vst.msk [vmem:[#allocation4 + $0x28] sm:$0xff] %vm506_vm1, %v2816_v42 }
 0x43e   : > { %v2452_v62 = vsel %vm2380_vm14, %v2331_v60, %v2416_v59  ;;  %v6885_v41 = vld [vmem:[#allocation2 + $0x150] sm:$0xff] }
 0x43f   : > { %2670 = vst.msk [vmem:[#allocation2 + $0x159] sm:$0xff] %vm289_vm0, %v2452_v62  ;;  %v6945_v42 = vld [vmem:[#allocation2 + $0x151] sm:$0xff] }
 0x440   : > { %2737 = vst.msk [vmem:[#allocation4 + $0xe0] sm:$0xff] %vm289_vm0, %v6885_v41 }
 0x441   : > { %v2333_v56 = vpop.f32.mrf.mxu2  ;;  %2843 = vrot.lane.b32.xlu1 %v6888_v43, %s5225_s26  ;;  %2847 = vrot.lane.b32.xlu0 %v6890_v55, %s5225_s26 }
 0x442   : > { %v2334_v35 = vadd.f32 %v6639_v52, %v2333_v56  ;;  %2851 = vrot.lane.b32.xlu2 %v6898_v40, %s5225_s26  ;;  %v2102_v56 = vld [vmem:[#allocation3 + $0x110] sm:$0xff] }
 0x443   : > { %v2812_v37 = vpop.permute.xlu0 %2811  ;;  %5080 = vmatmul.msk.f32.vlgmr.msra.gmra.mxu3 %vm2113_vm10, %v2102_v56  ;;  %v6997_v56 = vld [vmem:[#allocation2 + $0x62] sm:$0xff] }
 0x444   : > { %vm2381_vm15 = vcmp.ge.f32.partialorder %v2334_v35, 0.0  ;;  %v2417_v29 = vmul.f32 0.1, %v2334_v35  ;;  %2904 = vst.msk [vmem:[#allocation4 + $0x18] sm:$0xff] %vm506_vm1, %v2812_v37 }
 0x446   : > { %v2453_v36 = vsel %vm2381_vm15, %v2334_v35, %v2417_v29  ;;  %v6905_v31 = vld [vmem:[#allocation2 + $0x158] sm:$0xff]  ;;  %v2934_v35 = vld [vmem:[#allocation2 + $0xa] sm:$0xff]  ;;  %v6963_v29 = vld [vmem:[#allocation2 + $0x22] sm:$0xff] }
 0x447   : > { %2671 = vst.msk [vmem:[#allocation2 + $0x169] sm:$0xff] %vm289_vm0, %v2453_v36  ;;  %v6938_v21 = vld [vmem:[#allocation2 + $0x159] sm:$0xff]  ;;  %v2103_v36 = vld [vmem:[#allocation3 + $0x118] sm:$0xff] }
 0x448   : > { %2738 = vst.msk [vmem:[#allocation4 + $0xe8] sm:$0xff] %vm289_vm0, %v6905_v31 }
 0x449   : > { %v2336_v7 = vpop.f32.mrf.mxu2  ;;  %2849 = vrot.lane.b32.xlu1 %v6908_v28, %s5225_s26  ;;  %2853 = vrot.lane.b32.xlu0 %v6910_v5, %s5225_s26 }
 0x44a   : > { %v2337_v11 = vadd.f32 %v6639_v52, %v2336_v7  ;;  %2857 = vrot.lane.b32.xlu2 %v6918_v9, %s5225_s26  ;;  %v6969_v7 = vld [vmem:[#allocation2 + $0x32] sm:$0xff] }
 0x44b   : > { %v2814_v49 = vpop.permute.xlu1 %2813  ;;  %5081 = vmatmul.msk.f32.gmra.mxu3 %vm2113_vm10, %v2103_v36  ;;  %v7008_v36 = vld [vmem:[#allocation2 + $0x9a] sm:$0xff] }
 0x44c   : > { %vm2382_vm12 = vcmp.ge.f32.partialorder %v2337_v11, 0.0  ;;  %v2418_v12 = vmul.f32 0.1, %v2337_v11  ;;  %2905 = vst.msk [vmem:[#allocation4 + $0x20] sm:$0xff] %vm506_vm1, %v2814_v49  ;;  %v6977_v49 = vld [vmem:[#allocation2 + $0x4a] sm:$0xff] }
 0x44d   : > { %7998 = vst [vmem:[#allocation9_spill] sm:$0xff] %v7008_v36 }
 0x44e   : > { %v2454_v14 = vsel %vm2382_vm12, %v2337_v11, %v2418_v12  ;;  %v6925_v17 = vld [vmem:[#allocation2 + $0x168] sm:$0xff]  ;;  %v6971_v11 = vld [vmem:[#allocation2 + $0x1a] sm:$0xff] }
 0x44f   : > { %2672 = vst.msk [vmem:[#allocation2 + $0x171] sm:$0xff] %vm289_vm0, %v2454_v14  ;;  %v6947_v59 = vld [vmem:[#allocation2 + $0x169] sm:$0xff]  ;;  %v6984_v14 = vld [vmem:[#allocation2 + $0x3a] sm:$0xff] }
 0x450   : > { %2739 = vst.msk [vmem:[#allocation4 + $0xf0] sm:$0xff] %vm289_vm0, %v6925_v17 }
 0x451   : > { %2855 = vrot.lane.b32.xlu1 %v6928_v20, %s5225_s26  ;;  %2859 = vrot.lane.b32.xlu0 %v6930_v34, %s5225_s26 }
 0x452   : > { %2863 = vrot.lane.b32.xlu2 %v6938_v21, %s5225_s26 }
 0x453   : > { %v2822_v39 = vpop.permute.xlu2 %2821 }
 0x454   : > { %2909 = vst.msk [vmem:[#allocation4 + $0x40] sm:$0xff] %vm506_vm1, %v2822_v39  ;;  %v6990_v39 = vld [vmem:[#allocation2 + $0x6a] sm:$0xff] }
 0x455   : > { %7995 = vst [vmem:[#allocation6_spill] sm:$0xff] %v6990_v39 }
 0x456   : > { %v6943_v60 = vld [vmem:[#allocation2 + $0x170] sm:$0xff] }
 0x457   : > { %2740 = vst.msk [vmem:[#allocation4 + $0xf8] sm:$0xff] %vm289_vm0, %v6943_v60  ;;  %v6958_v37 = vld [vmem:[#allocation2 + $0x171] sm:$0xff] }
 0x459   : > { %2861 = vrot.lane.b32.xlu1 %v6945_v42, %s5225_s26  ;;  %2865 = vrot.lane.b32.xlu0 %v6947_v59, %s5225_s26 }
 0x45a   : > { %2997 = vrot.lane.b32.xlu2 %v2933_v30, %s5226_s27 }
 0x45b   : > { %v2818_v62 = vpop.permute.xlu0 %2817 }
 0x45c   : > { %2907 = vst.msk [vmem:[#allocation4 + $0x30] sm:$0xff] %vm506_vm1, %v2818_v62  ;;  %v6995_v62 = vld [vmem:[#allocation2 + $0x7a] sm:$0xff] }
 0x45d   : > { %7996 = vst [vmem:[#allocation7_spill] sm:$0xff] %v6995_v62 }
 0x461   : > { %2867 = vrot.lane.b32.xlu1 %v6958_v37, %s5225_s26  ;;  %2999 = vrot.lane.b32.xlu0 %v2934_v35, %s5226_s27  ;;  %v7003_v35 = vld [vmem:[#allocation2 + $0x92] sm:$0xff] }
 0x462   : > { %3003 = vrot.lane.b32.xlu2 %v6963_v29, %s5226_s27  ;;  %7997 = vst [vmem:[#allocation8_spill] sm:$0xff] %v7003_v35 }
 0x463   : > { %v2820_v32 = vpop.permute.xlu1 %2819 }
 0x464   : > { %2908 = vst.msk [vmem:[#allocation4 + $0x38] sm:$0xff] %vm506_vm1, %v2820_v32 }
 0x469   : > { %3005 = vrot.lane.b32.xlu0 %v6969_v7, %s5226_s27  ;;  %3001 = vrot.lane.b32.xlu1 %v6971_v11, %s5226_s27 }
 0x46a   : > { %3009 = vrot.lane.b32.xlu2 %v6977_v49, %s5226_s27 }
 0x46b   : > { %v2828_v12 = vpop.permute.xlu2 %2827 }
 0x46c   : > { %2912 = vst.msk [vmem:[#allocation4 + $0x58] sm:$0xff] %vm506_vm1, %v2828_v12  ;;  %v7010_v12 = vld [vmem:[#allocation2 + $0x82] sm:$0xff] }
 0x46d   : > { %7999 = vst [vmem:[#allocation10_spill] sm:$0xff] %v7010_v12 }
 0x471   : > { %3011 = vrot.lane.b32.xlu0 %v6982_v13, %s5226_s27  ;;  %3007 = vrot.lane.b32.xlu1 %v6984_v14, %s5226_s27  ;;  %v7037_v13 = vld [vmem:[#allocation2 + $0xca] sm:$0xff] }
 0x472   : > { %3015 = vrot.lane.b32.xlu2 %v6990_v39, %s5226_s27  ;;  %8005 = vst [vmem:[#allocation16_spill] sm:$0xff] %v7037_v13 }
 0x473   : > { %v2824_v30 = vpop.permute.xlu0 %2823 }
 0x474   : > { %2910 = vst.msk [vmem:[#allocation4 + $0x48] sm:$0xff] %vm506_vm1, %v2824_v30  ;;  %v7016_v30 = vld [vmem:[#allocation2 + $0xb2] sm:$0xff] }
 0x475   : > { %8000 = vst [vmem:[#allocation11_spill] sm:$0xff] %v7016_v30 }
 0x479   : > { %3017 = vrot.lane.b32.xlu0 %v6995_v62, %s5226_s27  ;;  %3013 = vrot.lane.b32.xlu1 %v6997_v56, %s5226_s27 }
 0x47a   : > { %3021 = vrot.lane.b32.xlu2 %v7003_v35, %s5226_s27  ;;  %v7021_v35 = vld [vmem:[#allocation2 + $0xc2] sm:$0xff] }
 0x47b   : > { %v2826_v32 = vpop.permute.xlu1 %2825  ;;  %8001 = vst [vmem:[#allocation12_spill] sm:$0xff] %v7021_v35 }
 0x47c   : > { %2911 = vst.msk [vmem:[#allocation4 + $0x50] sm:$0xff] %vm506_vm1, %v2826_v32  ;;  %v7023_v32 = vld [vmem:[#allocation2 + $0xaa] sm:$0xff] }
 0x47d   : > { %8002 = vst [vmem:[#allocation13_spill] sm:$0xff] %v7023_v32 }
 0x481   : > { %3023 = vrot.lane.b32.xlu0 %v7008_v36, %s5226_s27  ;;  %3019 = vrot.lane.b32.xlu1 %v7010_v12, %s5226_s27  ;;  %v7029_v36 = vld [vmem:[#allocation2 + $0xda] sm:$0xff] }
 0x482   : > { %3027 = vrot.lane.b32.xlu2 %v7016_v30, %s5226_s27  ;;  %8003 = vst [vmem:[#allocation14_spill] sm:$0xff] %v7029_v36 }
 0x483   : > { %v2834_v62 = vpop.permute.xlu2 %2833 }
 0x484   : > { %2915 = vst.msk [vmem:[#allocation4 + $0x70] sm:$0xff] %vm506_vm1, %v2834_v62  ;;  %v7035_v62 = vld [vmem:[#allocation2 + $0xe2] sm:$0xff] }
 0x485   : > { %8004 = vst [vmem:[#allocation15_spill] sm:$0xff] %v7035_v62 }
 0x489   : > { %3029 = vrot.lane.b32.xlu0 %v7021_v35, %s5226_s27  ;;  %3025 = vrot.lane.b32.xlu1 %v7023_v32, %s5226_s27  ;;  %v7043_v35 = vld [vmem:[#allocation2 + $0xfa] sm:$0xff]  ;;  %v7051_v32 = vld [vmem:[#allocation2 + $0xf2] sm:$0xff] }
 0x48a   : > { %3033 = vrot.lane.b32.xlu2 %v7029_v36, %s5226_s27  ;;  %8006 = vst [vmem:[#allocation17_spill] sm:$0xff] %v7043_v35 }
 0x48b   : > { %v2830_v12 = vpop.permute.xlu0 %2829  ;;  %v2840_v30 = vpop.permute.xlu2 %2839  ;;  %8008 = vst [vmem:[#allocation19_spill] sm:$0xff] %v7051_v32 }
 0x48c   : > { %2913 = vst.msk [vmem:[#allocation4 + $0x60] sm:$0xff] %vm506_vm1, %v2830_v12 }
 0x48d   : > { %2918 = vst.msk [vmem:[#allocation4 + $0x88] sm:$0xff] %vm506_vm1, %v2840_v30  ;;  %v7049_v30 = vld [vmem:[#allocation2 + $0x10a] sm:$0xff] }
 0x48e   : > { %8007 = vst [vmem:[#allocation18_spill] sm:$0xff] %v7049_v30 }
 0x491   : > { %3035 = vrot.lane.b32.xlu0 %v7035_v62, %s5226_s27  ;;  %3031 = vrot.lane.b32.xlu1 %v7037_v13, %s5226_s27  ;;  %v7057_v62 = vld [vmem:[#allocation2 + $0x122] sm:$0xff]  ;;  %v7073_v13 = vld [vmem:[#allocation2 + $0x13a] sm:$0xff] }
 0x492   : > { %3039 = vrot.lane.b32.xlu2 %v7043_v35, %s5226_s27  ;;  %8009 = vst [vmem:[#allocation20_spill] sm:$0xff] %v7057_v62 }
 0x493   : > { %v2832_v36 = vpop.permute.xlu1 %2831  ;;  %8012 = vst [vmem:[#allocation23_spill] sm:$0xff] %v7073_v13 }
 0x494   : > { %2914 = vst.msk [vmem:[#allocation4 + $0x68] sm:$0xff] %vm506_vm1, %v2832_v36  ;;  %v2846_v12 = vpop.permute.xlu2 %2845  ;;  %v7062_v36 = vld [vmem:[#allocation2 + $0x12a] sm:$0xff] }
 0x495   : > { %2921 = vst.msk [vmem:[#allocation4 + $0xa0] sm:$0xff] %vm506_vm1, %v2846_v12  ;;  %v7064_v12 = vld [vmem:[#allocation2 + $0x112] sm:$0xff] }
 0x496   : > { %8010 = vst [vmem:[#allocation21_spill] sm:$0xff] %v7062_v36 }
 0x497   : > { %8011 = vst [vmem:[#allocation22_spill] sm:$0xff] %v7064_v12 }
 0x499   : > { %3041 = vrot.lane.b32.xlu0 %v7049_v30, %s5226_s27  ;;  %3037 = vrot.lane.b32.xlu1 %v7051_v32, %s5226_s27  ;;  %v2960_v30 = vld [vmem:[#allocation2 + $0x142] sm:$0xff] }
 0x49a   : > { %3045 = vrot.lane.b32.xlu2 %v7057_v62, %s5226_s27 }
 0x49c   : > { %v2852_v35 = vpop.permute.xlu2 %2851 }
 0x49d   : > { %2924 = vst.msk [vmem:[#allocation4 + $0xb8] sm:$0xff] %vm506_vm1, %v2852_v35  ;;  %v2961_v35 = vld [vmem:[#allocation2 + $0x152] sm:$0xff] }
 0x4a1   : > { %3047 = vrot.lane.b32.xlu0 %v7062_v36, %s5226_s27  ;;  %3043 = vrot.lane.b32.xlu1 %v7064_v12, %s5226_s27  ;;  %v2963_v36 = vld [vmem:[#allocation2 + $0x16a] sm:$0xff] }
 0x4a2   : > { %3051 = vrot.lane.b32.xlu2 %v2960_v30, %s5226_s27 }
 0x4a3   : > { %v2836_v32 = vpop.permute.xlu0 %2835 }
 0x4a4   : > { %2916 = vst.msk [vmem:[#allocation4 + $0x78] sm:$0xff] %vm506_vm1, %v2836_v32  ;;  %v2858_v62 = vpop.permute.xlu2 %2857  ;;  %v2964_v32 = vld [vmem:[#allocation2 + $0x172] sm:$0xff] }
 0x4a5   : > { %2927 = vst.msk [vmem:[#allocation4 + $0xd0] sm:$0xff] %vm506_vm1, %v2858_v62  ;;  %v2962_v62 = vld [vmem:[#allocation2 + $0x15a] sm:$0xff] }
 0x4a9   : > { %3053 = vrot.lane.b32.xlu0 %v2961_v35, %s5226_s27  ;;  %3049 = vrot.lane.b32.xlu1 %v7073_v13, %s5226_s27 }
 0x4aa   : > { %3057 = vrot.lane.b32.xlu2 %v2963_v36, %s5226_s27 }
 0x4ab   : > { %v2838_v12 = vpop.permute.xlu1 %2837  ;;  %v2842_v39 = vpop.permute.xlu0 %2841 }
 0x4ac   : > { %2917 = vst.msk [vmem:[#allocation4 + $0x80] sm:$0xff] %vm506_vm1, %v2838_v12  ;;  %v2864_v30 = vpop.permute.xlu2 %2863 }
 0x4ad   : > { %2919 = vst.msk [vmem:[#allocation4 + $0x90] sm:$0xff] %vm506_vm1, %v2842_v39 }
 0x4ae   : > { %2930 = vst.msk [vmem:[#allocation4 + $0xe8] sm:$0xff] %vm506_vm1, %v2864_v30 }
 0x4b1   : > { %3059 = vrot.lane.b32.xlu0 %v2964_v32, %s5226_s27  ;;  %3055 = vrot.lane.b32.xlu1 %v2962_v62, %s5226_s27 }
 0x4b2   : > { %3192 = vrot.lane.b32.xlu2 %v6689_v25, %s5227_s28 }
 0x4b3   : > { %v2844_v35 = vpop.permute.xlu1 %2843  ;;  %v2848_v36 = vpop.permute.xlu0 %2847 }
 0x4b4   : > { %2920 = vst.msk [vmem:[#allocation4 + $0x98] sm:$0xff] %vm506_vm1, %v2844_v35  ;;  %v2998_v13 = vpop.permute.xlu2 %2997 }
 0x4b5   : > { %2922 = vst.msk [vmem:[#allocation4 + $0xa8] sm:$0xff] %vm506_vm1, %v2848_v36 }
 0x4b6   : > { %3093 = vst.msk [vmem:[#allocation4] sm:$0xff] %vm723_vm2, %v2998_v13 }
 0x4b9   : > { %3194 = vrot.lane.b32.xlu0 %v6696_v2, %s5227_s28  ;;  %3190 = vrot.lane.b32.xlu1 %v6675_v51, %s5227_s28 }
 0x4ba   : > { %3198 = vrot.lane.b32.xlu2 %v6712_v18, %s5227_s28 }
 0x4bb   : > { %v2850_v39 = vpop.permute.xlu1 %2849  ;;  %v2854_v25 = vpop.permute.xlu0 %2853 }
 0x4bc   : > { %2923 = vst.msk [vmem:[#allocation4 + $0xb0] sm:$0xff] %vm506_vm1, %v2850_v39  ;;  %v3004_v12 = vpop.permute.xlu2 %3003 }
 0x4bd   : > { %2925 = vst.msk [vmem:[#allocation4 + $0xc0] sm:$0xff] %vm506_vm1, %v2854_v25 }
 0x4be   : > { %3096 = vst.msk [vmem:[#allocation4 + $0x18] sm:$0xff] %vm723_vm2, %v3004_v12 }
 0x4c1   : > { %3200 = vrot.lane.b32.xlu0 %v6723_v23, %s5227_s28  ;;  %3196 = vrot.lane.b32.xlu1 %v6703_v10, %s5227_s28  ;;  %v2339_v10 = vpop.f32.mrf.mxu2 }
 0x4c2   : > { %3204 = vrot.lane.b32.xlu2 %v6751_v58, %s5227_s28  ;;  %v2340_v13 = vadd.f32 %v6639_v52, %v2339_v10 }
 0x4c3   : > { %v2856_v51 = vpop.permute.xlu1 %2855  ;;  %v2860_v2 = vpop.permute.xlu0 %2859 }
 0x4c4   : > { %2926 = vst.msk [vmem:[#allocation4 + $0xc8] sm:$0xff] %vm506_vm1, %v2856_v51  ;;  %v3010_v18 = vpop.permute.xlu2 %3009  ;;  %vm2383_vm11 = vcmp.ge.f32.partialorder %v2340_v13, 0.0  ;;  %v2419_v32 = vmul.f32 0.1, %v2340_v13 }
 0x4c5   : > { %2928 = vst.msk [vmem:[#allocation4 + $0xd8] sm:$0xff] %vm506_vm1, %v2860_v2 }
 0x4c6   : > { %3099 = vst.msk [vmem:[#allocation4 + $0x30] sm:$0xff] %vm723_vm2, %v3010_v18  ;;  %v2345_v25 = vpop.f32.mrf.mxu3 }
 0x4c9   : > { %3206 = vrot.lane.b32.xlu0 %v6764_v6, %s5227_s28  ;;  %3202 = vrot.lane.b32.xlu1 %v6737_v50, %s5227_s28  ;;  %v2455_v6 = vsel %vm2383_vm11, %v2340_v13, %v2419_v32  ;;  %v2342_v50 = vpop.f32.mrf.mxu2 }
 0x4ca   : > { %3210 = vrot.lane.b32.xlu2 %v6791_v38, %s5227_s28  ;;  %2673 = vst.msk [vmem:[#allocation2 + $0x181] sm:$0xff] %vm289_vm0, %v2455_v6  ;;  %v2343_v35 = vadd.f32 %v6639_v52, %v2342_v50 }
 0x4cb   : > { %v2862_v23 = vpop.permute.xlu1 %2861  ;;  %v2866_v58 = vpop.permute.xlu0 %2865 }
 0x4cc   : > { %2929 = vst.msk [vmem:[#allocation4 + $0xe0] sm:$0xff] %vm506_vm1, %v2862_v23  ;;  %v3016_v30 = vpop.permute.xlu2 %3015  ;;  %vm2384_vm13 = vcmp.ge.f32.partialorder %v2343_v35, 0.0  ;;  %v2420_v39 = vmul.f32 0.1, %v2343_v35 }
 0x4cd   : > { %2931 = vst.msk [vmem:[#allocation4 + $0xf0] sm:$0xff] %vm506_vm1, %v2866_v58 }
 0x4ce   : > { %3102 = vst.msk [vmem:[#allocation4 + $0x48] sm:$0xff] %vm723_vm2, %v3016_v30  ;;  %v2348_v12 = vpop.f32.mrf.mxu3  ;;  %v3318_v30 = vld [vmem:[#allocation2 + $0x19] sm:$0xff] }
 0x4cf   : > { %v7220_v12 = vld [vmem:[#allocation2 + $0x69] sm:$0xff] }
 0x4d1   : > { %3212 = vrot.lane.b32.xlu0 %v6809_v48, %s5227_s28  ;;  %3208 = vrot.lane.b32.xlu1 %v6777_v16, %s5227_s28  ;;  %v2456_v48 = vsel %vm2384_vm13, %v2343_v35, %v2420_v39  ;;  %v3156_v32 = vld [vmem:[#allocation2 + $0x180] sm:$0xff]  ;;  %v7196_v35 = vld [vmem:[#allocation2 + $0x51] sm:$0xff] }
 0x4d2   : > { %3216 = vrot.lane.b32.xlu2 %v6853_v24, %s5227_s28  ;;  %2674 = vst.msk [vmem:[#allocation2 + $0x189] sm:$0xff] %vm289_vm0, %v2456_v48 }
 0x4d3   : > { %v2868_v38 = vpop.permute.xlu1 %2867  ;;  %v3000_v62 = vpop.permute.xlu0 %2999 }
 0x4d4   : > { %2932 = vst.msk [vmem:[#allocation4 + $0xf8] sm:$0xff] %vm506_vm1, %v2868_v38  ;;  %v3022_v36 = vpop.permute.xlu2 %3021  ;;  %v7191_v38 = vld [vmem:[#allocation2 + $0x39] sm:$0xff] }
 0x4d5   : > { %3094 = vst.msk [vmem:[#allocation4 + $0x8] sm:$0xff] %vm723_vm2, %v3000_v62  ;;  %v3319_v62 = vld [vmem:[#allocation2 + $0x21] sm:$0xff] }
 0x4d6   : > { %3105 = vst.msk [vmem:[#allocation4 + $0x60] sm:$0xff] %vm723_vm2, %v3022_v36 }
 0x4d9   : > { %3218 = vrot.lane.b32.xlu0 %v6877_v54, %s5227_s28  ;;  %3214 = vrot.lane.b32.xlu1 %v6825_v27, %s5227_s28  ;;  %v3157_v13 = vld [vmem:[#allocation2 + $0x188] sm:$0xff] }
 0x4da   : > { %3222 = vrot.lane.b32.xlu2 %v6720_v22, %s5227_s28 }
 0x4db   : > { %v3006_v52 = vpop.permute.xlu0 %3005  ;;  %v3002_v16 = vpop.permute.xlu1 %3001 }
 0x4dc   : > { %3097 = vst.msk [vmem:[#allocation4 + $0x20] sm:$0xff] %vm723_vm2, %v3006_v52  ;;  %v3028_v24 = vpop.permute.xlu2 %3027  ;;  %v7203_v52 = vld [vmem:[#allocation2 + $0x61] sm:$0xff] }
 0x4dd   : > { %3095 = vst.msk [vmem:[#allocation4 + $0x10] sm:$0xff] %vm723_vm2, %v3002_v16  ;;  %v7205_v16 = vld [vmem:[#allocation2 + $0x49] sm:$0xff] }
 0x4de   : > { %3108 = vst.msk [vmem:[#allocation4 + $0x78] sm:$0xff] %vm723_vm2, %v3028_v24  ;;  %v7211_v24 = vld [vmem:[#allocation2 + $0x79] sm:$0xff] }
 0x4e1   : > { %3224 = vrot.lane.b32.xlu0 %v6735_v63, %s5227_s28  ;;  %3220 = vrot.lane.b32.xlu1 %v6865_v53, %s5227_s28 }
 0x4e2   : > { %3228 = vrot.lane.b32.xlu2 %v6762_v4, %s5227_s28 }
 0x4e3   : > { %v3012_v22 = vpop.permute.xlu0 %3011  ;;  %v3008_v27 = vpop.permute.xlu1 %3007 }
 0x4e4   : > { %3100 = vst.msk [vmem:[#allocation4 + $0x38] sm:$0xff] %vm723_vm2, %v3012_v22  ;;  %v3034_v54 = vpop.permute.xlu2 %3033 }
 0x4e5   : > { %3098 = vst.msk [vmem:[#allocation4 + $0x28] sm:$0xff] %vm723_vm2, %v3008_v27 }
 0x4e6   : > { %3111 = vst.msk [vmem:[#allocation4 + $0x90] sm:$0xff] %vm723_vm2, %v3034_v54  ;;  %v7218_v54 = vld [vmem:[#allocation2 + $0x81] sm:$0xff] }
 0x4e9   : > { %3230 = vrot.lane.b32.xlu0 %v6774_v26, %s5227_s28  ;;  %3226 = vrot.lane.b32.xlu1 %v6748_v3, %s5227_s28 }
 0x4ea   : > { %3234 = vrot.lane.b32.xlu2 %v6813_v57, %s5227_s28 }
 0x4eb   : > { %v3018_v63 = vpop.permute.xlu0 %3017  ;;  %v3014_v53 = vpop.permute.xlu1 %3013 }
 0x4ec   : > { %3103 = vst.msk [vmem:[#allocation4 + $0x50] sm:$0xff] %vm723_vm2, %v3018_v63  ;;  %v3040_v51 = vpop.permute.xlu2 %3039 }
 0x4ed   : > { %3101 = vst.msk [vmem:[#allocation4 + $0x40] sm:$0xff] %vm723_vm2, %v3014_v53 }
 0x4ee   : > { %3114 = vst.msk [vmem:[#allocation4 + $0xa8] sm:$0xff] %vm723_vm2, %v3040_v51 }
 0x4f1   : > { %3236 = vrot.lane.b32.xlu0 %v6830_v8, %s5227_s28  ;;  %3232 = vrot.lane.b32.xlu1 %v6789_v46, %s5227_s28 }
 0x4f2   : > { %3240 = vrot.lane.b32.xlu2 %v6859_v44, %s5227_s28 }
 0x4f3   : > { %v3024_v3 = vpop.permute.xlu0 %3023  ;;  %v3020_v2 = vpop.permute.xlu1 %3019 }
 0x4f4   : > { %3106 = vst.msk [vmem:[#allocation4 + $0x68] sm:$0xff] %vm723_vm2, %v3024_v3  ;;  %v3046_v18 = vpop.permute.xlu2 %3045  ;;  %v7231_v3 = vld [vmem:[#allocation2 + $0x91] sm:$0xff] }
 0x4f5   : > { %3104 = vst.msk [vmem:[#allocation4 + $0x58] sm:$0xff] %vm723_vm2, %v3020_v2 }
 0x4f6   : > { %3117 = vst.msk [vmem:[#allocation4 + $0xc0] sm:$0xff] %vm723_vm2, %v3046_v18 }
 0x4f9   : > { %3242 = vrot.lane.b32.xlu0 %v6885_v41, %s5227_s28  ;;  %3238 = vrot.lane.b32.xlu1 %v6839_v15, %s5227_s28 }
 0x4fa   : > { %3246 = vrot.lane.b32.xlu2 %v6925_v17, %s5227_s28 }
 0x4fb   : > { %v3030_v10 = vpop.permute.xlu0 %3029  ;;  %v3026_v23 = vpop.permute.xlu1 %3025 }
 0x4fc   : > { %3109 = vst.msk [vmem:[#allocation4 + $0x80] sm:$0xff] %vm723_vm2, %v3030_v10  ;;  %v3052_v58 = vpop.permute.xlu2 %3051 }
 0x4fd   : > { %3107 = vst.msk [vmem:[#allocation4 + $0x70] sm:$0xff] %vm723_vm2, %v3026_v23  ;;  %v7287_v23 = vld [vmem:[#allocation2 + $0x181] sm:$0xff] }
 0x4fe   : > { %3120 = vst.msk [vmem:[#allocation4 + $0xd8] sm:$0xff] %vm723_vm2, %v3052_v58  ;;  %v7298_v58 = vld [vmem:[#allocation2 + $0x189] sm:$0xff] }
 0x501   : > { %3248 = vrot.lane.b32.xlu0 %v6943_v60, %s5227_s28  ;;  %3244 = vrot.lane.b32.xlu1 %v6905_v31, %s5227_s28  ;;  %v7184_v60 = vld [vmem:[#allocation2 + $0x31] sm:$0xff] }
 0x502   : > { %3252 = vrot.lane.b32.xlu2 %v3157_v13, %s5227_s28 }
 0x503   : > { %v3036_v15 = vpop.permute.xlu0 %3035  ;;  %v3032_v41 = vpop.permute.xlu1 %3031 }
 0x504   : > { %3112 = vst.msk [vmem:[#allocation4 + $0x98] sm:$0xff] %vm723_vm2, %v3036_v15  ;;  %v3058_v17 = vpop.permute.xlu2 %3057 }
 0x505   : > { %3110 = vst.msk [vmem:[#allocation4 + $0x88] sm:$0xff] %vm723_vm2, %v3032_v41  ;;  %v8013_v41 = vld [vmem:[#allocation6_spill] sm:$0xff] }
 0x506   : > { %3123 = vst.msk [vmem:[#allocation4 + $0xf0] sm:$0xff] %vm723_vm2, %v3058_v17 }
 0x509   : > { %3382 = vrot.lane.b32.xlu0 %v3318_v30, %s5228_s29  ;;  %3250 = vrot.lane.b32.xlu1 %v3156_v32, %s5227_s28  ;;  %v8016_v32 = vld [vmem:[#allocation8_spill] sm:$0xff] }
 0x50a   : > { %3386 = vrot.lane.b32.xlu2 %v7184_v60, %s5228_s29 }
 0x50b   : > { %v3042_v31 = vpop.permute.xlu0 %3041  ;;  %v3038_v6 = vpop.permute.xlu1 %3037 }
 0x50c   : > { %3115 = vst.msk [vmem:[#allocation4 + $0xb0] sm:$0xff] %vm723_vm2, %v3042_v31  ;;  %v3193_v50 = vpop.permute.xlu2 %3192  ;;  %v8017_v31 = vld [vmem:[#allocation7_spill] sm:$0xff] }
 0x50d   : > { %3113 = vst.msk [vmem:[#allocation4 + $0xa0] sm:$0xff] %vm723_vm2, %v3038_v6  ;;  %v8018_v6 = vld [vmem:[#allocation13_spill] sm:$0xff] }
 0x50e   : > { %3287 = vst.msk [vmem:[#allocation4 + $0x8] sm:$0xff] %vm943_vm3, %v3193_v50 }
 0x511   : > { %3388 = vrot.lane.b32.xlu0 %v7191_v38, %s5228_s29  ;;  %3384 = vrot.lane.b32.xlu1 %v3319_v62, %s5228_s29 }
 0x512   : > { %3392 = vrot.lane.b32.xlu2 %v7196_v35, %s5228_s29 }
 0x513   : > { %v3048_v36 = vpop.permute.xlu0 %3047  ;;  %v3044_v39 = vpop.permute.xlu1 %3043 }
 0x514   : > { %3118 = vst.msk [vmem:[#allocation4 + $0xc8] sm:$0xff] %vm723_vm2, %v3048_v36  ;;  %v3199_v48 = vpop.permute.xlu2 %3198 }
 0x515   : > { %3116 = vst.msk [vmem:[#allocation4 + $0xb8] sm:$0xff] %vm723_vm2, %v3044_v39  ;;  %v8019_v39 = vld [vmem:[#allocation11_spill] sm:$0xff] }
 0x516   : > { %3290 = vst.msk [vmem:[#allocation4 + $0x20] sm:$0xff] %vm943_vm3, %v3199_v48  ;;  %v8020_v48 = vld [vmem:[#allocation9_spill] sm:$0xff] }
 0x519   : > { %3394 = vrot.lane.b32.xlu0 %v7203_v52, %s5228_s29  ;;  %3390 = vrot.lane.b32.xlu1 %v7205_v16, %s5228_s29 }
 0x51a   : > { %3398 = vrot.lane.b32.xlu2 %v7211_v24, %s5228_s29 }
 0x51b   : > { %v3054_v25 = vpop.permute.xlu0 %3053  ;;  %v3050_v22 = vpop.permute.xlu1 %3049 }
 0x51c   : > { %3121 = vst.msk [vmem:[#allocation4 + $0xe0] sm:$0xff] %vm723_vm2, %v3054_v25  ;;  %v3205_v27 = vpop.permute.xlu2 %3204  ;;  %v8021_v25 = vld [vmem:[#allocation16_spill] sm:$0xff] }
 0x51d   : > { %3119 = vst.msk [vmem:[#allocation4 + $0xd0] sm:$0xff] %vm723_vm2, %v3050_v22 }
 0x51e   : > { %3293 = vst.msk [vmem:[#allocation4 + $0x38] sm:$0xff] %vm943_vm3, %v3205_v27 }
 0x521   : > { %3400 = vrot.lane.b32.xlu0 %v7218_v54, %s5228_s29  ;;  %3396 = vrot.lane.b32.xlu1 %v7220_v12, %s5228_s29 }
 0x522   : > { %3404 = vrot.lane.b32.xlu2 %v6803_v61, %s5228_s29 }
 0x523   : > { %v3060_v63 = vpop.permute.xlu0 %3059  ;;  %v3056_v53 = vpop.permute.xlu1 %3055 }
 0x524   : > { %3124 = vst.msk [vmem:[#allocation4 + $0xf8] sm:$0xff] %vm723_vm2, %v3060_v63  ;;  %v3211_v51 = vpop.permute.xlu2 %3210 }
 0x525   : > { %3122 = vst.msk [vmem:[#allocation4 + $0xe8] sm:$0xff] %vm723_vm2, %v3056_v53  ;;  %v8022_v53 = vld [vmem:[#allocation14_spill] sm:$0xff] }
 0x526   : > { %3296 = vst.msk [vmem:[#allocation4 + $0x50] sm:$0xff] %vm943_vm3, %v3211_v51  ;;  %v8023_v51 = vld [vmem:[#allocation12_spill] sm:$0xff] }
 0x529   : > { %3406 = vrot.lane.b32.xlu0 %v6822_v1, %s5228_s29  ;;  %3402 = vrot.lane.b32.xlu1 %v7231_v3, %s5228_s29 }
 0x52a   : > { %3410 = vrot.lane.b32.xlu2 %v6861_v33, %s5228_s29 }
 0x52b   : > { %v3195_v61 = vpop.permute.xlu0 %3194  ;;  %v3191_v2 = vpop.permute.xlu1 %3190 }
 0x52c   : > { %3288 = vst.msk [vmem:[#allocation4 + $0x10] sm:$0xff] %vm943_vm3, %v3195_v61  ;;  %v3217_v18 = vpop.permute.xlu2 %3216  ;;  %v8024_v61 = vld [vmem:[#allocation19_spill] sm:$0xff] }
 0x52d   : > { %3286 = vst.msk [vmem:[#allocation4] sm:$0xff] %vm943_vm3, %v3191_v2 }
 0x52e   : > { %3299 = vst.msk [vmem:[#allocation4 + $0x68] sm:$0xff] %vm943_vm3, %v3217_v18 }
 0x531   : > { %3412 = vrot.lane.b32.xlu0 %v6844_v0, %s5228_s29  ;;  %3408 = vrot.lane.b32.xlu1 %v6842_v19, %s5228_s29 }
 0x532   : > { %3416 = vrot.lane.b32.xlu2 %v6888_v43, %s5228_s29 }
 0x533   : > { %v3201_v1 = vpop.permute.xlu0 %3200  ;;  %v3197_v33 = vpop.permute.xlu1 %3196 }
 0x534   : > { %3291 = vst.msk [vmem:[#allocation4 + $0x28] sm:$0xff] %vm943_vm3, %v3201_v1  ;;  %v3223_v10 = vpop.permute.xlu2 %3222 }
 0x535   : > { %3289 = vst.msk [vmem:[#allocation4 + $0x18] sm:$0xff] %vm943_vm3, %v3197_v33  ;;  %v8025_v33 = vld [vmem:[#allocation17_spill] sm:$0xff] }
 0x536   : > { %3302 = vst.msk [vmem:[#allocation4 + $0x80] sm:$0xff] %vm943_vm3, %v3223_v10  ;;  %v8026_v10 = vld [vmem:[#allocation15_spill] sm:$0xff] }
 0x539   : > { %3418 = vrot.lane.b32.xlu0 %v6873_v45, %s5228_s29  ;;  %3414 = vrot.lane.b32.xlu1 %v6863_v47, %s5228_s29 }
 0x53a   : > { %3422 = vrot.lane.b32.xlu2 %v6908_v28, %s5228_s29 }
 0x53b   : > { %v3207_v19 = vpop.permute.xlu0 %3206  ;;  %v3203_v0 = vpop.permute.xlu1 %3202 }
 0x53c   : > { %3294 = vst.msk [vmem:[#allocation4 + $0x40] sm:$0xff] %vm943_vm3, %v3207_v19  ;;  %v3229_v43 = vpop.permute.xlu2 %3228  ;;  %v8027_v19 = vld [vmem:[#allocation22_spill] sm:$0xff] }
 0x53d   : > { %3292 = vst.msk [vmem:[#allocation4 + $0x30] sm:$0xff] %vm943_vm3, %v3203_v0 }
 0x53e   : > { %3305 = vst.msk [vmem:[#allocation4 + $0x98] sm:$0xff] %vm943_vm3, %v3229_v43 }
 0x541   : > { %3424 = vrot.lane.b32.xlu0 %v6898_v40, %s5228_s29  ;;  %3420 = vrot.lane.b32.xlu1 %v6890_v55, %s5228_s29 }
 0x542   : > { %3428 = vrot.lane.b32.xlu2 %v6928_v20, %s5228_s29 }
 0x543   : > { %v3213_v47 = vpop.permute.xlu0 %3212  ;;  %v3209_v45 = vpop.permute.xlu1 %3208 }
 0x544   : > { %3297 = vst.msk [vmem:[#allocation4 + $0x58] sm:$0xff] %vm943_vm3, %v3213_v47  ;;  %v3235_v28 = vpop.permute.xlu2 %3234 }
 0x545   : > { %3295 = vst.msk [vmem:[#allocation4 + $0x48] sm:$0xff] %vm943_vm3, %v3209_v45  ;;  %v8028_v45 = vld [vmem:[#allocation20_spill] sm:$0xff] }
 0x546   : > { %3308 = vst.msk [vmem:[#allocation4 + $0xb0] sm:$0xff] %vm943_vm3, %v3235_v28  ;;  %v8029_v28 = vld [vmem:[#allocation18_spill] sm:$0xff] }
 0x549   : > { %3430 = vrot.lane.b32.xlu0 %v6918_v9, %s5228_s29  ;;  %3426 = vrot.lane.b32.xlu1 %v6910_v5, %s5228_s29 }
 0x54a   : > { %3434 = vrot.lane.b32.xlu2 %v6945_v42, %s5228_s29 }
 0x54b   : > { %v3219_v55 = vpop.permute.xlu0 %3218  ;;  %v3215_v40 = vpop.permute.xlu1 %3214 }
 0x54c   : > { %3300 = vst.msk [vmem:[#allocation4 + $0x70] sm:$0xff] %vm943_vm3, %v3219_v55  ;;  %v3241_v20 = vpop.permute.xlu2 %3240  ;;  %v8030_v55 = vld [vmem:[#allocation23_spill] sm:$0xff] }
 0x54d   : > { %3298 = vst.msk [vmem:[#allocation4 + $0x60] sm:$0xff] %vm943_vm3, %v3215_v40 }
 0x54e   : > { %3311 = vst.msk [vmem:[#allocation4 + $0xc8] sm:$0xff] %vm943_vm3, %v3241_v20 }
 0x551   : > { %3436 = vrot.lane.b32.xlu0 %v6938_v21, %s5228_s29  ;;  %3432 = vrot.lane.b32.xlu1 %v6930_v34, %s5228_s29 }
 0x552   : > { %3440 = vrot.lane.b32.xlu2 %v6958_v37, %s5228_s29 }
 0x553   : > { %v3225_v5 = vpop.permute.xlu0 %3224  ;;  %v3221_v9 = vpop.permute.xlu1 %3220 }
 0x554   : > { %3303 = vst.msk [vmem:[#allocation4 + $0x88] sm:$0xff] %vm943_vm3, %v3225_v5  ;;  %v3247_v42 = vpop.permute.xlu2 %3246 }
 0x555   : > { %3301 = vst.msk [vmem:[#allocation4 + $0x78] sm:$0xff] %vm943_vm3, %v3221_v9  ;;  %v3703_v9 = vld [vmem:[#allocation2 + $0x30] sm:$0xff] }
 0x556   : > { %3314 = vst.msk [vmem:[#allocation4 + $0xe0] sm:$0xff] %vm943_vm3, %v3247_v42  ;;  %v8031_v42 = vld [vmem:[#allocation21_spill] sm:$0xff] }
 0x559   : > { %3442 = vrot.lane.b32.xlu0 %v7287_v23, %s5228_s29  ;;  %3438 = vrot.lane.b32.xlu1 %v6947_v59, %s5228_s29 }
 0x55a   : > { %3574 = vrot.lane.b32.xlu2 %v6971_v11, %s5229_s30 }
 0x55b   : > { %v3231_v34 = vpop.permute.xlu0 %3230  ;;  %v3227_v21 = vpop.permute.xlu1 %3226 }
 0x55c   : > { %3306 = vst.msk [vmem:[#allocation4 + $0xa0] sm:$0xff] %vm943_vm3, %v3231_v34  ;;  %v3253_v37 = vpop.permute.xlu2 %3252  ;;  %v4087_v34 = vld [vmem:[#allocation2 + $0x32] sm:$0xff] }
 0x55d   : > { %3304 = vst.msk [vmem:[#allocation4 + $0x90] sm:$0xff] %vm943_vm3, %v3227_v21 }
 0x55e   : > { %3317 = vst.msk [vmem:[#allocation4 + $0xf8] sm:$0xff] %vm943_vm3, %v3253_v37 }
 0x561   : > { %3576 = vrot.lane.b32.xlu0 %v6963_v29, %s5229_s30  ;;  %3444 = vrot.lane.b32.xlu1 %v7298_v58, %s5228_s29 }
 0x562   : > { %3580 = vrot.lane.b32.xlu2 %v6984_v14, %s5229_s30 }
 0x563   : > { %v3237_v59 = vpop.permute.xlu0 %3236  ;;  %v3233_v11 = vpop.permute.xlu1 %3232 }
 0x564   : > { %3309 = vst.msk [vmem:[#allocation4 + $0xb8] sm:$0xff] %vm943_vm3, %v3237_v59  ;;  %v3387_v13 = vpop.permute.xlu2 %3386 }
 0x565   : > { %3307 = vst.msk [vmem:[#allocation4 + $0xa8] sm:$0xff] %vm943_vm3, %v3233_v11  ;;  %v3704_v11 = vld [vmem:[#allocation2 + $0x38] sm:$0xff] }
 0x566   : > { %3480 = vst.msk [vmem:[#allocation4 + $0x10] sm:$0xff] %vm1160_vm4, %v3387_v13 }
 0x569   : > { %3582 = vrot.lane.b32.xlu0 %v6977_v49, %s5229_s30  ;;  %3578 = vrot.lane.b32.xlu1 %v6969_v7, %s5229_s30  ;;  %v8014_v49 = vld [vmem:[#allocation5_spill] sm:$0xff]  ;;  %v8015_v7 = vld [vmem:[#allocation10_spill] sm:$0xff] }
 0x56a   : > { %3586 = vrot.lane.b32.xlu2 %v6997_v56, %s5229_s30 }
 0x56b   : > { %v3243_v29 = vpop.permute.xlu0 %3242  ;;  %v3239_v14 = vpop.permute.xlu1 %3238 }
 0x56c   : > { %3312 = vst.msk [vmem:[#allocation4 + $0xd0] sm:$0xff] %vm943_vm3, %v3243_v29  ;;  %v3393_v15 = vpop.permute.xlu2 %3392 }
 0x56d   : > { %3310 = vst.msk [vmem:[#allocation4 + $0xc0] sm:$0xff] %vm943_vm3, %v3239_v14 }
 0x56e   : > { %3483 = vst.msk [vmem:[#allocation4 + $0x28] sm:$0xff] %vm1160_vm4, %v3393_v15  ;;  %v4088_v15 = vld [vmem:[#allocation2 + $0x3a] sm:$0xff] }
 0x571   : > { %3588 = vrot.lane.b32.xlu0 %v8013_v41, %s5229_s30  ;;  %3584 = vrot.lane.b32.xlu1 %v8014_v49, %s5229_s30  ;;  %v3705_v49 = vld [vmem:[#allocation2 + $0x48] sm:$0xff] }
 0x572   : > { %3592 = vrot.lane.b32.xlu2 %v8015_v7, %s5229_s30  ;;  %v3912_v7 = vld [vmem:[#allocation2 + $0xf9] sm:$0xff] }
 0x573   : > { %v3249_v17 = vpop.permute.xlu0 %3248  ;;  %v3245_v56 = vpop.permute.xlu1 %3244 }
 0x574   : > { %3315 = vst.msk [vmem:[#allocation4 + $0xe8] sm:$0xff] %vm943_vm3, %v3249_v17  ;;  %v3399_v30 = vpop.permute.xlu2 %3398 }
 0x575   : > { %3313 = vst.msk [vmem:[#allocation4 + $0xd8] sm:$0xff] %vm943_vm3, %v3245_v56 }
 0x576   : > { %3486 = vst.msk [vmem:[#allocation4 + $0x40] sm:$0xff] %vm1160_vm4, %v3399_v30  ;;  %v4089_v30 = vld [vmem:[#allocation2 + $0x4a] sm:$0xff] }
 0x579   : > { %3594 = vrot.lane.b32.xlu0 %v8016_v32, %s5229_s30  ;;  %3590 = vrot.lane.b32.xlu1 %v8017_v31, %s5229_s30 }
 0x57a   : > { %3598 = vrot.lane.b32.xlu2 %v8018_v6, %s5229_s30  ;;  %v3706_v6 = vld [vmem:[#allocation2 + $0x50] sm:$0xff] }
 0x57b   : > { %v3383_v50 = vpop.permute.xlu0 %3382  ;;  %v3251_v62 = vpop.permute.xlu1 %3250 }
 0x57c   : > { %3478 = vst.msk [vmem:[#allocation4] sm:$0xff] %vm1160_vm4, %v3383_v50  ;;  %v3405_v36 = vpop.permute.xlu2 %3404  ;;  %v3913_v50 = vld [vmem:[#allocation2 + $0x109] sm:$0xff] }
 0x57d   : > { %3316 = vst.msk [vmem:[#allocation4 + $0xf0] sm:$0xff] %vm943_vm3, %v3251_v62 }
 0x57e   : > { %3489 = vst.msk [vmem:[#allocation4 + $0x58] sm:$0xff] %vm1160_vm4, %v3405_v36 }
 0x581   : > { %3600 = vrot.lane.b32.xlu0 %v8019_v39, %s5229_s30  ;;  %3596 = vrot.lane.b32.xlu1 %v8020_v48, %s5229_s30  ;;  %v4090_v39 = vld [vmem:[#allocation2 + $0x52] sm:$0xff] }
 0x582   : > { %3604 = vrot.lane.b32.xlu2 %v8021_v25, %s5229_s30 }
 0x583   : > { %v3389_v22 = vpop.permute.xlu0 %3388  ;;  %v3385_v27 = vpop.permute.xlu1 %3384 }
 0x584   : > { %3481 = vst.msk [vmem:[#allocation4 + $0x18] sm:$0xff] %vm1160_vm4, %v3389_v22  ;;  %v3411_v63 = vpop.permute.xlu2 %3410  ;;  %v3707_v22 = vld [vmem:[#allocation2 + $0x60] sm:$0xff] }
 0x585   : > { %3479 = vst.msk [vmem:[#allocation4 + $0x8] sm:$0xff] %vm1160_vm4, %v3385_v27  ;;  %v3914_v27 = vld [vmem:[#allocation2 + $0x111] sm:$0xff] }
 0x586   : > { %3492 = vst.msk [vmem:[#allocation4 + $0x70] sm:$0xff] %vm1160_vm4, %v3411_v63 }
 0x589   : > { %3606 = vrot.lane.b32.xlu0 %v8022_v53, %s5229_s30  ;;  %3602 = vrot.lane.b32.xlu1 %v8023_v51, %s5229_s30  ;;  %v4091_v51 = vld [vmem:[#allocation2 + $0x62] sm:$0xff] }
 0x58a   : > { %3610 = vrot.lane.b32.xlu2 %v8024_v61, %s5229_s30  ;;  %v4107_v61 = vld [vmem:[#allocation2 + $0x122] sm:$0xff] }
 0x58b   : > { %v3395_v2 = vpop.permute.xlu0 %3394  ;;  %v3391_v18 = vpop.permute.xlu1 %3390 }
 0x58c   : > { %3484 = vst.msk [vmem:[#allocation4 + $0x30] sm:$0xff] %vm1160_vm4, %v3395_v2  ;;  %v3417_v1 = vpop.permute.xlu2 %3416 }
 0x58d   : > { %3482 = vst.msk [vmem:[#allocation4 + $0x20] sm:$0xff] %vm1160_vm4, %v3391_v18 }
 0x58e   : > { %3495 = vst.msk [vmem:[#allocation4 + $0x88] sm:$0xff] %vm1160_vm4, %v3417_v1  ;;  %v3708_v1 = vld [vmem:[#allocation2 + $0x68] sm:$0xff] }
 0x591   : > { %3612 = vrot.lane.b32.xlu0 %v8025_v33, %s5229_s30  ;;  %3608 = vrot.lane.b32.xlu1 %v8026_v10, %s5229_s30 }
 0x592   : > { %3616 = vrot.lane.b32.xlu2 %v8027_v19, %s5229_s30 }
 0x593   : > { %v3401_v0 = vpop.permute.xlu0 %3400  ;;  %v3397_v43 = vpop.permute.xlu1 %3396 }
 0x594   : > { %3487 = vst.msk [vmem:[#allocation4 + $0x48] sm:$0xff] %vm1160_vm4, %v3401_v0  ;;  %v3423_v47 = vpop.permute.xlu2 %3422  ;;  %v4092_v0 = vld [vmem:[#allocation2 + $0x6a] sm:$0xff] }
 0x595   : > { %3485 = vst.msk [vmem:[#allocation4 + $0x38] sm:$0xff] %vm1160_vm4, %v3397_v43  ;;  %v4108_v43 = vld [vmem:[#allocation2 + $0x12a] sm:$0xff] }
 0x596   : > { %3498 = vst.msk [vmem:[#allocation4 + $0xa0] sm:$0xff] %vm1160_vm4, %v3423_v47 }
 0x599   : > { %3618 = vrot.lane.b32.xlu0 %v8028_v45, %s5229_s30  ;;  %3614 = vrot.lane.b32.xlu1 %v8029_v28, %s5229_s30 }
 0x59a   : > { %3622 = vrot.lane.b32.xlu2 %v8030_v55, %s5229_s30  ;;  %v3916_v55 = vld [vmem:[#allocation2 + $0x129] sm:$0xff] }
 0x59b   : > { %v3407_v40 = vpop.permute.xlu0 %3406  ;;  %v3403_v20 = vpop.permute.xlu1 %3402 }
 0x59c   : > { %3490 = vst.msk [vmem:[#allocation4 + $0x60] sm:$0xff] %vm1160_vm4, %v3407_v40  ;;  %v3429_v5 = vpop.permute.xlu2 %3428  ;;  %v3725_v40 = vld [vmem:[#allocation2 + $0x138] sm:$0xff] }
 0x59d   : > { %3488 = vst.msk [vmem:[#allocation4 + $0x50] sm:$0xff] %vm1160_vm4, %v3403_v20 }
 0x59e   : > { %3501 = vst.msk [vmem:[#allocation4 + $0xb8] sm:$0xff] %vm1160_vm4, %v3429_v5 }
 0x5a1   : > { %3767 = vrot.lane.b32.xlu0 %v3703_v9, %s5230_s6  ;;  %3620 = vrot.lane.b32.xlu1 %v8031_v42, %s5229_s30  ;;  %v4315_v9 = vld [vmem:[%s7846_s3 + $0x20] sm:$0xf]  ;;  %v4314_v42 = vld [vmem:[%s7846_s3 + $0x18] sm:$0xff] }
 0x5a2   : > { %4151 = vrot.lane.b32.xlu2 %v4087_v34, %s5232_s8  ;;  %5082 = vmatpush.msk.msra.mxu1 %vm2222_vm8, %v4315_v9  ;;  %v4093_v34 = vld [vmem:[#allocation2 + $0x7a] sm:$0xff] }
 0x5a3   : > { %v3413_v21 = vpop.permute.xlu0 %3412  ;;  %v3409_v37 = vpop.permute.xlu1 %3408  ;;  %5160 = vmatpush.msk.msrb.mxu3 %vm2222_vm8, %v4315_v9 }
 0x5a4   : > { %3493 = vst.msk [vmem:[#allocation4 + $0x78] sm:$0xff] %vm1160_vm4, %v3413_v21  ;;  %v3435_v59 = vpop.permute.xlu2 %3434  ;;  %v4109_v21 = vld [vmem:[#allocation2 + $0x13a] sm:$0xff]  ;;  %4431 = vmatpush.msra.mxu1 %v4314_v42 }
 0x5a5   : > { %3491 = vst.msk [vmem:[#allocation4 + $0x68] sm:$0xff] %vm1160_vm4, %v3409_v37  ;;  %v4313_v37 = vld [vmem:[%s7846_s3 + $0x10] sm:$0xff]  ;;  %5161 = vmatpush.msrb.mxu3 %v4314_v42 }
 0x5a6   : > { %3504 = vst.msk [vmem:[#allocation4 + $0xd0] sm:$0xff] %vm1160_vm4, %v3435_v59  ;;  %4432 = vmatpush.msra.mxu1 %v4313_v37 }
 0x5a7   : > { %5162 = vmatpush.msrb.mxu3 %v4313_v37  ;;  %v3730_v37 = vld [vmem:[#allocation2 + $0x170] sm:$0xff] }
 0x5a9   : > { %3769 = vrot.lane.b32.xlu0 %v3704_v11, %s5230_s6  ;;  %3959 = vrot.lane.b32.xlu1 %v7184_v60, %s5231_s7 }
 0x5aa   : > { %3801 = vrot.lane.b32.xlu2 %v6762_v4, %s5230_s6 }
 0x5ab   : > { %v3419_v13 = vpop.permute.xlu0 %3418  ;;  %v3415_v29 = vpop.permute.xlu1 %3414 }
 0x5ac   : > { %3496 = vst.msk [vmem:[#allocation4 + $0x90] sm:$0xff] %vm1160_vm4, %v3419_v13  ;;  %v3441_v14 = vpop.permute.xlu2 %3440  ;;  %v4312_v13 = vld [vmem:[%s7846_s3 + $0x8] sm:$0xff] }
 0x5ad   : > { %3494 = vst.msk [vmem:[#allocation4 + $0x80] sm:$0xff] %vm1160_vm4, %v3415_v29  ;;  %4433 = vmatpush.msra.mxu1 %v4312_v13  ;;  %5163 = vmatpush.msrb.mxu3 %v4312_v13 }
 0x5ae   : > { %3507 = vst.msk [vmem:[#allocation4 + $0xe8] sm:$0xff] %vm1160_vm4, %v3441_v14  ;;  %v3710_v14 = vld [vmem:[#allocation2 + $0x80] sm:$0xff] }
 0x5b1   : > { %4153 = vrot.lane.b32.xlu0 %v4088_v15, %s5232_s8  ;;  %3961 = vrot.lane.b32.xlu1 %v7191_v38, %s5231_s7  ;;  %v3917_v15 = vld [vmem:[#allocation2 + $0x139] sm:$0xff] }
 0x5b2   : > { %4185 = vrot.lane.b32.xlu2 %v8025_v33, %s5232_s8  ;;  %v3915_v33 = vld [vmem:[#allocation2 + $0x121] sm:$0xff] }
 0x5b3   : > { %v3425_v60 = vpop.permute.xlu0 %3424  ;;  %v3421_v4 = vpop.permute.xlu1 %3420 }
 0x5b4   : > { %3499 = vst.msk [vmem:[#allocation4 + $0xa8] sm:$0xff] %vm1160_vm4, %v3425_v60  ;;  %v3575_v41 = vpop.permute.xlu2 %3574 }
 0x5b5   : > { %3497 = vst.msk [vmem:[#allocation4 + $0x98] sm:$0xff] %vm1160_vm4, %v3421_v4 }
 0x5b6   : > { %3670 = vst.msk [vmem:[#allocation4] sm:$0xff] %vm1377_vm5, %v3575_v41 }
 0x5b9   : > { %3771 = vrot.lane.b32.xlu0 %v3705_v49, %s5230_s6  ;;  %3993 = vrot.lane.b32.xlu1 %v3912_v7, %s5231_s7  ;;  %v4094_v49 = vld [vmem:[#allocation2 + $0x82] sm:$0xff] }
 0x5ba   : > { %3803 = vrot.lane.b32.xlu2 %v6774_v26, %s5230_s6  ;;  %v4110_v7 = vld [vmem:[#allocation2 + $0x142] sm:$0xff] }
 0x5bb   : > { %v3431_v38 = vpop.permute.xlu0 %3430  ;;  %v3427_v17 = vpop.permute.xlu1 %3426 }
 0x5bc   : > { %3502 = vst.msk [vmem:[#allocation4 + $0xc0] sm:$0xff] %vm1160_vm4, %v3431_v38  ;;  %v3581_v56 = vpop.permute.xlu2 %3580 }
 0x5bd   : > { %3500 = vst.msk [vmem:[#allocation4 + $0xb0] sm:$0xff] %vm1160_vm4, %v3427_v17 }
 0x5be   : > { %3673 = vst.msk [vmem:[#allocation4 + $0x18] sm:$0xff] %vm1377_vm5, %v3581_v56  ;;  %v3711_v56 = vld [vmem:[#allocation2 + $0x90] sm:$0xff] }
 0x5c1   : > { %4155 = vrot.lane.b32.xlu0 %v4089_v30, %s5232_s8  ;;  %3963 = vrot.lane.b32.xlu1 %v7205_v16, %s5231_s7  ;;  %v3918_v30 = vld [vmem:[#allocation2 + $0x141] sm:$0xff] }
 0x5c2   : > { %4187 = vrot.lane.b32.xlu2 %v8029_v28, %s5232_s8  ;;  %v3709_v28 = vld [vmem:[#allocation2 + $0x78] sm:$0xff] }
 0x5c3   : > { %v3437_v32 = vpop.permute.xlu0 %3436  ;;  %v3433_v26 = vpop.permute.xlu1 %3432 }
 0x5c4   : > { %3505 = vst.msk [vmem:[#allocation4 + $0xd8] sm:$0xff] %vm1160_vm4, %v3437_v32  ;;  %v3587_v31 = vpop.permute.xlu2 %3586  ;;  %v3727_v32 = vld [vmem:[#allocation2 + $0x150] sm:$0xff] }
 0x5c5   : > { %3503 = vst.msk [vmem:[#allocation4 + $0xc8] sm:$0xff] %vm1160_vm4, %v3433_v26 }
 0x5c6   : > { %3676 = vst.msk [vmem:[#allocation4 + $0x30] sm:$0xff] %vm1377_vm5, %v3587_v31 }
 0x5c9   : > { %3773 = vrot.lane.b32.xlu0 %v3706_v6, %s5230_s6  ;;  %3995 = vrot.lane.b32.xlu1 %v3913_v50, %s5231_s7  ;;  %v4095_v6 = vld [vmem:[#allocation2 + $0x92] sm:$0xff] }
 0x5ca   : > { %3805 = vrot.lane.b32.xlu2 %v6789_v46, %s5230_s6  ;;  %v4111_v50 = vld [vmem:[#allocation2 + $0x152] sm:$0xff] }
 0x5cb   : > { %v3443_v16 = vpop.permute.xlu0 %3442  ;;  %v3439_v62 = vpop.permute.xlu1 %3438 }
 0x5cc   : > { %3508 = vst.msk [vmem:[#allocation4 + $0xf0] sm:$0xff] %vm1160_vm4, %v3443_v16  ;;  %v3593_v36 = vpop.permute.xlu2 %3592 }
 0x5cd   : > { %3506 = vst.msk [vmem:[#allocation4 + $0xe0] sm:$0xff] %vm1160_vm4, %v3439_v62 }
 0x5ce   : > { %3679 = vst.msk [vmem:[#allocation4 + $0x48] sm:$0xff] %vm1377_vm5, %v3593_v36 }
 0x5d1   : > { %4157 = vrot.lane.b32.xlu0 %v4090_v39, %s5232_s8  ;;  %3965 = vrot.lane.b32.xlu1 %v7196_v35, %s5231_s7 }
 0x5d2   : > { %4189 = vrot.lane.b32.xlu2 %v8027_v19, %s5232_s8 }
 0x5d3   : > { %v3577_v48 = vpop.permute.xlu0 %3576  ;;  %v3445_v46 = vpop.permute.xlu1 %3444 }
 0x5d4   : > { %3671 = vst.msk [vmem:[#allocation4 + $0x8] sm:$0xff] %vm1377_vm5, %v3577_v48  ;;  %v3599_v25 = vpop.permute.xlu2 %3598  ;;  %v3712_v48 = vld [vmem:[#allocation2 + $0x98] sm:$0xff] }
 0x5d5   : > { %3509 = vst.msk [vmem:[#allocation4 + $0xf8] sm:$0xff] %vm1160_vm4, %v3445_v46  ;;  %v3919_v46 = vld [vmem:[#allocation2 + $0x151] sm:$0xff] }
 0x5d6   : > { %3682 = vst.msk [vmem:[#allocation4 + $0x60] sm:$0xff] %vm1377_vm5, %v3599_v25 }
 0x5d9   : > { %3775 = vrot.lane.b32.xlu0 %v3707_v22, %s5230_s6  ;;  %3997 = vrot.lane.b32.xlu1 %v3914_v27, %s5231_s7 }
 0x5da   : > { %3807 = vrot.lane.b32.xlu2 %v6813_v57, %s5230_s6 }
 0x5db   : > { %v3583_v35 = vpop.permute.xlu0 %3582  ;;  %v3579_v63 = vpop.permute.xlu1 %3578 }
 0x5dc   : > { %3674 = vst.msk [vmem:[#allocation4 + $0x20] sm:$0xff] %vm1377_vm5, %v3583_v35  ;;  %v3605_v53 = vpop.permute.xlu2 %3604 }
 0x5dd   : > { %3672 = vst.msk [vmem:[#allocation4 + $0x10] sm:$0xff] %vm1377_vm5, %v3579_v63  ;;  %v3728_v63 = vld [vmem:[#allocation2 + $0x158] sm:$0xff] }
 0x5de   : > { %3685 = vst.msk [vmem:[#allocation4 + $0x78] sm:$0xff] %vm1377_vm5, %v3605_v53  ;;  %v3920_v53 = vld [vmem:[#allocation2 + $0x159] sm:$0xff] }
 0x5e1   : > { %4159 = vrot.lane.b32.xlu0 %v4091_v51, %s5232_s8  ;;  %3967 = vrot.lane.b32.xlu1 %v7203_v52, %s5231_s7 }
 0x5e2   : > { %4191 = vrot.lane.b32.xlu2 %v4107_v61, %s5232_s8 }
 0x5e3   : > { %v3589_v2 = vpop.permute.xlu0 %3588  ;;  %v3585_v57 = vpop.permute.xlu1 %3584 }
 0x5e4   : > { %3677 = vst.msk [vmem:[#allocation4 + $0x38] sm:$0xff] %vm1377_vm5, %v3589_v2  ;;  %v3611_v18 = vpop.permute.xlu2 %3610 }
 0x5e5   : > { %3675 = vst.msk [vmem:[#allocation4 + $0x28] sm:$0xff] %vm1377_vm5, %v3585_v57 }
 0x5e6   : > { %3688 = vst.msk [vmem:[#allocation4 + $0x90] sm:$0xff] %vm1377_vm5, %v3611_v18  ;;  %v4112_v18 = vld [vmem:[#allocation2 + $0x15a] sm:$0xff] }
 0x5e9   : > { %3777 = vrot.lane.b32.xlu0 %v3708_v1, %s5230_s6  ;;  %3999 = vrot.lane.b32.xlu1 %v3915_v33, %s5231_s7  ;;  %v4096_v1 = vld [vmem:[#allocation2 + $0x9a] sm:$0xff] }
 0x5ea   : > { %3809 = vrot.lane.b32.xlu2 %v6830_v8, %s5230_s6 }
 0x5eb   : > { %v3595_v52 = vpop.permute.xlu0 %3594  ;;  %v3591_v10 = vpop.permute.xlu1 %3590 }
 0x5ec   : > { %3680 = vst.msk [vmem:[#allocation4 + $0x50] sm:$0xff] %vm1377_vm5, %v3595_v52  ;;  %v3617_v19 = vpop.permute.xlu2 %3616 }
 0x5ed   : > { %3678 = vst.msk [vmem:[#allocation4 + $0x40] sm:$0xff] %vm1377_vm5, %v3591_v10 }
 0x5ee   : > { %3691 = vst.msk [vmem:[#allocation4 + $0xa8] sm:$0xff] %vm1377_vm5, %v3617_v19 }
 0x5f1   : > { %4161 = vrot.lane.b32.xlu0 %v4092_v0, %s5232_s8  ;;  %3969 = vrot.lane.b32.xlu1 %v7220_v12, %s5231_s7  ;;  %v3905_v0 = vld [vmem:[#allocation2 + $0xa9] sm:$0xff] }
 0x5f2   : > { %4193 = vrot.lane.b32.xlu2 %v4108_v43, %s5232_s8  ;;  %v3713_v43 = vld [vmem:[#allocation2 + $0xa8] sm:$0xff] }
 0x5f3   : > { %v3601_v47 = vpop.permute.xlu0 %3600  ;;  %v3597_v8 = vpop.permute.xlu1 %3596 }
 0x5f4   : > { %3683 = vst.msk [vmem:[#allocation4 + $0x68] sm:$0xff] %vm1377_vm5, %v3601_v47  ;;  %v3623_v45 = vpop.permute.xlu2 %3622  ;;  %v4097_v47 = vld [vmem:[#allocation2 + $0xaa] sm:$0xff] }
 0x5f5   : > { %3681 = vst.msk [vmem:[#allocation4 + $0x58] sm:$0xff] %vm1377_vm5, %v3597_v8 }
 0x5f6   : > { %3694 = vst.msk [vmem:[#allocation4 + $0xc0] sm:$0xff] %vm1377_vm5, %v3623_v45 }
 0x5f9   : > { %3779 = vrot.lane.b32.xlu0 %v3709_v28, %s5230_s6  ;;  %4001 = vrot.lane.b32.xlu1 %v3916_v55, %s5231_s7 }
 0x5fa   : > { %3811 = vrot.lane.b32.xlu2 %v3725_v40, %s5230_s6  ;;  %v3921_v40 = vld [vmem:[#allocation2 + $0x169] sm:$0xff] }
 0x5fb   : > { %v3607_v12 = vpop.permute.xlu0 %3606  ;;  %v3603_v20 = vpop.permute.xlu1 %3602 }
 0x5fc   : > { %3686 = vst.msk [vmem:[#allocation4 + $0x80] sm:$0xff] %vm1377_vm5, %v3607_v12  ;;  %v4152_v5 = vpop.permute.xlu2 %4151  ;;  %v3729_v12 = vld [vmem:[#allocation2 + $0x168] sm:$0xff] }
 0x5fd   : > { %3684 = vst.msk [vmem:[#allocation4 + $0x70] sm:$0xff] %vm1377_vm5, %v3603_v20  ;;  %v3714_v20 = vld [vmem:[#allocation2 + $0xb0] sm:$0xff] }
 0x601   : > { %4163 = vrot.lane.b32.xlu0 %v4093_v34, %s5232_s8  ;;  %3971 = vrot.lane.b32.xlu1 %v7211_v24, %s5231_s7  ;;  %v4311_v24 = vld [vmem:[%s7846_s3] sm:$0xff] }
 0x602   : > { %4195 = vrot.lane.b32.xlu2 %v4109_v21, %s5232_s8  ;;  %4434 = vmatpush.msra.mxu1 %v4311_v24  ;;  %v4113_v21 = vld [vmem:[#allocation2 + $0x16a] sm:$0xff] }
 0x603   : > { %v3613_v59 = vpop.permute.xlu0 %3612  ;;  %v3609_v11 = vpop.permute.xlu1 %3608  ;;  %5164 = vmatpush.msrb.mxu3 %v4311_v24  ;;  %v4098_v24 = vld [vmem:[#allocation2 + $0xb2] sm:$0xff] }
 0x604   : > { %3689 = vst.msk [vmem:[#allocation4 + $0x98] sm:$0xff] %vm1377_vm5, %v3613_v59  ;;  %v3802_v29 = vpop.permute.xlu2 %3801 }
 0x605   : > { %3687 = vst.msk [vmem:[#allocation4 + $0x88] sm:$0xff] %vm1377_vm5, %v3609_v11 }
 0x606   : > { %3880 = vst.msk [vmem:[#allocation4 + $0x88] sm:$0xff] %vm1597_vm6, %v3802_v29 }
 0x609   : > { %3781 = vrot.lane.b32.xlu0 %v3710_v14, %s5230_s6  ;;  %4003 = vrot.lane.b32.xlu1 %v3917_v15, %s5231_s7  ;;  %v3906_v14 = vld [vmem:[#allocation2 + $0xb1] sm:$0xff] }
 0x60a   : > { %3813 = vrot.lane.b32.xlu2 %v6859_v44, %s5230_s6  ;;  %v4114_v15 = vld [vmem:[#allocation2 + $0x172] sm:$0xff] }
 0x60b   : > { %v3619_v60 = vpop.permute.xlu0 %3618  ;;  %v3615_v4 = vpop.permute.xlu1 %3614 }
 0x60c   : > { %3692 = vst.msk [vmem:[#allocation4 + $0xb0] sm:$0xff] %vm1377_vm5, %v3619_v60  ;;  %v4186_v41 = vpop.permute.xlu2 %4185 }
 0x60d   : > { %3690 = vst.msk [vmem:[#allocation4 + $0xa0] sm:$0xff] %vm1377_vm5, %v3615_v4 }
 0x611   : > { %4165 = vrot.lane.b32.xlu0 %v4094_v49, %s5232_s8  ;;  %3973 = vrot.lane.b32.xlu1 %v7218_v54, %s5231_s7 }
 0x612   : > { %4197 = vrot.lane.b32.xlu2 %v4110_v7, %s5232_s8 }
 0x613   : > { %v3768_v38 = vpop.permute.xlu0 %3767  ;;  %v3621_v17 = vpop.permute.xlu1 %3620 }
 0x614   : > { %3863 = vst.msk [vmem:[#allocation4] sm:$0xff] %vm1597_vm6, %v3768_v38  ;;  %v3804_v44 = vpop.permute.xlu2 %3803  ;;  %v3922_v38 = vld [vmem:[#allocation2 + $0x171] sm:$0xff] }
 0x615   : > { %3693 = vst.msk [vmem:[#allocation4 + $0xb8] sm:$0xff] %vm1377_vm5, %v3621_v17  ;;  %v3907_v17 = vld [vmem:[#allocation2 + $0xc1] sm:$0xff] }
 0x616   : > { %3881 = vst.msk [vmem:[#allocation4 + $0x90] sm:$0xff] %vm1597_vm6, %v3804_v44 }
 0x619   : > { %3783 = vrot.lane.b32.xlu0 %v3711_v56, %s5230_s6  ;;  %4005 = vrot.lane.b32.xlu1 %v3918_v30, %s5231_s7 }
 0x61a   : > { %3815 = vrot.lane.b32.xlu2 %v3727_v32, %s5230_s6 }
 0x61b   : > { %v3770_v54 = vpop.permute.xlu0 %3769  ;;  %v3960_v26 = vpop.permute.xlu1 %3959 }
 0x61c   : > { %3864 = vst.msk [vmem:[#allocation4 + $0x8] sm:$0xff] %vm1597_vm6, %v3770_v54  ;;  %v4188_v31 = vpop.permute.xlu2 %4187  ;;  %v3731_v54 = vld [vmem:[#allocation2 + $0x180] sm:$0xff] }
 0x61d   : > { %4055 = vst.msk [vmem:[#allocation4] sm:$0xff] %vm1814_vm7, %v3960_v26 }
 0x61e   : > { %4247 = vst.msk [vmem:[#allocation4] sm:$0xff] %vm2031_vm9, %v4152_v5 }
 0x621   : > { %4167 = vrot.lane.b32.xlu0 %v4095_v6, %s5232_s8  ;;  %3975 = vrot.lane.b32.xlu1 %v7231_v3, %s5231_s7  ;;  %v3904_v3 = vld [vmem:[#allocation2 + $0x99] sm:$0xff] }
 0x622   : > { %4199 = vrot.lane.b32.xlu2 %v4111_v50, %s5232_s8 }
 0x623   : > { %v4154_v16 = vpop.permute.xlu0 %4153  ;;  %v3962_v62 = vpop.permute.xlu1 %3961 }
 0x624   : > { %4056 = vst.msk [vmem:[#allocation4 + $0x8] sm:$0xff] %vm1814_vm7, %v3962_v62  ;;  %v3806_v36 = vpop.permute.xlu2 %3805  ;;  %v4099_v62 = vld [vmem:[#allocation2 + $0xc2] sm:$0xff] }
 0x625   : > { %4248 = vst.msk [vmem:[#allocation4 + $0x8] sm:$0xff] %vm2031_vm9, %v4154_v16  ;;  %v4279_v39 = vld [vmem:[#allocation4] sm:$0xff]  ;;  %v4115_v16 = vld [vmem:[#allocation2 + $0x182] sm:$0xff] }
 0x626   : > { %3882 = vst.msk [vmem:[#allocation4 + $0x98] sm:$0xff] %vm1597_vm6, %v3806_v36  ;;  %5083 = vmatmul.msk.f32.vlgmr.msra.gmra.mxu1 %vm2113_vm10, %v4279_v39 }
 0x629   : > { %3785 = vrot.lane.b32.xlu0 %v3712_v48, %s5230_s6  ;;  %4007 = vrot.lane.b32.xlu1 %v3919_v46, %s5231_s7  ;;  %v3908_v46 = vld [vmem:[#allocation2 + $0xc9] sm:$0xff] }
 0x62a   : > { %3977 = vrot.lane.b32.xlu2 %v3904_v3, %s5231_s7  ;;  %v3716_v3 = vld [vmem:[#allocation2 + $0xc8] sm:$0xff] }
 0x62b   : > { %v3772_v25 = vpop.permute.xlu0 %3771  ;;  %v3994_v22 = vpop.permute.xlu1 %3993 }
 0x62c   : > { %3865 = vst.msk [vmem:[#allocation4 + $0x10] sm:$0xff] %vm1597_vm6, %v3772_v25  ;;  %v4190_v27 = vpop.permute.xlu2 %4189  ;;  %v4280_v35 = vld [vmem:[#allocation4 + $0x8] sm:$0xff]  ;;  %v4100_v25 = vld [vmem:[#allocation2 + $0xca] sm:$0xff] }
 0x62d   : > { %4072 = vst.msk [vmem:[#allocation4 + $0x88] sm:$0xff] %vm1814_vm7, %v3994_v22 }
 0x62e   : > { %4264 = vst.msk [vmem:[#allocation4 + $0x88] sm:$0xff] %vm2031_vm9, %v4186_v41  ;;  %5084 = vmatmul.msk.f32.gmra.mxu1 %vm2113_vm10, %v4280_v35 }
 0x631   : > { %3817 = vrot.lane.b32.xlu0 %v3728_v63, %s5230_s6  ;;  %3624 = vrot.lane.b32.xlu1 %v4110_v7, %s5229_s30  ;;  %v3715_v7 = vld [vmem:[#allocation2 + $0xc0] sm:$0xff] }
 0x632   : > { %4009 = vrot.lane.b32.xlu2 %v3920_v53, %s5231_s7  ;;  %v3732_v53 = vld [vmem:[#allocation2 + $0x188] sm:$0xff] }
 0x633   : > { %v4156_v51 = vpop.permute.xlu0 %4155  ;;  %v3964_v61 = vpop.permute.xlu1 %3963 }
 0x634   : > { %4057 = vst.msk [vmem:[#allocation4 + $0x10] sm:$0xff] %vm1814_vm7, %v3964_v61  ;;  %v3808_v2 = vpop.permute.xlu2 %3807 }
 0x635   : > { %4249 = vst.msk [vmem:[#allocation4 + $0x10] sm:$0xff] %vm2031_vm9, %v4156_v51  ;;  %v4296_v57 = vld [vmem:[#allocation4 + $0x88] sm:$0xff] }
 0x636   : > { %3883 = vst.msk [vmem:[#allocation4 + $0xa0] sm:$0xff] %vm1597_vm6, %v3808_v2  ;;  %5100 = vmatmul.msk.f32.vlgmr.msrb.gmra.mxu3 %vm2113_vm10, %v4296_v57  ;;  %v3717_v51 = vld [vmem:[#allocation2 + $0xd8] sm:$0xff] }
 0x639   : > { %4201 = vrot.lane.b32.xlu0 %v4112_v18, %s5232_s8  ;;  %4169 = vrot.lane.b32.xlu1 %v4096_v1, %s5232_s8  ;;  %v3733_v1 = vld [vmem:[#allocation2 + $0x198] sm:$0xff] }
 0x63a   : > { %3626 = vrot.lane.b32.xlu2 %v4111_v50, %s5229_s30 }
 0x63b   : > { %v3774_v33 = vpop.permute.xlu0 %3773  ;;  %v3996_v52 = vpop.permute.xlu1 %3995 }
 0x63c   : > { %3866 = vst.msk [vmem:[#allocation4 + $0x18] sm:$0xff] %vm1597_vm6, %v3774_v33  ;;  %v4192_v10 = vpop.permute.xlu2 %4191  ;;  %v4281_v19 = vld [vmem:[#allocation4 + $0x10] sm:$0xff]  ;;  %v4116_v33 = vld [vmem:[#allocation2 + $0x18a] sm:$0xff] }
 0x63d   : > { %4073 = vst.msk [vmem:[#allocation4 + $0x90] sm:$0xff] %vm1814_vm7, %v3996_v52  ;;  %5085 = vmatmul.msk.f32.gmra.mxu1 %vm2113_vm10, %v4281_v19 }
 0x63e   : > { %4265 = vst.msk [vmem:[#allocation4 + $0x90] sm:$0xff] %vm2031_vm9, %v4188_v31 }
 0x641   : > { %3979 = vrot.lane.b32.xlu0 %v3905_v0, %s5231_s7  ;;  %3787 = vrot.lane.b32.xlu1 %v3713_v43, %s5230_s6  ;;  %v4117_v0 = vld [vmem:[#allocation2 + $0x19a] sm:$0xff] }
 0x642   : > { %4171 = vrot.lane.b32.xlu2 %v4097_v47, %s5232_s8  ;;  %v4101_v43 = vld [vmem:[#allocation2 + $0xda] sm:$0xff] }
 0x643   : > { %v4158_v8 = vpop.permute.xlu0 %4157  ;;  %v3966_v45 = vpop.permute.xlu1 %3965  ;;  %v3909_v47 = vld [vmem:[#allocation2 + $0xd9] sm:$0xff] }
 0x644   : > { %4058 = vst.msk [vmem:[#allocation4 + $0x18] sm:$0xff] %vm1814_vm7, %v3966_v45  ;;  %v3810_v28 = vpop.permute.xlu2 %3809 }
 0x645   : > { %4250 = vst.msk [vmem:[#allocation4 + $0x18] sm:$0xff] %vm2031_vm9, %v4158_v8  ;;  %v4297_v55 = vld [vmem:[#allocation4 + $0x90] sm:$0xff] }
 0x646   : > { %3884 = vst.msk [vmem:[#allocation4 + $0xa8] sm:$0xff] %vm1597_vm6, %v3810_v28  ;;  %5101 = vmatmul.msk.f32.gmra.mxu3 %vm2113_vm10, %v4297_v55 }
 0x649   : > { %4011 = vrot.lane.b32.xlu0 %v3921_v40, %s5231_s7  ;;  %3819 = vrot.lane.b32.xlu1 %v3729_v12, %s5230_s6  ;;  %v3925_v40 = vld [vmem:[#allocation2 + $0x199] sm:$0xff] }
 0x64a   : > { %3789 = vrot.lane.b32.xlu2 %v3714_v20, %s5230_s6  ;;  %v3718_v12 = vld [vmem:[#allocation2 + $0xe0] sm:$0xff] }
 0x64b   : > { %v3776_v5 = vpop.permute.xlu0 %3775  ;;  %v3998_v9 = vpop.permute.xlu1 %3997  ;;  %v3910_v20 = vld [vmem:[#allocation2 + $0xe1] sm:$0xff] }
 0x64c   : > { %3867 = vst.msk [vmem:[#allocation4 + $0x20] sm:$0xff] %vm1597_vm6, %v3776_v5  ;;  %v4194_v42 = vpop.permute.xlu2 %4193  ;;  %v4282_v34 = vld [vmem:[#allocation4 + $0x18] sm:$0xff] }
 0x64d   : > { %4074 = vst.msk [vmem:[#allocation4 + $0x98] sm:$0xff] %vm1814_vm7, %v3998_v9  ;;  %5086 = vmatmul.msk.f32.gmra.mxu1 %vm2113_vm10, %v4282_v34 }
 0x64e   : > { %4266 = vst.msk [vmem:[#allocation4 + $0x98] sm:$0xff] %vm2031_vm9, %v4190_v27 }
 0x651   : > { %3628 = vrot.lane.b32.xlu0 %v4112_v18, %s5229_s30  ;;  %4203 = vrot.lane.b32.xlu1 %v4113_v21, %s5232_s8 }
 0x652   : > { %3821 = vrot.lane.b32.xlu2 %v3730_v37, %s5230_s6  ;;  %v3926_v37 = vld [vmem:[#allocation2 + $0x1a1] sm:$0xff] }
 0x653   : > { %v4160_v59 = vpop.permute.xlu0 %4159  ;;  %v3968_v11 = vpop.permute.xlu1 %3967 }
 0x654   : > { %4059 = vst.msk [vmem:[#allocation4 + $0x20] sm:$0xff] %vm1814_vm7, %v3968_v11  ;;  %v3812_v13 = vpop.permute.xlu2 %3811 }
 0x655   : > { %4251 = vst.msk [vmem:[#allocation4 + $0x20] sm:$0xff] %vm2031_vm9, %v4160_v59  ;;  %v4298_v29 = vld [vmem:[#allocation4 + $0x98] sm:$0xff]  ;;  %v7621_v59 = vld [vmem:[%s7847_s4] ss:$0 sm:$0xff] }
 0x656   : > { %3885 = vst.msk [vmem:[#allocation4 + $0xb0] sm:$0xff] %vm1597_vm6, %v3812_v13  ;;  %5102 = vmatmul.msk.f32.gmra.mxu3 %vm2113_vm10, %v4298_v29  ;;  %v5115_v13 = vld [vmem:[%s5288_s25 + $0x31] sm:$0xff] }
 0x659   : > { %4173 = vrot.lane.b32.xlu0 %v4098_v24, %s5232_s8  ;;  %3981 = vrot.lane.b32.xlu1 %v3906_v14, %s5231_s7 }
 0x65a   : > { %4205 = vrot.lane.b32.xlu2 %v4114_v15, %s5232_s8 }
 0x65b   : > { %v3778_v60 = vpop.permute.xlu0 %3777  ;;  %v4000_v4 = vpop.permute.xlu1 %3999 }
 0x65c   : > { %3868 = vst.msk [vmem:[#allocation4 + $0x28] sm:$0xff] %vm1597_vm6, %v3778_v60  ;;  %v4196_v41 = vpop.permute.xlu2 %4195  ;;  %v4283_v49 = vld [vmem:[#allocation4 + $0x20] sm:$0xff] }
 0x65d   : > { %4075 = vst.msk [vmem:[#allocation4 + $0xa0] sm:$0xff] %vm1814_vm7, %v4000_v4  ;;  %5087 = vmatmul.msk.f32.gmra.mxu1 %vm2113_vm10, %v4283_v49 }
 0x65e   : > { %4267 = vst.msk [vmem:[#allocation4 + $0xa0] sm:$0xff] %vm2031_vm9, %v4192_v10 }
 0x661   : > { %3791 = vrot.lane.b32.xlu0 %v3715_v7, %s5230_s6  ;;  %4013 = vrot.lane.b32.xlu1 %v3922_v38, %s5231_s7  ;;  %v4102_v7 = vld [vmem:[#allocation2 + $0xe2] sm:$0xff]  ;;  %v3911_v38 = vld [vmem:[#allocation2 + $0xf1] sm:$0xff] }
 0x662   : > { %3983 = vrot.lane.b32.xlu2 %v3907_v17, %s5231_s7 }
 0x663   : > { %v4162_v44 = vpop.permute.xlu0 %4161  ;;  %v3970_v56 = vpop.permute.xlu1 %3969 }
 0x664   : > { %4060 = vst.msk [vmem:[#allocation4 + $0x28] sm:$0xff] %vm1814_vm7, %v3970_v56  ;;  %v3814_v30 = vpop.permute.xlu2 %3813  ;;  %v5116_v56 = vld [vmem:[%s5288_s25 + $0x39] sm:$0xff] }
 0x665   : > { %4252 = vst.msk [vmem:[#allocation4 + $0x28] sm:$0xff] %vm2031_vm9, %v4162_v44  ;;  %v4299_v32 = vld [vmem:[#allocation4 + $0xa0] sm:$0xff] }
 0x666   : > { %3886 = vst.msk [vmem:[#allocation4 + $0xb8] sm:$0xff] %vm1597_vm6, %v3814_v30  ;;  %5103 = vmatmul.msk.f32.gmra.mxu3 %vm2113_vm10, %v4299_v32 }
 0x669   : > { %3823 = vrot.lane.b32.xlu0 %v3731_v54, %s5230_s6  ;;  %3630 = vrot.lane.b32.xlu1 %v4113_v21, %s5229_s30  ;;  %v3734_v21 = vld [vmem:[#allocation2 + $0x1a0] sm:$0xff] }
 0x66a   : > { %4015 = vrot.lane.b32.xlu2 %v7287_v23, %s5231_s7 }
 0x66b   : > { %v3780_v26 = vpop.permute.xlu0 %3779  ;;  %v4002_v31 = vpop.permute.xlu1 %4001 }
 0x66c   : > { %3869 = vst.msk [vmem:[#allocation4 + $0x30] sm:$0xff] %vm1597_vm6, %v3780_v26  ;;  %v4198_v6 = vpop.permute.xlu2 %4197  ;;  %v4284_v50 = vld [vmem:[#allocation4 + $0x28] sm:$0xff] }
 0x66d   : > { %4076 = vst.msk [vmem:[#allocation4 + $0xa8] sm:$0xff] %vm1814_vm7, %v4002_v31  ;;  %5088 = vmatmul.msk.f32.gmra.mxu1 %vm2113_vm10, %v4284_v50  ;;  %v4103_v50 = vld [vmem:[#allocation2 + $0xf2] sm:$0xff] }
 0x66e   : > { %4268 = vst.msk [vmem:[#allocation4 + $0xa8] sm:$0xff] %vm2031_vm9, %v4194_v42 }
 0x671   : > { %4207 = vrot.lane.b32.xlu0 %v4115_v16, %s5232_s8  ;;  %4175 = vrot.lane.b32.xlu1 %v4099_v62, %s5232_s8 }
 0x672   : > { %3632 = vrot.lane.b32.xlu2 %v4114_v15, %s5229_s30 }
 0x673   : > { %v4164_v23 = vpop.permute.xlu0 %4163  ;;  %v3972_v36 = vpop.permute.xlu1 %3971 }
 0x674   : > { %4061 = vst.msk [vmem:[#allocation4 + $0x30] sm:$0xff] %vm1814_vm7, %v3972_v36  ;;  %v3816_v39 = vpop.permute.xlu2 %3815 }
 0x675   : > { %4253 = vst.msk [vmem:[#allocation4 + $0x30] sm:$0xff] %vm2031_vm9, %v4164_v23  ;;  %v4300_v48 = vld [vmem:[#allocation4 + $0xa8] sm:$0xff] }
 0x676   : > { %3887 = vst.msk [vmem:[#allocation4 + $0xc0] sm:$0xff] %vm1597_vm6, %v3816_v39  ;;  %5104 = vmatmul.msk.f32.gmra.mxu3 %vm2113_vm10, %v4300_v48 }
 0x679   : > { %3985 = vrot.lane.b32.xlu0 %v3908_v46, %s5231_s7  ;;  %3793 = vrot.lane.b32.xlu1 %v3716_v3, %s5230_s6 }
 0x67a   : > { %4177 = vrot.lane.b32.xlu2 %v4100_v25, %s5232_s8  ;;  %v5132_v25 = vld [vmem:[%s5288_s25 + $0xf9] sm:$0xff] }
 0x67b   : > { %v3782_v22 = vpop.permute.xlu0 %3781  ;;  %v4004_v27 = vpop.permute.xlu1 %4003 }
 0x67c   : > { %3870 = vst.msk [vmem:[#allocation4 + $0x38] sm:$0xff] %vm1597_vm6, %v3782_v22  ;;  %v4200_v35 = vpop.permute.xlu2 %4199  ;;  %v4285_v63 = vld [vmem:[#allocation4 + $0x30] sm:$0xff] }
 0x67d   : > { %4077 = vst.msk [vmem:[#allocation4 + $0xb0] sm:$0xff] %vm1814_vm7, %v4004_v27  ;;  %5089 = vmatmul.msk.f32.gmra.mxu1 %vm2113_vm10, %v4285_v63 }
 0x67e   : > { %4269 = vst.msk [vmem:[#allocation4 + $0xb0] sm:$0xff] %vm2031_vm9, %v4196_v41  ;;  %v4118_v41 = vld [vmem:[#allocation2 + $0x1a2] sm:$0xff] }
 0x681   : > { %4017 = vrot.lane.b32.xlu0 %v7298_v58, %s5231_s7  ;;  %3825 = vrot.lane.b32.xlu1 %v3732_v53, %s5230_s6 }
 0x682   : > { %3795 = vrot.lane.b32.xlu2 %v3717_v51, %s5230_s6 }
 0x683   : > { %v4166_v61 = vpop.permute.xlu0 %4165  ;;  %v3974_v2 = vpop.permute.xlu1 %3973 }
 0x684   : > { %4062 = vst.msk [vmem:[#allocation4 + $0x38] sm:$0xff] %vm1814_vm7, %v3974_v2  ;;  %v3978_v57 = vpop.permute.xlu2 %3977 }
 0x685   : > { %4254 = vst.msk [vmem:[#allocation4 + $0x38] sm:$0xff] %vm2031_vm9, %v4166_v61  ;;  %v4301_v18 = vld [vmem:[#allocation4 + $0xb0] sm:$0xff] }
 0x686   : > { %5105 = vmatmul.msk.f32.gmra.mxu3 %vm2113_vm10, %v4301_v18 }
 0x689   : > { %3634 = vrot.lane.b32.xlu0 %v4115_v16, %s5229_s30  ;;  %4209 = vrot.lane.b32.xlu1 %v4116_v33, %s5232_s8  ;;  %v3719_v16 = vld [vmem:[#allocation2 + $0xf0] sm:$0xff] }
 0x68a   : > { %3827 = vrot.lane.b32.xlu2 %v3733_v1, %s5230_s6 }
 0x68b   : > { %v3784_v58 = vpop.permute.xlu0 %3783  ;;  %v4006_v52 = vpop.permute.xlu1 %4005 }
 0x68c   : > { %3871 = vst.msk [vmem:[#allocation4 + $0x40] sm:$0xff] %vm1597_vm6, %v3784_v58  ;;  %v4010_v10 = vpop.permute.xlu2 %4009  ;;  %v4286_v19 = vld [vmem:[#allocation4 + $0x38] sm:$0xff] }
 0x68d   : > { %4078 = vst.msk [vmem:[#allocation4 + $0xb8] sm:$0xff] %vm1814_vm7, %v4006_v52  ;;  %5090 = vmatmul.msk.f32.gmra.mxu1 %vm2113_vm10, %v4286_v19 }
 0x68e   : > { %4270 = vst.msk [vmem:[#allocation4 + $0xb8] sm:$0xff] %vm2031_vm9, %v4198_v6 }
 0x691   : > { %4179 = vrot.lane.b32.xlu0 %v4101_v43, %s5232_s8  ;;  %3987 = vrot.lane.b32.xlu1 %v3909_v47, %s5231_s7  ;;  %v5133_v47 = vld [vmem:[%s5288_s25 + $0x109] sm:$0xff] }
 0x692   : > { %4211 = vrot.lane.b32.xlu2 %v4117_v0, %s5232_s8 }
 0x693   : > { %v4168_v8 = vpop.permute.xlu0 %4167  ;;  %v3976_v45 = vpop.permute.xlu1 %3975 }
 0x694   : > { %4063 = vst.msk [vmem:[#allocation4 + $0x40] sm:$0xff] %vm1814_vm7, %v3976_v45  ;;  %v3627_v28 = vpop.permute.xlu2 %3626 }
 0x695   : > { %4255 = vst.msk [vmem:[#allocation4 + $0x40] sm:$0xff] %vm2031_vm9, %v4168_v8  ;;  %v4302_v55 = vld [vmem:[#allocation4 + $0xb8] sm:$0xff] }
 0x696   : > { %3696 = vst.msk [vmem:[#allocation4 + $0xd0] sm:$0xff] %vm1377_vm5, %v3627_v28  ;;  %5106 = vmatmul.msk.f32.gmra.mxu3 %vm2113_vm10, %v4302_v55  ;;  %v5118_v28 = vld [vmem:[%s5288_s25 + $0x51] sm:$0xff] }
 0x699   : > { %3797 = vrot.lane.b32.xlu0 %v3718_v12, %s5230_s6  ;;  %4019 = vrot.lane.b32.xlu1 %v3925_v40, %s5231_s7 }
 0x69a   : > { %3989 = vrot.lane.b32.xlu2 %v3910_v20, %s5231_s7 }
 0x69b   : > { %v3786_v5 = vpop.permute.xlu0 %3785  ;;  %v4008_v9 = vpop.permute.xlu1 %4007 }
 0x69c   : > { %3872 = vst.msk [vmem:[#allocation4 + $0x48] sm:$0xff] %vm1597_vm6, %v3786_v5  ;;  %v7612_v42 = vpop.permute.xlu2 %4171  ;;  %v4287_v34 = vld [vmem:[#allocation4 + $0x40] sm:$0xff] }
 0x69d   : > { %4064 = vst.msk [vmem:[#allocation4 + $0x48] sm:$0xff] %vm1814_vm7, %v3978_v57  ;;  %5091 = vmatmul.msk.f32.gmra.mxu1 %vm2113_vm10, %v4287_v34 }
 0x69e   : > { %4079 = vst.msk [vmem:[#allocation4 + $0xc0] sm:$0xff] %vm1814_vm7, %v4008_v9 }
 0x69f   : > { %4271 = vst.msk [vmem:[#allocation4 + $0xc0] sm:$0xff] %vm2031_vm9, %v4200_v35  ;;  %v5117_v35 = vld [vmem:[%s5288_s25 + $0x49] sm:$0xff] }
 0x6a1   : > { %3829 = vrot.lane.b32.xlu0 %v3734_v21, %s5230_s6  ;;  %3636 = vrot.lane.b32.xlu1 %v4116_v33, %s5229_s30 }
 0x6a2   : > { %4021 = vrot.lane.b32.xlu2 %v3926_v37, %s5231_s7 }
 0x6a3   : > { %v4436_v11 = vpop.f32.mrf.mxu1  ;;  %v3818_v29 = vpop.permute.xlu0 %3817 }
 0x6a4   : > { %v4437_v24 = vadd.f32 %v7621_v59, %v4436_v11  ;;  %v3625_v14 = vpop.permute.xlu1 %3624  ;;  %v3790_v15 = vpop.permute.xlu2 %3789 }
 0x6a5   : > { %3695 = vst.msk [vmem:[#allocation4 + $0xc8] sm:$0xff] %vm1377_vm5, %v3625_v14 }
 0x6a6   : > { %v4564_v60 = vadd.f32 %v5115_v13, %v4437_v24  ;;  %3888 = vst.msk [vmem:[#allocation4 + $0xc8] sm:$0xff] %vm1597_vm6, %v3818_v29  ;;  %v4303_v4 = vld [vmem:[#allocation4 + $0xc0] sm:$0xff] }
 0x6a7   : > { %4080 = vst.msk [vmem:[#allocation4 + $0xc8] sm:$0xff] %vm1814_vm7, %v4010_v10  ;;  %5107 = vmatmul.msk.f32.gmra.mxu3 %vm2113_vm10, %v4303_v4 }
 0x6a8   : > { %vm4596_vm1 = vcmp.ge.f32.partialorder %v4564_v60, 0.0  ;;  %v4628_v49 = vmul.f32 0.1, %v4564_v60  ;;  %3874 = vst.msk [vmem:[#allocation4 + $0x58] sm:$0xff] %vm1597_vm6, %v3790_v15 }
 0x6a9   : > { %4213 = vrot.lane.b32.xlu0 %v4118_v41, %s5232_s8  ;;  %4181 = vrot.lane.b32.xlu1 %v4102_v7, %s5232_s8 }
 0x6aa   : > { %v4660_v17 = vsel %vm4596_vm1, %v4564_v60, %v4628_v49  ;;  %3991 = vrot.lane.b32.xlu2 %v3911_v38, %s5231_s7  ;;  %v5134_v60 = vld [vmem:[%s5288_s25 + $0x111] sm:$0xff]  ;;  %v5119_v49 = vld [vmem:[%s5288_s25 + $0x61] sm:$0xff] }
 0x6ab   : > { %4692 = vst.msk [vmem:[%s7636_s23] sm:$0xff] %vm289_vm0, %v4660_v17  ;;  %v4439_v44 = vpop.f32.mrf.mxu1  ;;  %v4202_v30 = vpop.permute.xlu0 %4201 }
 0x6ac   : > { %v4440_v32 = vadd.f32 %v7621_v59, %v4439_v44  ;;  %4272 = vst.msk [vmem:[#allocation4 + $0xc8] sm:$0xff] %vm2031_vm9, %v4202_v30  ;;  %v4170_v54 = vpop.permute.xlu1 %4169  ;;  %v3822_v26 = vpop.permute.xlu2 %3821 }
 0x6ad   : > { %4256 = vst.msk [vmem:[#allocation4 + $0x48] sm:$0xff] %vm2031_vm9, %v4170_v54 }
 0x6ae   : > { %v4565_v31 = vadd.f32 %v5116_v56, %v4440_v32 }
 0x6b0   : > { %vm4597_vm2 = vcmp.ge.f32.partialorder %v4565_v31, 0.0  ;;  %v4629_v6 = vmul.f32 0.1, %v4565_v31 }
 0x6b1   : > { %4183 = vrot.lane.b32.xlu0 %v4103_v50, %s5232_s8  ;;  %3799 = vrot.lane.b32.xlu1 %v3719_v16, %s5230_s6 }
 0x6b2   : > { %v4661_v62 = vsel %vm4597_vm2, %v4565_v31, %v4629_v6 }
 0x6b3   : > { %4693 = vst.msk [vmem:[%s7636_s23 + $0x8] sm:$0xff] %vm289_vm0, %v4661_v62  ;;  %v3980_v23 = vpop.permute.xlu0 %3979  ;;  %v4304_v36 = vld [vmem:[#allocation4 + $0xc8] sm:$0xff] }
 0x6b4   : > { %v3788_v39 = vpop.permute.xlu1 %3787  ;;  %v7652_v48 = vpop.permute.xlu2 %4205  ;;  %v4288_v46 = vld [vmem:[#allocation4 + $0x48] sm:$0xff]  ;;  %5108 = vmatmul.msk.f32.gmra.mxu3 %vm2113_vm10, %v4304_v36 }
 0x6b5   : > { %3873 = vst.msk [vmem:[#allocation4 + $0x50] sm:$0xff] %vm1597_vm6, %v3788_v39  ;;  %5092 = vmatmul.msk.f32.gmra.mxu1 %vm2113_vm10, %v4288_v46 }
 0x6b6   : > { %4065 = vst.msk [vmem:[#allocation4 + $0x50] sm:$0xff] %vm1814_vm7, %v3980_v23  ;;  %v5135_v23 = vld [vmem:[%s5288_s25 + $0x121] sm:$0xff] }
 0x6b7   : > { %4257 = vst.msk [vmem:[#allocation4 + $0x50] sm:$0xff] %vm2031_vm9, %v7612_v42 }
 0x6b9   : > { %v4487_v3 = vpop.f32.mrf.mxu3 }
 0x6ba   : > { %v4488_v22 = vadd.f32 %v7621_v59, %v4487_v3  ;;  %v4442_v27 = vpop.f32.mrf.mxu1 }
 0x6bb   : > { %v4443_v63 = vadd.f32 %v7621_v59, %v4442_v27  ;;  %v4012_v53 = vpop.permute.xlu0 %4011 }
 0x6bc   : > { %v4581_v51 = vadd.f32 %v5132_v25, %v4488_v22  ;;  %v3820_v61 = vpop.permute.xlu1 %3819  ;;  %v3984_v2 = vpop.permute.xlu2 %3983 }
 0x6bd   : > { %v4566_v57 = vadd.f32 %v5117_v35, %v4443_v63  ;;  %3889 = vst.msk [vmem:[#allocation4 + $0xd0] sm:$0xff] %vm1597_vm6, %v3820_v61 }
 0x6be   : > { %vm4613_vm3 = vcmp.ge.f32.partialorder %v4581_v51, 0.0  ;;  %v4645_v18 = vmul.f32 0.1, %v4581_v51  ;;  %4081 = vst.msk [vmem:[#allocation4 + $0xd0] sm:$0xff] %vm1814_vm7, %v4012_v53  ;;  %v4289_v1 = vld [vmem:[#allocation4 + $0x50] sm:$0xff] }
 0x6bf   : > { %vm4598_vm4 = vcmp.ge.f32.partialorder %v4566_v57, 0.0  ;;  %v4630_v33 = vmul.f32 0.1, %v4566_v57  ;;  %5093 = vmatmul.msk.f32.gmra.mxu1 %vm2113_vm10, %v4289_v1 }
 0x6c0   : > { %v4677_v58 = vsel %vm4613_vm3, %v4581_v51, %v4645_v18 }
 0x6c1   : > { %4709 = vst.msk [vmem:[%s7636_s23 + $0x88] sm:$0xff] %vm289_vm0, %v4677_v58  ;;  %v4662_v52 = vsel %vm4598_vm4, %v4566_v57, %v4630_v33 }
 0x6c2   : > { %4694 = vst.msk [vmem:[%s7636_s23 + $0x10] sm:$0xff] %vm289_vm0, %v4662_v52  ;;  %v5136_v52 = vld [vmem:[%s5288_s25 + $0x129] sm:$0xff] }
 0x6c3   : > { %v3629_v10 = vpop.permute.xlu0 %3628 }
 0x6c4   : > { %3697 = vst.msk [vmem:[#allocation4 + $0xd8] sm:$0xff] %vm1377_vm5, %v3629_v10  ;;  %v4204_v19 = vpop.permute.xlu1 %4203  ;;  %v4016_v0 = vpop.permute.xlu2 %4015 }
 0x6c5   : > { %3890 = vst.msk [vmem:[#allocation4 + $0xd8] sm:$0xff] %vm1597_vm6, %v3822_v26 }
 0x6c6   : > { %4273 = vst.msk [vmem:[#allocation4 + $0xd0] sm:$0xff] %vm2031_vm9, %v4204_v19 }
 0x6c9   : > { %v4490_v43 = vpop.f32.mrf.mxu3 }
 0x6ca   : > { %v4491_v8 = vadd.f32 %v7621_v59, %v4490_v43  ;;  %v4445_v45 = vpop.f32.mrf.mxu1 }
 0x6cb   : > { %v4446_v55 = vadd.f32 %v7621_v59, %v4445_v45  ;;  %v4174_v40 = vpop.permute.xlu0 %4173 }
 0x6cc   : > { %v4582_v12 = vadd.f32 %v5133_v47, %v4491_v8  ;;  %v3982_v20 = vpop.permute.xlu1 %3981  ;;  %v3633_v5 = vpop.permute.xlu2 %3632 }
 0x6cd   : > { %v4567_v9 = vadd.f32 %v5118_v28, %v4446_v55  ;;  %4066 = vst.msk [vmem:[#allocation4 + $0x58] sm:$0xff] %vm1814_vm7, %v3982_v20  ;;  %v4305_v42 = vld [vmem:[#allocation4 + $0xd0] sm:$0xff] }
 0x6ce   : > { %vm4614_vm8 = vcmp.ge.f32.partialorder %v4582_v12, 0.0  ;;  %v4646_v34 = vmul.f32 0.1, %v4582_v12  ;;  %4258 = vst.msk [vmem:[#allocation4 + $0x58] sm:$0xff] %vm2031_vm9, %v4174_v40  ;;  %5109 = vmatmul.msk.f32.gmra.mxu3 %vm2113_vm10, %v4305_v42 }
 0x6cf   : > { %vm4599_vm14 = vcmp.ge.f32.partialorder %v4567_v9, 0.0  ;;  %v4631_v21 = vmul.f32 0.1, %v4567_v9  ;;  %3699 = vst.msk [vmem:[#allocation4 + $0xe8] sm:$0xff] %vm1377_vm5, %v3633_v5 }
 0x6d0   : > { %v4678_v37 = vsel %vm4614_vm8, %v4582_v12, %v4646_v34 }
 0x6d1   : > { %4710 = vst.msk [vmem:[%s7636_s23 + $0x90] sm:$0xff] %vm289_vm0, %v4678_v37  ;;  %v4663_v11 = vsel %vm4599_vm14, %v4567_v9, %v4631_v21  ;;  %v5137_v37 = vld [vmem:[%s5288_s25 + $0x139] sm:$0xff] }
 0x6d2   : > { %4695 = vst.msk [vmem:[%s7636_s23 + $0x18] sm:$0xff] %vm289_vm0, %v4663_v11 }
 0x6d3   : > { %v3792_v13 = vpop.permute.xlu0 %3791 }
 0x6d4   : > { %3875 = vst.msk [vmem:[#allocation4 + $0x60] sm:$0xff] %vm1597_vm6, %v3792_v13  ;;  %v4014_v29 = vpop.permute.xlu1 %4013  ;;  %v4178_v24 = vpop.permute.xlu2 %4177 }
 0x6d5   : > { %4067 = vst.msk [vmem:[#allocation4 + $0x60] sm:$0xff] %vm1814_vm7, %v3984_v2  ;;  %v4290_v14 = vld [vmem:[#allocation4 + $0x58] sm:$0xff] }
 0x6d6   : > { %4082 = vst.msk [vmem:[#allocation4 + $0xd8] sm:$0xff] %vm1814_vm7, %v4014_v29  ;;  %5094 = vmatmul.msk.f32.gmra.mxu1 %vm2113_vm10, %v4290_v14  ;;  %v5122_v29 = vld [vmem:[%s5288_s25 + $0x81] sm:$0xff] }
 0x6d7   : > { %4274 = vst.msk [vmem:[#allocation4 + $0xd8] sm:$0xff] %vm2031_vm9, %v7652_v48  ;;  %v5120_v48 = vld [vmem:[%s5288_s25 + $0x69] sm:$0xff] }
 0x6d9   : > { %v4493_v15 = vpop.f32.mrf.mxu3 }
 0x6da   : > { %v4494_v4 = vadd.f32 %v7621_v59, %v4493_v15  ;;  %v4448_v41 = vpop.f32.mrf.mxu1 }
 0x6db   : > { %v4449_v7 = vadd.f32 %v7621_v59, %v4448_v41  ;;  %v3824_v38 = vpop.permute.xlu0 %3823 }
 0x6dc   : > { %v4583_v17 = vadd.f32 %v5134_v60, %v4494_v4  ;;  %v3631_v44 = vpop.permute.xlu1 %3630  ;;  %v3796_v30 = vpop.permute.xlu2 %3795 }
 0x6dd   : > { %v4568_v56 = vadd.f32 %v5119_v49, %v4449_v7  ;;  %3698 = vst.msk [vmem:[#allocation4 + $0xe0] sm:$0xff] %vm1377_vm5, %v3631_v44 }
 0x6de   : > { %vm4615_vm15 = vcmp.ge.f32.partialorder %v4583_v17, 0.0  ;;  %v4647_v32 = vmul.f32 0.1, %v4583_v17  ;;  %3891 = vst.msk [vmem:[#allocation4 + $0xe0] sm:$0xff] %vm1597_vm6, %v3824_v38  ;;  %v4306_v54 = vld [vmem:[#allocation4 + $0xd8] sm:$0xff] }
 0x6df   : > { %vm4600_vm12 = vcmp.ge.f32.partialorder %v4568_v56, 0.0  ;;  %v4632_v26 = vmul.f32 0.1, %v4568_v56  ;;  %4083 = vst.msk [vmem:[#allocation4 + $0xe0] sm:$0xff] %vm1814_vm7, %v4016_v0  ;;  %5110 = vmatmul.msk.f32.gmra.mxu3 %vm2113_vm10, %v4306_v54  ;;  %v5121_v0 = vld [vmem:[%s5288_s25 + $0x79] sm:$0xff] }
 0x6e0   : > { %v4679_v31 = vsel %vm4615_vm15, %v4583_v17, %v4647_v32  ;;  %3877 = vst.msk [vmem:[#allocation4 + $0x70] sm:$0xff] %vm1597_vm6, %v3796_v30 }
 0x6e1   : > { %4711 = vst.msk [vmem:[%s7636_s23 + $0x98] sm:$0xff] %vm289_vm0, %v4679_v31  ;;  %v4664_v6 = vsel %vm4600_vm12, %v4568_v56, %v4632_v26  ;;  %v5138_v31 = vld [vmem:[%s5288_s25 + $0x141] sm:$0xff] }
 0x6e2   : > { %4696 = vst.msk [vmem:[%s7636_s23 + $0x20] sm:$0xff] %vm289_vm0, %v4664_v6 }
 0x6e3   : > { %v4208_v50 = vpop.permute.xlu0 %4207 }
 0x6e4   : > { %4275 = vst.msk [vmem:[#allocation4 + $0xe0] sm:$0xff] %vm2031_vm9, %v4208_v50  ;;  %v4176_v16 = vpop.permute.xlu1 %4175  ;;  %v3828_v33 = vpop.permute.xlu2 %3827 }
 0x6e5   : > { %4259 = vst.msk [vmem:[#allocation4 + $0x60] sm:$0xff] %vm2031_vm9, %v4176_v16  ;;  %v5123_v16 = vld [vmem:[%s5288_s25 + $0x91] sm:$0xff] }
 0x6e9   : > { %v4496_v62 = vpop.f32.mrf.mxu3 }
 0x6ea   : > { %v4497_v36 = vadd.f32 %v7621_v59, %v4496_v62  ;;  %v4451_v39 = vpop.f32.mrf.mxu1 }
 0x6eb   : > { %v4452_v46 = vadd.f32 %v7621_v59, %v4451_v39  ;;  %v3986_v3 = vpop.permute.xlu0 %3985  ;;  %v4307_v25 = vld [vmem:[#allocation4 + $0xe0] sm:$0xff] }
 0x6ec   : > { %v4584_v22 = vadd.f32 %v5135_v23, %v4497_v36  ;;  %v3794_v27 = vpop.permute.xlu1 %3793  ;;  %v4291_v35 = vld [vmem:[#allocation4 + $0x60] sm:$0xff]  ;;  %5111 = vmatmul.msk.f32.gmra.mxu3 %vm2113_vm10, %v4307_v25  ;;  %v4212_v5 = vpop.permute.xlu2 %4211 }
 0x6ed   : > { %v4569_v63 = vadd.f32 %v5120_v48, %v4452_v46  ;;  %3876 = vst.msk [vmem:[#allocation4 + $0x68] sm:$0xff] %vm1597_vm6, %v3794_v27  ;;  %5095 = vmatmul.msk.f32.gmra.mxu1 %vm2113_vm10, %v4291_v35 }
 0x6ee   : > { %vm4616_vm11 = vcmp.ge.f32.partialorder %v4584_v22, 0.0  ;;  %v4648_v53 = vmul.f32 0.1, %v4584_v22  ;;  %4068 = vst.msk [vmem:[#allocation4 + $0x68] sm:$0xff] %vm1814_vm7, %v3986_v3 }
 0x6ef   : > { %vm4601_vm13 = vcmp.ge.f32.partialorder %v4569_v63, 0.0  ;;  %v4633_v51 = vmul.f32 0.1, %v4569_v63  ;;  %4260 = vst.msk [vmem:[#allocation4 + $0x68] sm:$0xff] %vm2031_vm9, %v4178_v24 }
 0x6f0   : > { %v4680_v61 = vsel %vm4616_vm11, %v4584_v22, %v4648_v53 }
 0x6f1   : > { %4712 = vst.msk [vmem:[%s7636_s23 + $0xa0] sm:$0xff] %vm289_vm0, %v4680_v61  ;;  %v4665_v2 = vsel %vm4601_vm13, %v4569_v63, %v4633_v51 }
 0x6f2   : > { %4697 = vst.msk [vmem:[%s7636_s23 + $0x28] sm:$0xff] %vm289_vm0, %v4665_v2  ;;  %v5139_v2 = vld [vmem:[%s5288_s25 + $0x151] sm:$0xff] }
 0x6f3   : > { %v4018_v57 = vpop.permute.xlu0 %4017 }
 0x6f4   : > { %v3826_v18 = vpop.permute.xlu1 %3825  ;;  %v3990_v15 = vpop.permute.xlu2 %3989 }
 0x6f5   : > { %3892 = vst.msk [vmem:[#allocation4 + $0xe8] sm:$0xff] %vm1597_vm6, %v3826_v18 }
 0x6f6   : > { %4084 = vst.msk [vmem:[#allocation4 + $0xe8] sm:$0xff] %vm1814_vm7, %v4018_v57  ;;  %v4292_v1 = vld [vmem:[#allocation4 + $0x68] sm:$0xff] }
 0x6f7   : > { %5096 = vmatmul.msk.f32.gmra.mxu1 %vm2113_vm10, %v4292_v1 }
 0x6f9   : > { %v4499_v58 = vpop.f32.mrf.mxu3 }
 0x6fa   : > { %v4500_v10 = vadd.f32 %v7621_v59, %v4499_v58  ;;  %v4454_v19 = vpop.f32.mrf.mxu1 }
 0x6fb   : > { %v4455_v43 = vadd.f32 %v7621_v59, %v4454_v19  ;;  %v3635_v47 = vpop.permute.xlu0 %3634 }
 0x6fc   : > { %v4585_v8 = vadd.f32 %v5136_v52, %v4500_v10  ;;  %3700 = vst.msk [vmem:[#allocation4 + $0xf0] sm:$0xff] %vm1377_vm5, %v3635_v47  ;;  %v4210_v45 = vpop.permute.xlu1 %4209  ;;  %v4022_v32 = vpop.permute.xlu2 %4021  ;;  %v5124_v10 = vld [vmem:[%s5288_s25 + $0x99] sm:$0xff] }
 0x6fd   : > { %v4570_v28 = vadd.f32 %v5121_v0, %v4455_v43  ;;  %3893 = vst.msk [vmem:[#allocation4 + $0xf0] sm:$0xff] %vm1597_vm6, %v3828_v33 }
 0x6fe   : > { %vm4617_vm1 = vcmp.ge.f32.partialorder %v4585_v8, 0.0  ;;  %v4649_v55 = vmul.f32 0.1, %v4585_v8  ;;  %4276 = vst.msk [vmem:[#allocation4 + $0xe8] sm:$0xff] %vm2031_vm9, %v4210_v45 }
 0x6ff   : > { %vm4602_vm2 = vcmp.ge.f32.partialorder %v4570_v28, 0.0  ;;  %v4634_v40 = vmul.f32 0.1, %v4570_v28 }
 0x700   : > { %v4681_v12 = vsel %vm4617_vm1, %v4585_v8, %v4649_v55  ;;  %v5140_v8 = vld [vmem:[%s5288_s25 + $0x159] sm:$0xff] }
 0x701   : > { %4713 = vst.msk [vmem:[%s7636_s23 + $0xa8] sm:$0xff] %vm289_vm0, %v4681_v12  ;;  %v4666_v20 = vsel %vm4602_vm2, %v4570_v28, %v4634_v40 }
 0x702   : > { %4698 = vst.msk [vmem:[%s7636_s23 + $0x30] sm:$0xff] %vm289_vm0, %v4666_v20  ;;  %v5125_v20 = vld [vmem:[%s5288_s25 + $0xa9] sm:$0xff] }
 0x703   : > { %v4180_v9 = vpop.permute.xlu0 %4179 }
 0x704   : > { %v3988_v42 = vpop.permute.xlu1 %3987  ;;  %v3992_v53 = vpop.permute.xlu2 %3991 }
 0x705   : > { %4069 = vst.msk [vmem:[#allocation4 + $0x70] sm:$0xff] %vm1814_vm7, %v3988_v42  ;;  %v4308_v34 = vld [vmem:[#allocation4 + $0xe8] sm:$0xff] }
 0x706   : > { %4261 = vst.msk [vmem:[#allocation4 + $0x70] sm:$0xff] %vm2031_vm9, %v4180_v9  ;;  %5112 = vmatmul.msk.f32.gmra.mxu3 %vm2113_vm10, %v4308_v34 }
 0x709   : > { %v4502_v21 = vpop.f32.mrf.mxu3 }
 0x70a   : > { %v4503_v11 = vadd.f32 %v7621_v59, %v4502_v21  ;;  %v4457_v13 = vpop.f32.mrf.mxu1 }
 0x70b   : > { %v4458_v24 = vadd.f32 %v7621_v59, %v4457_v13  ;;  %v3798_v14 = vpop.permute.xlu0 %3797 }
 0x70c   : > { %v4586_v60 = vadd.f32 %v5137_v37, %v4503_v11  ;;  %3878 = vst.msk [vmem:[#allocation4 + $0x78] sm:$0xff] %vm1597_vm6, %v3798_v14  ;;  %v4020_v4 = vpop.permute.xlu1 %4019  ;;  %v5141_v11 = vld [vmem:[%s5288_s25 + $0x169] sm:$0xff] }
 0x70d   : > { %v4571_v41 = vadd.f32 %v5122_v29, %v4458_v24  ;;  %4070 = vst.msk [vmem:[#allocation4 + $0x78] sm:$0xff] %vm1814_vm7, %v3990_v15  ;;  %v4293_v49 = vld [vmem:[#allocation4 + $0x70] sm:$0xff]  ;;  %v5126_v24 = vld [vmem:[%s5288_s25 + $0xb1] sm:$0xff] }
 0x70e   : > { %vm4618_vm3 = vcmp.ge.f32.partialorder %v4586_v60, 0.0  ;;  %v4650_v7 = vmul.f32 0.1, %v4586_v60  ;;  %4085 = vst.msk [vmem:[#allocation4 + $0xf0] sm:$0xff] %vm1814_vm7, %v4020_v4  ;;  %5097 = vmatmul.msk.f32.gmra.mxu1 %vm2113_vm10, %v4293_v49 }
 0x70f   : > { %vm4603_vm4 = vcmp.ge.f32.partialorder %v4571_v41, 0.0  ;;  %v4635_v38 = vmul.f32 0.1, %v4571_v41  ;;  %4277 = vst.msk [vmem:[#allocation4 + $0xf0] sm:$0xff] %vm2031_vm9, %v4212_v5 }
 0x710   : > { %v4682_v17 = vsel %vm4618_vm3, %v4586_v60, %v4650_v7 }
 0x711   : > { %4714 = vst.msk [vmem:[%s7636_s23 + $0xb0] sm:$0xff] %vm289_vm0, %v4682_v17  ;;  %v4667_v44 = vsel %vm4603_vm4, %v4571_v41, %v4635_v38  ;;  %v5142_v17 = vld [vmem:[%s5288_s25 + $0x171] sm:$0xff] }
 0x712   : > { %4699 = vst.msk [vmem:[%s7636_s23 + $0x38] sm:$0xff] %vm289_vm0, %v4667_v44 }
 0x713   : > { %v3830_v56 = vpop.permute.xlu0 %3829 }
 0x714   : > { %v3637_v30 = vpop.permute.xlu1 %3636 }
 0x715   : > { %3701 = vst.msk [vmem:[#allocation4 + $0xf8] sm:$0xff] %vm1377_vm5, %v3637_v30 }
 0x716   : > { %3894 = vst.msk [vmem:[#allocation4 + $0xf8] sm:$0xff] %vm1597_vm6, %v3830_v56  ;;  %v4309_v54 = vld [vmem:[#allocation4 + $0xf0] sm:$0xff] }
 0x717   : > { %4086 = vst.msk [vmem:[#allocation4 + $0xf8] sm:$0xff] %vm1814_vm7, %v4022_v32  ;;  %5113 = vmatmul.msk.f32.gmra.mxu3 %vm2113_vm10, %v4309_v54 }
 0x719   : > { %v4505_v26 = vpop.f32.mrf.mxu3 }
 0x71a   : > { %v4506_v6 = vadd.f32 %v7621_v59, %v4505_v26  ;;  %v4460_v50 = vpop.f32.mrf.mxu1  ;;  %v5127_v26 = vld [vmem:[%s5288_s25 + $0xc1] sm:$0xff] }
 0x71b   : > { %v4461_v62 = vadd.f32 %v7621_v59, %v4460_v50  ;;  %v4214_v23 = vpop.permute.xlu0 %4213 }
 0x71c   : > { %v4587_v36 = vadd.f32 %v5138_v31, %v4506_v6  ;;  %4278 = vst.msk [vmem:[#allocation4 + $0xf8] sm:$0xff] %vm2031_vm9, %v4214_v23  ;;  %v4182_v39 = vpop.permute.xlu1 %4181 }
 0x71d   : > { %v4572_v48 = vadd.f32 %v5123_v16, %v4461_v62  ;;  %4262 = vst.msk [vmem:[#allocation4 + $0x78] sm:$0xff] %vm2031_vm9, %v4182_v39  ;;  %v5143_v62 = vld [vmem:[%s5288_s25 + $0x181] sm:$0xff] }
 0x71e   : > { %vm4619_vm5 = vcmp.ge.f32.partialorder %v4587_v36, 0.0  ;;  %v4651_v46 = vmul.f32 0.1, %v4587_v36 }
 0x71f   : > { %vm4604_vm8 = vcmp.ge.f32.partialorder %v4572_v48, 0.0  ;;  %v4636_v3 = vmul.f32 0.1, %v4572_v48 }
 0x720   : > { %v4683_v25 = vsel %vm4619_vm5, %v4587_v36, %v4651_v46 }
 0x721   : > { %4715 = vst.msk [vmem:[%s7636_s23 + $0xb8] sm:$0xff] %vm289_vm0, %v4683_v25  ;;  %v4668_v22 = vsel %vm4604_vm8, %v4572_v48, %v4636_v3  ;;  %v5128_v3 = vld [vmem:[%s5288_s25 + $0xc9] sm:$0xff] }
 0x722   : > { %4700 = vst.msk [vmem:[%s7636_s23 + $0x40] sm:$0xff] %vm289_vm0, %v4668_v22 }
 0x723   : > { %v4310_v27 = vld [vmem:[#allocation4 + $0xf8] sm:$0xff]  ;;  %v4184_v51 = vpop.permute.xlu0 %4183 }
 0x724   : > { %v3800_v35 = vpop.permute.xlu1 %3799  ;;  %v4294_v63 = vld [vmem:[#allocation4 + $0x78] sm:$0xff]  ;;  %5114 = vmatmul.msk.f32.gmra.mxu3 %vm2113_vm10, %v4310_v27 }
 0x725   : > { %3879 = vst.msk [vmem:[#allocation4 + $0x80] sm:$0xff] %vm1597_vm6, %v3800_v35  ;;  %5098 = vmatmul.msk.f32.gmra.mxu1 %vm2113_vm10, %v4294_v63 }
 0x726   : > { %4071 = vst.msk [vmem:[#allocation4 + $0x80] sm:$0xff] %vm1814_vm7, %v3992_v53 }
 0x727   : > { %4263 = vst.msk [vmem:[#allocation4 + $0x80] sm:$0xff] %vm2031_vm9, %v4184_v51  ;;  %v5144_v51 = vld [vmem:[%s5288_s25 + $0x189] sm:$0xff] }
 0x72a   : > { %v4508_v61 = vpop.f32.mrf.mxu3 }
 0x72b   : > { %v4509_v57 = vadd.f32 %v7621_v59, %v4508_v61 }
 0x72d   : > { %v4588_v18 = vadd.f32 %v5139_v2, %v4509_v57  ;;  %v5129_v57 = vld [vmem:[%s5288_s25 + $0xd9] sm:$0xff] }
 0x72e   : > { %v4295_v1 = vld [vmem:[#allocation4 + $0x80] sm:$0xff] }
 0x72f   : > { %vm4620_vm14 = vcmp.ge.f32.partialorder %v4588_v18, 0.0  ;;  %v4652_v33 = vmul.f32 0.1, %v4588_v18  ;;  %5099 = vmatmul.msk.f32.gmra.mxu1 %vm2113_vm10, %v4295_v1 }
 0x731   : > { %v4684_v58 = vsel %vm4620_vm14, %v4588_v18, %v4652_v33 }
 0x732   : > { %4716 = vst.msk [vmem:[%s7636_s23 + $0xc0] sm:$0xff] %vm289_vm0, %v4684_v58  ;;  %v4463_v52 = vpop.f32.mrf.mxu1 }
 0x733   : > { %v4464_v19 = vadd.f32 %v7621_v59, %v4463_v52 }
 0x735   : > { %v4573_v0 = vadd.f32 %v5124_v10, %v4464_v19 }
 0x737   : > { %vm4605_vm6 = vcmp.ge.f32.partialorder %v4573_v0, 0.0  ;;  %v4637_v43 = vmul.f32 0.1, %v4573_v0  ;;  %v4511_v47 = vpop.f32.mrf.mxu3 }
 0x738   : > { %v4512_v45 = vadd.f32 %v7621_v59, %v4511_v47 }
 0x739   : > { %v4669_v28 = vsel %vm4605_vm6, %v4573_v0, %v4637_v43  ;;  %v5145_v43 = vld [vmem:[%s5288_s25 + $0x199] sm:$0xff] }
 0x73a   : > { %4701 = vst.msk [vmem:[%s7636_s23 + $0x48] sm:$0xff] %vm289_vm0, %v4669_v28  ;;  %v4589_v55 = vadd.f32 %v5140_v8, %v4512_v45 }
 0x73c   : > { %vm4621_vm7 = vcmp.ge.f32.partialorder %v4589_v55, 0.0  ;;  %v4653_v40 = vmul.f32 0.1, %v4589_v55  ;;  %v4466_v12 = vpop.f32.mrf.mxu1 }
 0x73d   : > { %v4467_v5 = vadd.f32 %v7621_v59, %v4466_v12 }
 0x73e   : > { %v4685_v9 = vsel %vm4621_vm7, %v4589_v55, %v4653_v40  ;;  %v5130_v40 = vld [vmem:[%s5288_s25 + $0xe1] sm:$0xff] }
 0x73f   : > { %4717 = vst.msk [vmem:[%s7636_s23 + $0xc8] sm:$0xff] %vm289_vm0, %v4685_v9  ;;  %v4574_v42 = vadd.f32 %v5125_v20, %v4467_v5 }
 0x741   : > { %vm4606_vm9 = vcmp.ge.f32.partialorder %v4574_v42, 0.0  ;;  %v4638_v34 = vmul.f32 0.1, %v4574_v42 }
 0x743   : > { %v4670_v21 = vsel %vm4606_vm9, %v4574_v42, %v4638_v34  ;;  %v5146_v42 = vld [vmem:[%s5288_s25 + $0x1a1] sm:$0xff] }
 0x744   : > { %4702 = vst.msk [vmem:[%s7636_s23 + $0x50] sm:$0xff] %vm289_vm0, %v4670_v21 }
 0x751   : > { %v4514_v37 = vpop.f32.mrf.mxu3 }
 0x752   : > { %v4515_v13 = vadd.f32 %v7621_v59, %v4514_v37 }
 0x753   : > { %v4469_v29 = vpop.f32.mrf.mxu1 }
 0x754   : > { %v4590_v14 = vadd.f32 %v5141_v11, %v4515_v13  ;;  %v4470_v15 = vadd.f32 %v7621_v59, %v4469_v29  ;;  %v5131_v29 = vld [vmem:[%s5288_s25 + $0xf1] sm:$0xff] }
 0x756   : > { %vm4622_vm10 = vcmp.ge.f32.partialorder %v4590_v14, 0.0  ;;  %v4654_v60 = vmul.f32 0.1, %v4590_v14  ;;  %v4575_v4 = vadd.f32 %v5126_v24, %v4470_v15 }
 0x758   : > { %v4686_v41 = vsel %vm4622_vm10, %v4590_v14, %v4654_v60  ;;  %vm4607_vm15 = vcmp.ge.f32.partialorder %v4575_v4, 0.0  ;;  %v4639_v49 = vmul.f32 0.1, %v4575_v4 }
 0x759   : > { %4718 = vst.msk [vmem:[%s7636_s23 + $0xd0] sm:$0xff] %vm289_vm0, %v4686_v41 }
 0x75a   : > { %v4671_v7 = vsel %vm4607_vm15, %v4575_v4, %v4639_v49 }
 0x75b   : > { %4703 = vst.msk [vmem:[%s7636_s23 + $0x58] sm:$0xff] %vm289_vm0, %v4671_v7 }
 0x762   : > { %v4517_v38 = vpop.f32.mrf.mxu3 }
 0x763   : > { %v4518_v44 = vadd.f32 %v7621_v59, %v4517_v38 }
 0x765   : > { %v4591_v56 = vadd.f32 %v5142_v17, %v4518_v44 }
 0x767   : > { %vm4623_vm12 = vcmp.ge.f32.partialorder %v4591_v56, 0.0  ;;  %v4655_v30 = vmul.f32 0.1, %v4591_v56 }
 0x769   : > { %v4687_v32 = vsel %vm4623_vm12, %v4591_v56, %v4655_v30 }
 0x76a   : > { %4719 = vst.msk [vmem:[%s7636_s23 + $0xd8] sm:$0xff] %vm289_vm0, %v4687_v32  ;;  %v4472_v54 = vpop.f32.mrf.mxu1 }
 0x76b   : > { %v4473_v31 = vadd.f32 %v7621_v59, %v4472_v54 }
 0x76d   : > { %v4576_v6 = vadd.f32 %v5127_v26, %v4473_v31 }
 0x76f   : > { %vm4608_vm11 = vcmp.ge.f32.partialorder %v4576_v6, 0.0  ;;  %v4640_v50 = vmul.f32 0.1, %v4576_v6  ;;  %v4520_v16 = vpop.f32.mrf.mxu3 }
 0x770   : > { %v4521_v23 = vadd.f32 %v7621_v59, %v4520_v16 }
 0x771   : > { %v4672_v36 = vsel %vm4608_vm11, %v4576_v6, %v4640_v50 }
 0x772   : > { %4704 = vst.msk [vmem:[%s7636_s23 + $0x60] sm:$0xff] %vm289_vm0, %v4672_v36  ;;  %v4592_v39 = vadd.f32 %v5143_v62, %v4521_v23 }
 0x774   : > { %vm4624_vm13 = vcmp.ge.f32.partialorder %v4592_v39, 0.0  ;;  %v4656_v48 = vmul.f32 0.1, %v4592_v39  ;;  %v4475_v46 = vpop.f32.mrf.mxu1 }
 0x775   : > { %v4476_v25 = vadd.f32 %v7621_v59, %v4475_v46 }
 0x776   : > { %v4688_v22 = vsel %vm4624_vm13, %v4592_v39, %v4656_v48 }
 0x777   : > { %4720 = vst.msk [vmem:[%s7636_s23 + $0xe0] sm:$0xff] %vm289_vm0, %v4688_v22  ;;  %v4577_v27 = vadd.f32 %v5128_v3, %v4476_v25 }
 0x779   : > { %vm4609_vm1 = vcmp.ge.f32.partialorder %v4577_v27, 0.0  ;;  %v4641_v35 = vmul.f32 0.1, %v4577_v27 }
 0x77b   : > { %v4673_v63 = vsel %vm4609_vm1, %v4577_v27, %v4641_v35 }
 0x77c   : > { %4705 = vst.msk [vmem:[%s7636_s23 + $0x68] sm:$0xff] %vm289_vm0, %v4673_v63 }
 0x789   : > { %v4523_v53 = vpop.f32.mrf.mxu3 }
 0x78a   : > { %v4524_v61 = vadd.f32 %v7621_v59, %v4523_v53 }
 0x78b   : > { %v4478_v2 = vpop.f32.mrf.mxu1 }
 0x78c   : > { %v4593_v18 = vadd.f32 %v5144_v51, %v4524_v61  ;;  %v4479_v1 = vadd.f32 %v7621_v59, %v4478_v2 }
 0x78e   : > { %vm4625_vm2 = vcmp.ge.f32.partialorder %v4593_v18, 0.0  ;;  %v4657_v33 = vmul.f32 0.1, %v4593_v18  ;;  %v4578_v58 = vadd.f32 %v5129_v57, %v4479_v1 }
 0x790   : > { %v4689_v52 = vsel %vm4625_vm2, %v4593_v18, %v4657_v33  ;;  %vm4610_vm3 = vcmp.ge.f32.partialorder %v4578_v58, 0.0  ;;  %v4642_v10 = vmul.f32 0.1, %v4578_v58 }
 0x791   : > { %4721 = vst.msk [vmem:[%s7636_s23 + $0xe8] sm:$0xff] %vm289_vm0, %v4689_v52 }
 0x792   : > { %v4674_v19 = vsel %vm4610_vm3, %v4578_v58, %v4642_v10 }
 0x793   : > { %4706 = vst.msk [vmem:[%s7636_s23 + $0x70] sm:$0xff] %vm289_vm0, %v4674_v19 }
 0x79a   : > { %v4526_v0 = vpop.f32.mrf.mxu3 }
 0x79b   : > { %v4527_v47 = vadd.f32 %v7621_v59, %v4526_v0 }
 0x79d   : > { %v4594_v8 = vadd.f32 %v5145_v43, %v4527_v47 }
 0x79f   : > { %vm4626_vm4 = vcmp.ge.f32.partialorder %v4594_v8, 0.0  ;;  %v4658_v45 = vmul.f32 0.1, %v4594_v8 }
 0x7a1   : > { %v4690_v28 = vsel %vm4626_vm4, %v4594_v8, %v4658_v45 }
 0x7a2   : > { %4722 = vst.msk [vmem:[%s7636_s23 + $0xf0] sm:$0xff] %vm289_vm0, %v4690_v28  ;;  %v4481_v55 = vpop.f32.mrf.mxu1 }
 0x7a3   : > { %v4482_v12 = vadd.f32 %v7621_v59, %v4481_v55 }
 0x7a5   : > { %v4579_v20 = vadd.f32 %v5130_v40, %v4482_v12 }
 0x7a7   : > { %vm4611_vm5 = vcmp.ge.f32.partialorder %v4579_v20, 0.0  ;;  %v4643_v5 = vmul.f32 0.1, %v4579_v20  ;;  %v4529_v9 = vpop.f32.mrf.mxu3 }
 0x7a8   : > { %v4530_v34 = vadd.f32 %v7621_v59, %v4529_v9 }
 0x7a9   : > { %v4675_v21 = vsel %vm4611_vm5, %v4579_v20, %v4643_v5 }
 0x7aa   : > { %4707 = vst.msk [vmem:[%s7636_s23 + $0x78] sm:$0xff] %vm289_vm0, %v4675_v21  ;;  %v4595_v37 = vadd.f32 %v5146_v42, %v4530_v34 }
 0x7ac   : > { %vm4627_vm8 = vcmp.ge.f32.partialorder %v4595_v37, 0.0  ;;  %v4659_v11 = vmul.f32 0.1, %v4595_v37  ;;  %v4484_v13 = vpop.f32.mrf.mxu1 }
 0x7ad   : > { %v4485_v24 = vadd.f32 %v7621_v59, %v4484_v13 }
 0x7ae   : > { %v4691_v14 = vsel %vm4627_vm8, %v4595_v37, %v4659_v11 }
 0x7af   : > { %4723 = vst.msk [vmem:[%s7636_s23 + $0xf8] sm:$0xff] %vm289_vm0, %v4691_v14  ;;  %v4580_v15 = vadd.f32 %v5131_v29, %v4485_v24 }
 0x7b1   : > { %vm4612_vm14 = vcmp.ge.f32.partialorder %v4580_v15, 0.0  ;;  %v4644_v60 = vmul.f32 0.1, %v4580_v15 }
 0x7b3   : > { %v4676_v4 = vsel %vm4612_vm14, %v4580_v15, %v4644_v60 }
 0x7b4   : > { %4708 = vst.msk [vmem:[%s7636_s23 + $0x80] sm:$0xff] %vm289_vm0, %v4676_v4 }
 0x7b5 PF: > { %s15_s20 = sadd.s32 1, %s5223_s20   ;;  %s8032_s18 = smov %s5219_s19 }
 0x7b6   : > { %p12_p5 = scmp.ge.s32.totalorder %s15_s20, 4   ;;  %s8033_s19 = smov %s8035_s21 }
 0x7b8   :  { %14 = sbr.rel (!%p12_p5) target bundleno = 2 (0x2), region = 75 }

</bundles_post_ra>
